<compile_context>
chip_gen: v6e
topology: v6e:2x2x1
jax: 0.10.0
libtpu: 0.0.40
codegen_flags: <defaults>
</compile_context>

<pallas_src>
import functools

import jax
import jax.numpy as jnp
from jax import lax
from jax.experimental import pallas as pl
from jax.experimental.pallas import tpu as pltpu

EPS = 1e-5


# ----------------------------------------------------------------------------
# Fused kernel: whole residual block for one image, entirely in VMEM.
# ----------------------------------------------------------------------------
def _residual_block_kernel(*refs, H, W, Ho, Wo, Cin, Cout, stride, has_proj,
                           compute_dtype):
    """Refs (proj variant):
        x_ref    : (H, W, Cin)        input tile (compute_dtype)
        w1_ref   : (9, Cin, Cout)     conv1 3x3 weights, taps on axis 0
        w2_ref   : (9, Cout, Cout)    conv2 3x3 weights
        ws_ref   : (Cin, Cout)        1x1 shortcut weights      [proj only]
        aff_ref  : (6, Cout) f32      rows: s1,b1,s2,b2,ss,bs (folded BN)
        o_ref    : (Ho, Wo, Cout)     output tile
        xpad_ref : (H+2, W+2, Cin)    f32 VMEM scratch (padded input)
        o1pad_ref: (Ho+2, Wo+2, Cout) f32 VMEM scratch (padded conv1 output)
    """
    if has_proj:
        (x_ref, w1_ref, w2_ref, ws_ref, aff_ref,
         o_ref, xpad_ref, o1pad_ref) = refs
    else:
        (x_ref, w1_ref, w2_ref, aff_ref,
         o_ref, xpad_ref, o1pad_ref) = refs
        ws_ref = None

    cdt = compute_dtype
    f32 = jnp.float32

    def window(arr, dy, dx, ho, wo, s):
        # arr[dy + s*i, dx + s*j, :] for i < ho, j < wo.
        if s == 1:
            return arr[dy:dy + ho, dx:dx + wo, :]
        return arr[dy:dy + s * (ho - 1) + 1:s, dx:dx + s * (wo - 1) + 1:s, :]

    def conv3x3(src, w_ref_, ho, wo, cin, s):
        # 9 shifted taps accumulated into a single f32 accumulator (MXU).
        acc = jnp.zeros((ho * wo, w_ref_.shape[-1]), f32)
        for dy in range(3):
            for dx in range(3):
                tap = window(src, dy, dx, ho, wo, s).reshape(ho * wo, cin)
                acc = acc + jnp.dot(tap.astype(cdt), w_ref_[dy * 3 + dx],
                                    preferred_element_type=f32)
        return acc

    # ---- stage 0: padded input tile in VMEM (halo zeroed in-kernel) --------
    xpad_ref[...] = jnp.zeros_like(xpad_ref)
    xpad_ref[1:H + 1, 1:W + 1, :] = x_ref[...].astype(f32)

    # ---- stage 1: conv1 (stride) + bn1 + relu -> VMEM scratch ---------------
    s1 = aff_ref[0:1, :]
    b1 = aff_ref[1:2, :]
    acc1 = conv3x3(xpad_ref[...], w1_ref, Ho, Wo, Cin, stride)
    out1 = jnp.maximum(acc1 * s1 + b1, 0.0)            # f32 epilogue on VPU
    o1pad_ref[...] = jnp.zeros_like(o1pad_ref)
    o1pad_ref[1:Ho + 1, 1:Wo + 1, :] = out1.reshape(Ho, Wo, Cout)

    # ---- shortcut branch (stays on-chip, no HBM round-trip) -----------------
    if has_proj:
        ss = aff_ref[4:5, :]
        bs = aff_ref[5:6, :]
        xs = window(x_ref[...].astype(f32), 0, 0, Ho, Wo, stride)
        sc = jnp.dot(xs.reshape(Ho * Wo, Cin).astype(cdt), ws_ref[...],
                     preferred_element_type=f32)
        sc = sc * ss + bs
    else:
        sc = x_ref[...].astype(f32).reshape(Ho * Wo, Cout)

    # ---- stage 2: conv2 + bn2 + residual add + relu -> single store ---------
    s2 = aff_ref[2:3, :]
    b2 = aff_ref[3:4, :]
    acc2 = conv3x3(o1pad_ref[...], w2_ref, Ho, Wo, Cout, 1)
    out = jnp.maximum(acc2 * s2 + b2 + sc, 0.0)
    o_ref[...] = out.reshape(Ho, Wo, Cout).astype(o_ref.dtype)


# ----------------------------------------------------------------------------
# ResidualBlock forward (NCHW in / NCHW out), one fused pallas_call.
# ----------------------------------------------------------------------------
def _fold_bn(gamma, beta, mean, var, conv_bias):
    """Fold eval-mode BN + conv bias into (scale, offset)."""
    scale = gamma / jnp.sqrt(var + EPS)
    offset = beta + scale * (conv_bias - mean)
    return scale, offset


def residual_block_forward(x_nchw, params, stride=1,
                           compute_dtype=jnp.bfloat16):
    """Exact ResidualBlock.forward (eval-mode BN)."""
    x = jnp.transpose(x_nchw, (0, 2, 3, 1))            # NCHW -> NHWC
    N, H, W, Cin = x.shape
    Cout = params["w1"].shape[-1]
    Ho = (H - 1) // stride + 1
    Wo = (W - 1) // stride + 1
    has_proj = (stride != 1) or (Cin != Cout)

    s1, o1 = _fold_bn(params["g1"], params["be1"], params["m1"], params["v1"],
                      params["b1"])
    s2, o2 = _fold_bn(params["g2"], params["be2"], params["m2"], params["v2"],
                      params["b2"])
    rows = [s1, o1, s2, o2]
    if has_proj:
        ss, os_ = _fold_bn(params["gs"], params["bes"], params["ms"],
                           params["vs"], params["bs"])
        rows += [ss, os_]
    else:
        rows += [jnp.zeros_like(s1), jnp.zeros_like(s1)]   # unused
    affine = jnp.stack(rows, axis=0).astype(jnp.float32)   # (6, Cout)

    x_c = x.astype(compute_dtype)
    w1k = params["w1"].reshape(9, Cin, Cout).astype(compute_dtype)
    w2k = params["w2"].reshape(9, Cout, Cout).astype(compute_dtype)

    args = [x_c, w1k, w2k]
    in_specs = [
        pl.BlockSpec((None, H, W, Cin), lambda n: (n, 0, 0, 0)),
        pl.BlockSpec((9, Cin, Cout), lambda n: (0, 0, 0)),
        pl.BlockSpec((9, Cout, Cout), lambda n: (0, 0, 0)),
    ]
    if has_proj:
        args.append(params["ws"].astype(compute_dtype))
        in_specs.append(pl.BlockSpec((Cin, Cout), lambda n: (0, 0)))
    args.append(affine)
    in_specs.append(pl.BlockSpec((6, Cout), lambda n: (0, 0)))

    kernel = functools.partial(
        _residual_block_kernel, H=H, W=W, Ho=Ho, Wo=Wo, Cin=Cin, Cout=Cout,
        stride=stride, has_proj=has_proj, compute_dtype=compute_dtype)

    out = pl.pallas_call(
        kernel,
        out_shape=jax.ShapeDtypeStruct((N, Ho, Wo, Cout), x_nchw.dtype),
        grid=(N,),
        in_specs=in_specs,
        out_specs=pl.BlockSpec((None, Ho, Wo, Cout), lambda n: (n, 0, 0, 0)),
        scratch_shapes=[
            pltpu.VMEM((H + 2, W + 2, Cin), jnp.float32),
            pltpu.VMEM((Ho + 2, Wo + 2, Cout), jnp.float32),
        ],
        compiler_params=pltpu.CompilerParams(
            dimension_semantics=("parallel",)),
    )(*args)

    return jnp.transpose(out, (0, 3, 1, 2))              # NHWC -> NCHW


# ----------------------------------------------------------------------------
# Pure-JAX reference (for correctness check)
# ----------------------------------------------------------------------------
def reference_forward(x_nchw, params, stride=1):
    x = jnp.transpose(x_nchw, (0, 2, 3, 1))
    Cin = x.shape[-1]
    Cout = params["w1"].shape[-1]
    dn = ("NHWC", "HWIO", "NHWC")

    def bn(z, g, be, m, v, cb):
        s = g / jnp.sqrt(v + EPS)
        return s * (z + cb - m) + be

    y1 = lax.conv_general_dilated(x, params["w1"], (stride, stride),
                                  ((1, 1), (1, 1)), dimension_numbers=dn)
    y1 = jax.nn.relu(bn(y1, params["g1"], params["be1"], params["m1"],
                        params["v1"], params["b1"]))
    y2 = lax.conv_general_dilated(y1, params["w2"], (1, 1),
                                  ((1, 1), (1, 1)), dimension_numbers=dn)
    y2 = bn(y2, params["g2"], params["be2"], params["m2"], params["v2"],
            params["b2"])
    if stride != 1 or Cin != Cout:
        ws = params["ws"].reshape(1, 1, Cin, Cout)
        sc = lax.conv_general_dilated(x, ws, (stride, stride), "VALID",
                                      dimension_numbers=dn)
        sc = bn(sc, params["gs"], params["bes"], params["ms"], params["vs"],
                params["bs"])
    else:
        sc = x
    out = jax.nn.relu(y2 + sc)
    return jnp.transpose(out, (0, 3, 1, 2))


# ----------------------------------------------------------------------------
# main
# ----------------------------------------------------------------------------
def make_params(key, cin, cout):
    ks = jax.random.split(key, 16)
    f32 = jnp.float32
    return {
        # conv weights in HWIO layout
        "w1": 0.1 * jax.random.normal(ks[0], (3, 3, cin, cout), f32),
        "b1": 0.1 * jax.random.normal(ks[1], (cout,), f32),
        "w2": 0.1 * jax.random.normal(ks[2], (3, 3, cout, cout), f32),
        "b2": 0.1 * jax.random.normal(ks[3], (cout,), f32),
        "ws": 0.1 * jax.random.normal(ks[4], (cin, cout), f32),
        "bs": 0.1 * jax.random.normal(ks[5], (cout,), f32),
        # BN params (eval mode: gamma, beta, running mean, running var)
        "g1": 1.0 + 0.1 * jax.random.normal(ks[6], (cout,), f32),
        "be1": 0.1 * jax.random.normal(ks[7], (cout,), f32),
        "m1": 0.1 * jax.random.normal(ks[8], (cout,), f32),
        "v1": 1.0 + 0.1 * jnp.abs(jax.random.normal(ks[9], (cout,), f32)),
        "g2": 1.0 + 0.1 * jax.random.normal(ks[10], (cout,), f32),
        "be2": 0.1 * jax.random.normal(ks[11], (cout,), f32),
        "m2": 0.1 * jax.random.normal(ks[12], (cout,), f32),
        "v2": 1.0 + 0.1 * jnp.abs(jax.random.normal(ks[13], (cout,), f32)),
        "gs": 1.0 + 0.05 * jax.random.normal(ks[14], (cout,), f32),
        "bes": 0.05 * jax.random.normal(ks[15], (cout,), f32),
        "ms": jnp.zeros((cout,), f32),
        "vs": jnp.ones((cout,), f32),
    }


if __name__ == "__main__":
    base_key = jax.random.PRNGKey(0)

    def run_case(cin, cout, stride, compute_dtype, tol, tag):
        kx, kp = jax.random.split(jax.random.fold_in(base_key,
                                                     cin * 100 + cout))
        x = jax.random.normal(kx, (2, cin, 16, 16), jnp.float32)
        params = make_params(kp, cin, cout)
        out = jax.block_until_ready(
            residual_block_forward(x, params, stride=stride,
                                   compute_dtype=compute_dtype))
        ref = jax.block_until_ready(reference_forward(x, params,
                                                      stride=stride))
        assert out.shape == ref.shape, (tag, out.shape, ref.shape)
        err = float(jnp.max(jnp.abs(out - ref)))
        assert jnp.allclose(out, ref, atol=tol, rtol=tol), (tag, err)

    # Projection-shortcut path (in_ch != out_ch), exact f32 math.
    run_case(4, 8, 1, jnp.float32, 1e-4, "proj_f32")
    # Same path with bf16 MXU operands (v5e/v6e/v7x fast path), looser tol.
    run_case(4, 8, 1, jnp.bfloat16, 3e-2, "proj_bf16")
    # Identity-shortcut path (in_ch == out_ch, stride 1), exact f32 math.
    run_case(8, 8, 1, jnp.float32, 1e-4, "identity_f32")

    print("KERNEL_OK")
</pallas_src>

<mosaic_0001>
module attributes {stable_mosaic.version = 11 : i64} {
  func.func @_residual_block_kernel(%arg0: i32, %arg1: memref<1x16x16x4xf32, #tpu.memory_space<vmem>>, %arg2: memref<9x4x8xf32, #tpu.memory_space<vmem>>, %arg3: memref<9x8x8xf32, #tpu.memory_space<vmem>>, %arg4: memref<4x8xf32, #tpu.memory_space<vmem>>, %arg5: memref<6x8xf32, #tpu.memory_space<vmem>>, %arg6: memref<1x16x16x8xf32, #tpu.memory_space<vmem>>, %arg7: memref<18x18x4xf32, #tpu.memory_space<vmem>>, %arg8: memref<18x18x8xf32, #tpu.memory_space<vmem>>) attributes {dimension_semantics = [#tpu.dimension_semantics<parallel>], iteration_bounds = array<i64: 2>, scalar_prefetch = 0 : i64, scratch_operands = 2 : i64, tpu.core_type = #tpu.core_type<tc>, window_params = [{transform_indices = @transform_0, window_bounds = array<i64: 1, 16, 16, 4>}, {pipeline_mode = #tpu.pipeline_mode<synchronous>, transform_indices = @transform_1, window_bounds = array<i64: 9, 4, 8>}, {pipeline_mode = #tpu.pipeline_mode<synchronous>, transform_indices = @transform_2, window_bounds = array<i64: 9, 8, 8>}, {pipeline_mode = #tpu.pipeline_mode<synchronous>, transform_indices = @transform_3, window_bounds = array<i64: 4, 8>}, {pipeline_mode = #tpu.pipeline_mode<synchronous>, transform_indices = @transform_4, window_bounds = array<i64: 6, 8>}, {transform_indices = @transform_5, window_bounds = array<i64: 1, 16, 16, 8>}]} {
    %cst = arith.constant 0.000000e+00 : f32
    %0 = vector.broadcast %cst : f32 to vector<18x18x4xf32>
    %c0 = arith.constant 0 : index
    %c0_0 = arith.constant 0 : index
    %c0_1 = arith.constant 0 : index
    %1 = vector.load %arg7[%c0, %c0_0, %c0_1] : memref<18x18x4xf32, #tpu.memory_space<vmem>>, vector<18x18x4xf32>
    tpu.vector_store %arg7[%c0, %c0_0, %c0_1], %0 {strides = array<i32>} : memref<18x18x4xf32, #tpu.memory_space<vmem>>, vector<18x18x4xf32>,
    %c0_2 = arith.constant 0 : index
    %c0_3 = arith.constant 0 : index
    %c0_4 = arith.constant 0 : index
    %c0_5 = arith.constant 0 : index
    %2 = vector.load %arg1[%c0_2, %c0_3, %c0_4, %c0_5] : memref<1x16x16x4xf32, #tpu.memory_space<vmem>>, vector<1x16x16x4xf32>
    %3 = vector.shape_cast %2 : vector<1x16x16x4xf32> to vector<16x16x4xf32>
    %c1 = arith.constant 1 : index
    %c1_6 = arith.constant 1 : index
    %c0_7 = arith.constant 0 : index
    %4 = vector.load %arg7[%c1, %c1_6, %c0_7] : memref<18x18x4xf32, #tpu.memory_space<vmem>>, vector<16x16x4xf32>
    tpu.vector_store %arg7[%c1, %c1_6, %c0_7], %3 {strides = array<i32>} : memref<18x18x4xf32, #tpu.memory_space<vmem>>, vector<16x16x4xf32>,
    %c0_8 = arith.constant 0 : index
    %c0_9 = arith.constant 0 : index
    %5 = vector.load %arg5[%c0_8, %c0_9] : memref<6x8xf32, #tpu.memory_space<vmem>>, vector<1x8xf32>
    %c1_10 = arith.constant 1 : index
    %c0_11 = arith.constant 0 : index
    %6 = vector.load %arg5[%c1_10, %c0_11] : memref<6x8xf32, #tpu.memory_space<vmem>>, vector<1x8xf32>
    %c0_12 = arith.constant 0 : index
    %c0_13 = arith.constant 0 : index
    %c0_14 = arith.constant 0 : index
    %7 = vector.load %arg7[%c0_12, %c0_13, %c0_14] : memref<18x18x4xf32, #tpu.memory_space<vmem>>, vector<18x18x4xf32>
    %cst_15 = arith.constant 0.000000e+00 : f32
    %8 = vector.broadcast %cst_15 : f32 to vector<256x8xf32>
    %9 = vector.extract_strided_slice %7 {offsets = [0, 0, 0], sizes = [16, 16, 4], strides = [1, 1, 1]} : vector<18x18x4xf32> to vector<16x16x4xf32>
    %10 = vector.shape_cast %9 : vector<16x16x4xf32> to vector<256x4xf32>
    %c0_16 = arith.constant 0 : index
    %c0_17 = arith.constant 0 : index
    %c0_18 = arith.constant 0 : index
    %11 = vector.load %arg2[%c0_16, %c0_17, %c0_18] : memref<9x4x8xf32, #tpu.memory_space<vmem>>, vector<1x4x8xf32>
    %12 = vector.shape_cast %11 : vector<1x4x8xf32> to vector<4x8xf32>
    %cst_19 = arith.constant dense<0.000000e+00> : vector<256x8xf32>
    %13 = tpu.matmul %10, %12, %cst_19 {dimension_numbers = #tpu.dot_dimension_numbers<[1], [0], [0], [1], [0, 0, 1, 1], [], []>} : vector<256x4xf32>, vector<4x8xf32>, vector<256x8xf32> -> vector<256x8xf32>
    %14 = arith.addf %8, %13 : vector<256x8xf32>
    %15 = vector.extract_strided_slice %7 {offsets = [0, 1, 0], sizes = [16, 16, 4], strides = [1, 1, 1]} : vector<18x18x4xf32> to vector<16x16x4xf32>
    %16 = vector.shape_cast %15 : vector<16x16x4xf32> to vector<256x4xf32>
    %c1_20 = arith.constant 1 : index
    %c0_21 = arith.constant 0 : index
    %c0_22 = arith.constant 0 : index
    %17 = vector.load %arg2[%c1_20, %c0_21, %c0_22] : memref<9x4x8xf32, #tpu.memory_space<vmem>>, vector<1x4x8xf32>
    %18 = vector.shape_cast %17 : vector<1x4x8xf32> to vector<4x8xf32>
    %cst_23 = arith.constant dense<0.000000e+00> : vector<256x8xf32>
    %19 = tpu.matmul %16, %18, %cst_23 {dimension_numbers = #tpu.dot_dimension_numbers<[1], [0], [0], [1], [0, 0, 1, 1], [], []>} : vector<256x4xf32>, vector<4x8xf32>, vector<256x8xf32> -> vector<256x8xf32>
    %20 = arith.addf %14, %19 : vector<256x8xf32>
    %21 = vector.extract_strided_slice %7 {offsets = [0, 2, 0], sizes = [16, 16, 4], strides = [1, 1, 1]} : vector<18x18x4xf32> to vector<16x16x4xf32>
    %22 = vector.shape_cast %21 : vector<16x16x4xf32> to vector<256x4xf32>
    %c2 = arith.constant 2 : index
    %c0_24 = arith.constant 0 : index
    %c0_25 = arith.constant 0 : index
    %23 = vector.load %arg2[%c2, %c0_24, %c0_25] : memref<9x4x8xf32, #tpu.memory_space<vmem>>, vector<1x4x8xf32>
    %24 = vector.shape_cast %23 : vector<1x4x8xf32> to vector<4x8xf32>
    %cst_26 = arith.constant dense<0.000000e+00> : vector<256x8xf32>
    %25 = tpu.matmul %22, %24, %cst_26 {dimension_numbers = #tpu.dot_dimension_numbers<[1], [0], [0], [1], [0, 0, 1, 1], [], []>} : vector<256x4xf32>, vector<4x8xf32>, vector<256x8xf32> -> vector<256x8xf32>
    %26 = arith.addf %20, %25 : vector<256x8xf32>
    %27 = vector.extract_strided_slice %7 {offsets = [1, 0, 0], sizes = [16, 16, 4], strides = [1, 1, 1]} : vector<18x18x4xf32> to vector<16x16x4xf32>
    %28 = vector.shape_cast %27 : vector<16x16x4xf32> to vector<256x4xf32>
    %c3 = arith.constant 3 : index
    %c0_27 = arith.constant 0 : index
    %c0_28 = arith.constant 0 : index
    %29 = vector.load %arg2[%c3, %c0_27, %c0_28] : memref<9x4x8xf32, #tpu.memory_space<vmem>>, vector<1x4x8xf32>
    %30 = vector.shape_cast %29 : vector<1x4x8xf32> to vector<4x8xf32>
    %cst_29 = arith.constant dense<0.000000e+00> : vector<256x8xf32>
    %31 = tpu.matmul %28, %30, %cst_29 {dimension_numbers = #tpu.dot_dimension_numbers<[1], [0], [0], [1], [0, 0, 1, 1], [], []>} : vector<256x4xf32>, vector<4x8xf32>, vector<256x8xf32> -> vector<256x8xf32>
    %32 = arith.addf %26, %31 : vector<256x8xf32>
    %33 = vector.extract_strided_slice %7 {offsets = [1, 1, 0], sizes = [16, 16, 4], strides = [1, 1, 1]} : vector<18x18x4xf32> to vector<16x16x4xf32>
    %34 = vector.shape_cast %33 : vector<16x16x4xf32> to vector<256x4xf32>
    %c4 = arith.constant 4 : index
    %c0_30 = arith.constant 0 : index
    %c0_31 = arith.constant 0 : index
    %35 = vector.load %arg2[%c4, %c0_30, %c0_31] : memref<9x4x8xf32, #tpu.memory_space<vmem>>, vector<1x4x8xf32>
    %36 = vector.shape_cast %35 : vector<1x4x8xf32> to vector<4x8xf32>
    %cst_32 = arith.constant dense<0.000000e+00> : vector<256x8xf32>
    %37 = tpu.matmul %34, %36, %cst_32 {dimension_numbers = #tpu.dot_dimension_numbers<[1], [0], [0], [1], [0, 0, 1, 1], [], []>} : vector<256x4xf32>, vector<4x8xf32>, vector<256x8xf32> -> vector<256x8xf32>
    %38 = arith.addf %32, %37 : vector<256x8xf32>
    %39 = vector.extract_strided_slice %7 {offsets = [1, 2, 0], sizes = [16, 16, 4], strides = [1, 1, 1]} : vector<18x18x4xf32> to vector<16x16x4xf32>
    %40 = vector.shape_cast %39 : vector<16x16x4xf32> to vector<256x4xf32>
    %c5 = arith.constant 5 : index
    %c0_33 = arith.constant 0 : index
    %c0_34 = arith.constant 0 : index
    %41 = vector.load %arg2[%c5, %c0_33, %c0_34] : memref<9x4x8xf32, #tpu.memory_space<vmem>>, vector<1x4x8xf32>
    %42 = vector.shape_cast %41 : vector<1x4x8xf32> to vector<4x8xf32>
    %cst_35 = arith.constant dense<0.000000e+00> : vector<256x8xf32>
    %43 = tpu.matmul %40, %42, %cst_35 {dimension_numbers = #tpu.dot_dimension_numbers<[1], [0], [0], [1], [0, 0, 1, 1], [], []>} : vector<256x4xf32>, vector<4x8xf32>, vector<256x8xf32> -> vector<256x8xf32>
    %44 = arith.addf %38, %43 : vector<256x8xf32>
    %45 = vector.extract_strided_slice %7 {offsets = [2, 0, 0], sizes = [16, 16, 4], strides = [1, 1, 1]} : vector<18x18x4xf32> to vector<16x16x4xf32>
    %46 = vector.shape_cast %45 : vector<16x16x4xf32> to vector<256x4xf32>
    %c6 = arith.constant 6 : index
    %c0_36 = arith.constant 0 : index
    %c0_37 = arith.constant 0 : index
    %47 = vector.load %arg2[%c6, %c0_36, %c0_37] : memref<9x4x8xf32, #tpu.memory_space<vmem>>, vector<1x4x8xf32>
    %48 = vector.shape_cast %47 : vector<1x4x8xf32> to vector<4x8xf32>
    %cst_38 = arith.constant dense<0.000000e+00> : vector<256x8xf32>
    %49 = tpu.matmul %46, %48, %cst_38 {dimension_numbers = #tpu.dot_dimension_numbers<[1], [0], [0], [1], [0, 0, 1, 1], [], []>} : vector<256x4xf32>, vector<4x8xf32>, vector<256x8xf32> -> vector<256x8xf32>
    %50 = arith.addf %44, %49 : vector<256x8xf32>
    %51 = vector.extract_strided_slice %7 {offsets = [2, 1, 0], sizes = [16, 16, 4], strides = [1, 1, 1]} : vector<18x18x4xf32> to vector<16x16x4xf32>
    %52 = vector.shape_cast %51 : vector<16x16x4xf32> to vector<256x4xf32>
    %c7 = arith.constant 7 : index
    %c0_39 = arith.constant 0 : index
    %c0_40 = arith.constant 0 : index
    %53 = vector.load %arg2[%c7, %c0_39, %c0_40] : memref<9x4x8xf32, #tpu.memory_space<vmem>>, vector<1x4x8xf32>
    %54 = vector.shape_cast %53 : vector<1x4x8xf32> to vector<4x8xf32>
    %cst_41 = arith.constant dense<0.000000e+00> : vector<256x8xf32>
    %55 = tpu.matmul %52, %54, %cst_41 {dimension_numbers = #tpu.dot_dimension_numbers<[1], [0], [0], [1], [0, 0, 1, 1], [], []>} : vector<256x4xf32>, vector<4x8xf32>, vector<256x8xf32> -> vector<256x8xf32>
    %56 = arith.addf %50, %55 : vector<256x8xf32>
    %57 = vector.extract_strided_slice %7 {offsets = [2, 2, 0], sizes = [16, 16, 4], strides = [1, 1, 1]} : vector<18x18x4xf32> to vector<16x16x4xf32>
    %58 = vector.shape_cast %57 : vector<16x16x4xf32> to vector<256x4xf32>
    %c8 = arith.constant 8 : index
    %c0_42 = arith.constant 0 : index
    %c0_43 = arith.constant 0 : index
    %59 = vector.load %arg2[%c8, %c0_42, %c0_43] : memref<9x4x8xf32, #tpu.memory_space<vmem>>, vector<1x4x8xf32>
    %60 = vector.shape_cast %59 : vector<1x4x8xf32> to vector<4x8xf32>
    %cst_44 = arith.constant dense<0.000000e+00> : vector<256x8xf32>
    %61 = tpu.matmul %58, %60, %cst_44 {dimension_numbers = #tpu.dot_dimension_numbers<[1], [0], [0], [1], [0, 0, 1, 1], [], []>} : vector<256x4xf32>, vector<4x8xf32>, vector<256x8xf32> -> vector<256x8xf32>
    %62 = arith.addf %56, %61 : vector<256x8xf32>
    %63 = vector.broadcast %5 : vector<1x8xf32> to vector<256x8xf32>
    %64 = arith.mulf %62, %63 : vector<256x8xf32>
    %65 = vector.broadcast %6 : vector<1x8xf32> to vector<256x8xf32>
    %66 = arith.addf %64, %65 : vector<256x8xf32>
    %cst_45 = arith.constant 0.000000e+00 : f32
    %67 = vector.broadcast %cst_45 : f32 to vector<256x8xf32>
    %68 = arith.maximumf %66, %67 : vector<256x8xf32>
    %cst_46 = arith.constant 0.000000e+00 : f32
    %69 = vector.broadcast %cst_46 : f32 to vector<18x18x8xf32>
    %c0_47 = arith.constant 0 : index
    %c0_48 = arith.constant 0 : index
    %c0_49 = arith.constant 0 : index
    %70 = vector.load %arg8[%c0_47, %c0_48, %c0_49] : memref<18x18x8xf32, #tpu.memory_space<vmem>>, vector<18x18x8xf32>
    tpu.vector_store %arg8[%c0_47, %c0_48, %c0_49], %69 {strides = array<i32>} : memref<18x18x8xf32, #tpu.memory_space<vmem>>, vector<18x18x8xf32>,
    %71 = vector.shape_cast %68 : vector<256x8xf32> to vector<16x16x8xf32>
    %c1_50 = arith.constant 1 : index
    %c1_51 = arith.constant 1 : index
    %c0_52 = arith.constant 0 : index
    %72 = vector.load %arg8[%c1_50, %c1_51, %c0_52] : memref<18x18x8xf32, #tpu.memory_space<vmem>>, vector<16x16x8xf32>
    tpu.vector_store %arg8[%c1_50, %c1_51, %c0_52], %71 {strides = array<i32>} : memref<18x18x8xf32, #tpu.memory_space<vmem>>, vector<16x16x8xf32>,
    %c4_53 = arith.constant 4 : index
    %c0_54 = arith.constant 0 : index
    %73 = vector.load %arg5[%c4_53, %c0_54] : memref<6x8xf32, #tpu.memory_space<vmem>>, vector<1x8xf32>
    %c5_55 = arith.constant 5 : index
    %c0_56 = arith.constant 0 : index
    %74 = vector.load %arg5[%c5_55, %c0_56] : memref<6x8xf32, #tpu.memory_space<vmem>>, vector<1x8xf32>
    %c0_57 = arith.constant 0 : index
    %c0_58 = arith.constant 0 : index
    %c0_59 = arith.constant 0 : index
    %c0_60 = arith.constant 0 : index
    %75 = vector.load %arg1[%c0_57, %c0_58, %c0_59, %c0_60] : memref<1x16x16x4xf32, #tpu.memory_space<vmem>>, vector<1x16x16x4xf32>
    %76 = vector.shape_cast %75 : vector<1x16x16x4xf32> to vector<16x16x4xf32>
    %77 = vector.shape_cast %76 : vector<16x16x4xf32> to vector<256x4xf32>
    %c0_61 = arith.constant 0 : index
    %c0_62 = arith.constant 0 : index
    %78 = vector.load %arg4[%c0_61, %c0_62] : memref<4x8xf32, #tpu.memory_space<vmem>>, vector<4x8xf32>
    %cst_63 = arith.constant dense<0.000000e+00> : vector<256x8xf32>
    %79 = tpu.matmul %77, %78, %cst_63 {dimension_numbers = #tpu.dot_dimension_numbers<[1], [0], [0], [1], [0, 0, 1, 1], [], []>} : vector<256x4xf32>, vector<4x8xf32>, vector<256x8xf32> -> vector<256x8xf32>
    %80 = vector.broadcast %73 : vector<1x8xf32> to vector<256x8xf32>
    %81 = arith.mulf %79, %80 : vector<256x8xf32>
    %82 = vector.broadcast %74 : vector<1x8xf32> to vector<256x8xf32>
    %83 = arith.addf %81, %82 : vector<256x8xf32>
    %c2_64 = arith.constant 2 : index
    %c0_65 = arith.constant 0 : index
    %84 = vector.load %arg5[%c2_64, %c0_65] : memref<6x8xf32, #tpu.memory_space<vmem>>, vector<1x8xf32>
    %c3_66 = arith.constant 3 : index
    %c0_67 = arith.constant 0 : index
    %85 = vector.load %arg5[%c3_66, %c0_67] : memref<6x8xf32, #tpu.memory_space<vmem>>, vector<1x8xf32>
    %c0_68 = arith.constant 0 : index
    %c0_69 = arith.constant 0 : index
    %c0_70 = arith.constant 0 : index
    %86 = vector.load %arg8[%c0_68, %c0_69, %c0_70] : memref<18x18x8xf32, #tpu.memory_space<vmem>>, vector<18x18x8xf32>
    %cst_71 = arith.constant 0.000000e+00 : f32
    %87 = vector.broadcast %cst_71 : f32 to vector<256x8xf32>
    %88 = vector.extract_strided_slice %86 {offsets = [0, 0, 0], sizes = [16, 16, 8], strides = [1, 1, 1]} : vector<18x18x8xf32> to vector<16x16x8xf32>
    %89 = vector.shape_cast %88 : vector<16x16x8xf32> to vector<256x8xf32>
    %c0_72 = arith.constant 0 : index
    %c0_73 = arith.constant 0 : index
    %c0_74 = arith.constant 0 : index
    %90 = vector.load %arg3[%c0_72, %c0_73, %c0_74] : memref<9x8x8xf32, #tpu.memory_space<vmem>>, vector<1x8x8xf32>
    %91 = vector.shape_cast %90 : vector<1x8x8xf32> to vector<8x8xf32>
    %cst_75 = arith.constant dense<0.000000e+00> : vector<256x8xf32>
    %92 = tpu.matmul %89, %91, %cst_75 {dimension_numbers = #tpu.dot_dimension_numbers<[1], [0], [0], [1], [0, 0, 1, 1], [], []>} : vector<256x8xf32>, vector<8x8xf32>, vector<256x8xf32> -> vector<256x8xf32>
    %93 = arith.addf %87, %92 : vector<256x8xf32>
    %94 = vector.extract_strided_slice %86 {offsets = [0, 1, 0], sizes = [16, 16, 8], strides = [1, 1, 1]} : vector<18x18x8xf32> to vector<16x16x8xf32>
    %95 = vector.shape_cast %94 : vector<16x16x8xf32> to vector<256x8xf32>
    %c1_76 = arith.constant 1 : index
    %c0_77 = arith.constant 0 : index
    %c0_78 = arith.constant 0 : index
    %96 = vector.load %arg3[%c1_76, %c0_77, %c0_78] : memref<9x8x8xf32, #tpu.memory_space<vmem>>, vector<1x8x8xf32>
    %97 = vector.shape_cast %96 : vector<1x8x8xf32> to vector<8x8xf32>
    %cst_79 = arith.constant dense<0.000000e+00> : vector<256x8xf32>
    %98 = tpu.matmul %95, %97, %cst_79 {dimension_numbers = #tpu.dot_dimension_numbers<[1], [0], [0], [1], [0, 0, 1, 1], [], []>} : vector<256x8xf32>, vector<8x8xf32>, vector<256x8xf32> -> vector<256x8xf32>
    %99 = arith.addf %93, %98 : vector<256x8xf32>
    %100 = vector.extract_strided_slice %86 {offsets = [0, 2, 0], sizes = [16, 16, 8], strides = [1, 1, 1]} : vector<18x18x8xf32> to vector<16x16x8xf32>
    %101 = vector.shape_cast %100 : vector<16x16x8xf32> to vector<256x8xf32>
    %c2_80 = arith.constant 2 : index
    %c0_81 = arith.constant 0 : index
    %c0_82 = arith.constant 0 : index
    %102 = vector.load %arg3[%c2_80, %c0_81, %c0_82] : memref<9x8x8xf32, #tpu.memory_space<vmem>>, vector<1x8x8xf32>
    %103 = vector.shape_cast %102 : vector<1x8x8xf32> to vector<8x8xf32>
    %cst_83 = arith.constant dense<0.000000e+00> : vector<256x8xf32>
    %104 = tpu.matmul %101, %103, %cst_83 {dimension_numbers = #tpu.dot_dimension_numbers<[1], [0], [0], [1], [0, 0, 1, 1], [], []>} : vector<256x8xf32>, vector<8x8xf32>, vector<256x8xf32> -> vector<256x8xf32>
    %105 = arith.addf %99, %104 : vector<256x8xf32>
    %106 = vector.extract_strided_slice %86 {offsets = [1, 0, 0], sizes = [16, 16, 8], strides = [1, 1, 1]} : vector<18x18x8xf32> to vector<16x16x8xf32>
    %107 = vector.shape_cast %106 : vector<16x16x8xf32> to vector<256x8xf32>
    %c3_84 = arith.constant 3 : index
    %c0_85 = arith.constant 0 : index
    %c0_86 = arith.constant 0 : index
    %108 = vector.load %arg3[%c3_84, %c0_85, %c0_86] : memref<9x8x8xf32, #tpu.memory_space<vmem>>, vector<1x8x8xf32>
    %109 = vector.shape_cast %108 : vector<1x8x8xf32> to vector<8x8xf32>
    %cst_87 = arith.constant dense<0.000000e+00> : vector<256x8xf32>
    %110 = tpu.matmul %107, %109, %cst_87 {dimension_numbers = #tpu.dot_dimension_numbers<[1], [0], [0], [1], [0, 0, 1, 1], [], []>} : vector<256x8xf32>, vector<8x8xf32>, vector<256x8xf32> -> vector<256x8xf32>
    %111 = arith.addf %105, %110 : vector<256x8xf32>
    %112 = vector.extract_strided_slice %86 {offsets = [1, 1, 0], sizes = [16, 16, 8], strides = [1, 1, 1]} : vector<18x18x8xf32> to vector<16x16x8xf32>
    %113 = vector.shape_cast %112 : vector<16x16x8xf32> to vector<256x8xf32>
    %c4_88 = arith.constant 4 : index
    %c0_89 = arith.constant 0 : index
    %c0_90 = arith.constant 0 : index
    %114 = vector.load %arg3[%c4_88, %c0_89, %c0_90] : memref<9x8x8xf32, #tpu.memory_space<vmem>>, vector<1x8x8xf32>
    %115 = vector.shape_cast %114 : vector<1x8x8xf32> to vector<8x8xf32>
    %cst_91 = arith.constant dense<0.000000e+00> : vector<256x8xf32>
    %116 = tpu.matmul %113, %115, %cst_91 {dimension_numbers = #tpu.dot_dimension_numbers<[1], [0], [0], [1], [0, 0, 1, 1], [], []>} : vector<256x8xf32>, vector<8x8xf32>, vector<256x8xf32> -> vector<256x8xf32>
    %117 = arith.addf %111, %116 : vector<256x8xf32>
    %118 = vector.extract_strided_slice %86 {offsets = [1, 2, 0], sizes = [16, 16, 8], strides = [1, 1, 1]} : vector<18x18x8xf32> to vector<16x16x8xf32>
    %119 = vector.shape_cast %118 : vector<16x16x8xf32> to vector<256x8xf32>
    %c5_92 = arith.constant 5 : index
    %c0_93 = arith.constant 0 : index
    %c0_94 = arith.constant 0 : index
    %120 = vector.load %arg3[%c5_92, %c0_93, %c0_94] : memref<9x8x8xf32, #tpu.memory_space<vmem>>, vector<1x8x8xf32>
    %121 = vector.shape_cast %120 : vector<1x8x8xf32> to vector<8x8xf32>
    %cst_95 = arith.constant dense<0.000000e+00> : vector<256x8xf32>
    %122 = tpu.matmul %119, %121, %cst_95 {dimension_numbers = #tpu.dot_dimension_numbers<[1], [0], [0], [1], [0, 0, 1, 1], [], []>} : vector<256x8xf32>, vector<8x8xf32>, vector<256x8xf32> -> vector<256x8xf32>
    %123 = arith.addf %117, %122 : vector<256x8xf32>
    %124 = vector.extract_strided_slice %86 {offsets = [2, 0, 0], sizes = [16, 16, 8], strides = [1, 1, 1]} : vector<18x18x8xf32> to vector<16x16x8xf32>
    %125 = vector.shape_cast %124 : vector<16x16x8xf32> to vector<256x8xf32>
    %c6_96 = arith.constant 6 : index
    %c0_97 = arith.constant 0 : index
    %c0_98 = arith.constant 0 : index
    %126 = vector.load %arg3[%c6_96, %c0_97, %c0_98] : memref<9x8x8xf32, #tpu.memory_space<vmem>>, vector<1x8x8xf32>
    %127 = vector.shape_cast %126 : vector<1x8x8xf32> to vector<8x8xf32>
    %cst_99 = arith.constant dense<0.000000e+00> : vector<256x8xf32>
    %128 = tpu.matmul %125, %127, %cst_99 {dimension_numbers = #tpu.dot_dimension_numbers<[1], [0], [0], [1], [0, 0, 1, 1], [], []>} : vector<256x8xf32>, vector<8x8xf32>, vector<256x8xf32> -> vector<256x8xf32>
    %129 = arith.addf %123, %128 : vector<256x8xf32>
    %130 = vector.extract_strided_slice %86 {offsets = [2, 1, 0], sizes = [16, 16, 8], strides = [1, 1, 1]} : vector<18x18x8xf32> to vector<16x16x8xf32>
    %131 = vector.shape_cast %130 : vector<16x16x8xf32> to vector<256x8xf32>
    %c7_100 = arith.constant 7 : index
    %c0_101 = arith.constant 0 : index
    %c0_102 = arith.constant 0 : index
    %132 = vector.load %arg3[%c7_100, %c0_101, %c0_102] : memref<9x8x8xf32, #tpu.memory_space<vmem>>, vector<1x8x8xf32>
    %133 = vector.shape_cast %132 : vector<1x8x8xf32> to vector<8x8xf32>
    %cst_103 = arith.constant dense<0.000000e+00> : vector<256x8xf32>
    %134 = tpu.matmul %131, %133, %cst_103 {dimension_numbers = #tpu.dot_dimension_numbers<[1], [0], [0], [1], [0, 0, 1, 1], [], []>} : vector<256x8xf32>, vector<8x8xf32>, vector<256x8xf32> -> vector<256x8xf32>
    %135 = arith.addf %129, %134 : vector<256x8xf32>
    %136 = vector.extract_strided_slice %86 {offsets = [2, 2, 0], sizes = [16, 16, 8], strides = [1, 1, 1]} : vector<18x18x8xf32> to vector<16x16x8xf32>
    %137 = vector.shape_cast %136 : vector<16x16x8xf32> to vector<256x8xf32>
    %c8_104 = arith.constant 8 : index
    %c0_105 = arith.constant 0 : index
    %c0_106 = arith.constant 0 : index
    %138 = vector.load %arg3[%c8_104, %c0_105, %c0_106] : memref<9x8x8xf32, #tpu.memory_space<vmem>>, vector<1x8x8xf32>
    %139 = vector.shape_cast %138 : vector<1x8x8xf32> to vector<8x8xf32>
    %cst_107 = arith.constant dense<0.000000e+00> : vector<256x8xf32>
    %140 = tpu.matmul %137, %139, %cst_107 {dimension_numbers = #tpu.dot_dimension_numbers<[1], [0], [0], [1], [0, 0, 1, 1], [], []>} : vector<256x8xf32>, vector<8x8xf32>, vector<256x8xf32> -> vector<256x8xf32>
    %141 = arith.addf %135, %140 : vector<256x8xf32>
    %142 = vector.broadcast %84 : vector<1x8xf32> to vector<256x8xf32>
    %143 = arith.mulf %141, %142 : vector<256x8xf32>
    %144 = vector.broadcast %85 : vector<1x8xf32> to vector<256x8xf32>
    %145 = arith.addf %143, %144 : vector<256x8xf32>
    %146 = arith.addf %145, %83 : vector<256x8xf32>
    %cst_108 = arith.constant 0.000000e+00 : f32
    %147 = vector.broadcast %cst_108 : f32 to vector<256x8xf32>
    %148 = arith.maximumf %146, %147 : vector<256x8xf32>
    %149 = vector.shape_cast %148 : vector<256x8xf32> to vector<16x16x8xf32>
    %c0_109 = arith.constant 0 : index
    %c0_110 = arith.constant 0 : index
    %c0_111 = arith.constant 0 : index
    %c0_112 = arith.constant 0 : index
    %150 = vector.load %arg6[%c0_109, %c0_110, %c0_111, %c0_112] : memref<1x16x16x8xf32, #tpu.memory_space<vmem>>, vector<1x16x16x8xf32>
    %151 = vector.shape_cast %150 : vector<1x16x16x8xf32> to vector<16x16x8xf32>
    %152 = vector.shape_cast %149 : vector<16x16x8xf32> to vector<1x16x16x8xf32>
    tpu.vector_store %arg6[%c0_109, %c0_110, %c0_111, %c0_112], %152 {strides = array<i32>} : memref<1x16x16x8xf32, #tpu.memory_space<vmem>>, vector<1x16x16x8xf32>,
    return
  }
  func.func @transform_0(%arg0: i32) -> (i32, i32, i32, i32) {
    %c0_i32 = arith.constant 0 : i32
    %c0_i32_0 = arith.constant 0 : i32
    %c0_i32_1 = arith.constant 0 : i32
    %c0_i32_2 = arith.constant 0 : i32
    return %arg0, %c0_i32, %c0_i32_0, %c0_i32_1 : i32, i32, i32, i32
  }
  func.func @transform_1(%arg0: i32) -> (i32, i32, i32) {
    %c0_i32 = arith.constant 0 : i32
    %c0_i32_0 = arith.constant 0 : i32
    %c0_i32_1 = arith.constant 0 : i32
    %c0_i32_2 = arith.constant 0 : i32
    return %c0_i32, %c0_i32_0, %c0_i32_1 : i32, i32, i32
  }
  func.func @transform_2(%arg0: i32) -> (i32, i32, i32) {
    %c0_i32 = arith.constant 0 : i32
    %c0_i32_0 = arith.constant 0 : i32
    %c0_i32_1 = arith.constant 0 : i32
    %c0_i32_2 = arith.constant 0 : i32
    return %c0_i32, %c0_i32_0, %c0_i32_1 : i32, i32, i32
  }
  func.func @transform_3(%arg0: i32) -> (i32, i32) {
    %c0_i32 = arith.constant 0 : i32
    %c0_i32_0 = arith.constant 0 : i32
    %c0_i32_1 = arith.constant 0 : i32
    return %c0_i32, %c0_i32_0 : i32, i32
  }
  func.func @transform_4(%arg0: i32) -> (i32, i32) {
    %c0_i32 = arith.constant 0 : i32
    %c0_i32_0 = arith.constant 0 : i32
    %c0_i32_1 = arith.constant 0 : i32
    return %c0_i32, %c0_i32_0 : i32, i32
  }
  func.func @transform_5(%arg0: i32) -> (i32, i32, i32, i32) {
    %c0_i32 = arith.constant 0 : i32
    %c0_i32_0 = arith.constant 0 : i32
    %c0_i32_1 = arith.constant 0 : i32
    %c0_i32_2 = arith.constant 0 : i32
    return %arg0, %c0_i32, %c0_i32_0, %c0_i32_1 : i32, i32, i32, i32
  }
}

</mosaic_0001>

<bundles_post_ra>
// kernel: tpu_custom_call.1
= control target key start
LH: loop header
LB: loop body
LE: loop exit
PB: predicated region body
PF: predicated region fallthrough
CT: control target
= control target key end

     0   :  { %s9063_s18 = smov 0   ;;  %s13227_s0 = inlined_call_operand.vmem [shape: f32[2,16,16,4], index: 0, kind: input, shape index: {}]   ;;  %s13228_s1 = inlined_call_operand.vmem [shape: f32[9,4,8], index: 1, kind: input, shape index: {}]   ;;  %s13229_s2 = inlined_call_operand.vmem [shape: f32[9,8,8], index: 2, kind: input, shape index: {}]   ;;  %s13230_s3 = inlined_call_operand.vmem [shape: f32[4,8], index: 3, kind: input, shape index: {}]   ;;  %s13231_s4 = inlined_call_operand.vmem [shape: f32[6,8], index: 4, kind: input, shape index: {}]   ;;  %s13232_s5 = inlined_call_operand.vmem [shape: f32[2,16,16,8], index: 5, kind: output, shape index: {}]  }
   0x1 LB: > { %s6767_s19 = sadd.s32 4294967295, %s9030_s18   ;;  %p6771_p0 = scmp.ge.s32.totalorder %s9030_s18, 1  ;;  %s9030_s18 = sphi %s9063_s18, %s15_s18  }
   0x2   : > { %p187_p1 = scmp.lt.s32.totalorder %s9030_s18, 3 }
   0x4   : > { %p188_p2 = pnand %p6771_p0, %p187_p1 }
   0x6   : > { %191 = sbr.rel (%p188_p2) target bundleno = 1015 (0x3f7), region = 40 }
   0xb   : > { %v6776_v0 = vld [vmem:[%s13228_s1 + $0x4] sm:$0xf]  ;;  %vm598_vm0 = vcmask 1043456   ;;  %vm225_vm1 = vcmask 31744   ;;  %v13233_v1 = vmov 0.0   ;;  %p9150_p3 = scmp.lt.s32.totalorder %s6767_s19, 1 }
   0xc   : > { %8997 = vmatprep.subr.msk.mxu1 %vm598_vm0, %v6776_v0  ;;  %8047 = vmatprep.subr.msk.mxu0 %vm598_vm0, %v6776_v0  ;;  %226 = vst.msk [vmem:[#allocation2] sm:$0xff] %vm225_vm1, %v13233_v1  ;;  %227 = vst.msk [vmem:[#allocation2 + $0x8] sm:$0xff] %vm225_vm1, %v13233_v1  ;;  %vm228_vm2 = vcmask 25600   ;;  %v9157_v2 = vld [vmem:[%s13228_s1] sm:$0xf]  ;;  %vm451_vm3 = vcmask 1046528  }
   0xd   : > { %230 = vst.msk [vmem:[#allocation2 + $0x18] sm:$0xff] %vm225_vm1, %v13233_v1  ;;  %231 = vst.msk [vmem:[#allocation2 + $0x20] sm:$0xff] %vm225_vm1, %v13233_v1  ;;  %v9162_v3 = vld [vmem:[%s13228_s1 + $0x8] sm:$0xf]  ;;  %8998 = vmatpush3.msk.msra.mxu1 %vm598_vm0, %v6776_v0  ;;  %8048 = vmatpush3.msk.msra.mxu0 %vm598_vm0, %v6776_v0  ;;  %s13949_s19 = smov (!%p9150_p3, %s6767_s19), 1  ;;  %vm1119_vm4 = vcmask 1045504  }
   0xe   : > { %233 = vst.msk [vmem:[#allocation2 + $0x30] sm:$0xff] %vm225_vm1, %v13233_v1  ;;  %234 = vst.msk [vmem:[#allocation2 + $0x38] sm:$0xff] %vm225_vm1, %v13233_v1  ;;  %8097 = vmatprep.subr.msk.mxu1 %vm598_vm0, %v9157_v2  ;;  %8147 = vmatprep.subr.msk.mxu0 %vm598_vm0, %v9162_v3  ;;  %s7418_s27 = sshll.u32 %s13949_s19, 8  ;;  %v9247_v19 = vld [vmem:[%s13228_s1 + $0x10] sm:$0xf]  ;;  %vm3252_vm5 = vcmask 64512  }
   0xf   : > { %236 = vst.msk [vmem:[#allocation2 + $0x48] sm:$0xff] %vm225_vm1, %v13233_v1  ;;  %237 = vst.msk [vmem:[#allocation2 + $0x50] sm:$0xff] %vm225_vm1, %v13233_v1  ;;  %s9218_s30 = scalar_lea.vmem %s13227_s0, %s7418_s27  ;;  %v9310_v48 = vld [vmem:[%s13228_s1 + $0xc] sm:$0xf]  ;;  %vm3255_vm6 = vcmask 58368   ;;  %s12953_s10 = scalar_lea.vmem %s13232_s5, %s7418_s27 }
  0x10   : > { %239 = vst.msk [vmem:[#allocation2 + $0x60] sm:$0xff] %vm225_vm1, %v13233_v1  ;;  %240 = vst.msk [vmem:[#allocation2 + $0x68] sm:$0xff] %vm225_vm1, %v13233_v1  ;;  %v295_v4 = vld [vmem:[%s9218_s30 + $0x70] sm:$0xff]  ;;  %v296_v5 = vld [vmem:[%s9218_s30 + $0x78] sm:$0xff] }
  0x11   : > { %242 = vst.msk [vmem:[#allocation2 + $0x78] sm:$0xff] %vm225_vm1, %v13233_v1  ;;  %243 = vst.msk [vmem:[#allocation2 + $0x80] sm:$0xff] %vm225_vm1, %v13233_v1  ;;  %v281_v6 = vld [vmem:[%s9218_s30] sm:$0xff]  ;;  %v282_v9 = vld [vmem:[%s9218_s30 + $0x8] sm:$0xff] }
  0x12   : > { %245 = vst.msk [vmem:[#allocation2 + $0x90] sm:$0xff] %vm225_vm1, %v13233_v1  ;;  %246 = vst.msk [vmem:[#allocation2 + $0x98] sm:$0xff] %vm225_vm1, %v13233_v1  ;;  %v297_v13 = vld [vmem:[%s9218_s30 + $0x80] sm:$0xff]  ;;  %v298_v14 = vld [vmem:[%s9218_s30 + $0x88] sm:$0xff] }
  0x13   : > { %248 = vst.msk [vmem:[#allocation2 + $0xa8] sm:$0xff] %vm225_vm1, %v13233_v1  ;;  %249 = vst.msk [vmem:[#allocation2 + $0xb0] sm:$0xff] %vm225_vm1, %v13233_v1  ;;  %v9223_v7 = vld [vmem:[#allocation2] sm:$0xff]  ;;  %v9225_v8 = vld [vmem:[#allocation2 + $0x8] sm:$0xff] }
  0x14   : > { %251 = vst.msk [vmem:[#allocation2 + $0xc0] sm:$0xff] %vm225_vm1, %v13233_v1  ;;  %252 = vst.msk [vmem:[#allocation2 + $0xc8] sm:$0xff] %vm225_vm1, %v13233_v1  ;;  %v452_v10 = vrot.slane %v9223_v7, 1  ;;  %v453_v11 = vrot.slane %v9225_v8, 1  ;;  %v283_v16 = vld [vmem:[%s9218_s30 + $0x10] sm:$0xff]  ;;  %v284_v17 = vld [vmem:[%s9218_s30 + $0x18] sm:$0xff] }
  0x15   : > { %254 = vst.msk [vmem:[#allocation2 + $0xd8] sm:$0xff] %vm225_vm1, %v13233_v1  ;;  %255 = vst.msk [vmem:[#allocation2 + $0xe0] sm:$0xff] %vm225_vm1, %v13233_v1  ;;  %v299_v18 = vld [vmem:[%s9218_s30 + $0x90] sm:$0xff]  ;;  %v300_v21 = vld [vmem:[%s9218_s30 + $0x98] sm:$0xff] }
  0x16   : > { %257 = vst.msk [vmem:[#allocation2 + $0xf0] sm:$0xff] %vm225_vm1, %v13233_v1  ;;  %258 = vst.msk [vmem:[#allocation2 + $0xf8] sm:$0xff] %vm225_vm1, %v13233_v1  ;;  %v454_v20 = vsel %vm451_vm3, %v452_v10, %v453_v11  ;;  %v285_v22 = vld [vmem:[%s9218_s30 + $0x20] sm:$0xff]  ;;  %v286_v23 = vld [vmem:[%s9218_s30 + $0x28] sm:$0xff] }
  0x17   : > { %260 = vst.msk [vmem:[#allocation2 + $0x108] sm:$0xff] %vm225_vm1, %v13233_v1  ;;  %261 = vst.msk [vmem:[#allocation2 + $0x110] sm:$0xff] %vm225_vm1, %v13233_v1  ;;  %8049 = vmatprep.mubr.msk.f32.mxu0 %vm225_vm1, %v454_v20  ;;  %v301_v25 = vld [vmem:[%s9218_s30 + $0xa0] sm:$0xff]  ;;  %v302_v26 = vld [vmem:[%s9218_s30 + $0xa8] sm:$0xff] }
  0x18   : > { %263 = vst.msk [vmem:[#allocation2 + $0x120] sm:$0xff] %vm225_vm1, %v13233_v1  ;;  %264 = vst.msk [vmem:[#allocation2 + $0x128] sm:$0xff] %vm225_vm1, %v13233_v1  ;;  %v287_v27 = vld [vmem:[%s9218_s30 + $0x30] sm:$0xff]  ;;  %v288_v28 = vld [vmem:[%s9218_s30 + $0x38] sm:$0xff] }
  0x19   : > { %266 = vst.msk [vmem:[#allocation2 + $0x138] sm:$0xff] %vm225_vm1, %v13233_v1  ;;  %267 = vst.msk [vmem:[#allocation2 + $0x140] sm:$0xff] %vm225_vm1, %v13233_v1  ;;  %v303_v29 = vld [vmem:[%s9218_s30 + $0xb0] sm:$0xff]  ;;  %v304_v30 = vld [vmem:[%s9218_s30 + $0xb8] sm:$0xff] }
  0x1a   : > { %269 = vst.msk [vmem:[#allocation2 + $0x150] sm:$0xff] %vm225_vm1, %v13233_v1  ;;  %270 = vst.msk [vmem:[#allocation2 + $0x158] sm:$0xff] %vm225_vm1, %v13233_v1  ;;  %v289_v31 = vld [vmem:[%s9218_s30 + $0x40] sm:$0xff]  ;;  %v290_v32 = vld [vmem:[%s9218_s30 + $0x48] sm:$0xff] }
  0x1b   : > { %272 = vst.msk [vmem:[#allocation2 + $0x168] sm:$0xff] %vm225_vm1, %v13233_v1  ;;  %273 = vst.msk [vmem:[#allocation2 + $0x170] sm:$0xff] %vm225_vm1, %v13233_v1  ;;  %v305_v33 = vld [vmem:[%s9218_s30 + $0xc0] sm:$0xff]  ;;  %v306_v42 = vld [vmem:[%s9218_s30 + $0xc8] sm:$0xff] }
  0x1c   : > { %275 = vst.msk [vmem:[#allocation2 + $0x180] sm:$0xff] %vm225_vm1, %v13233_v1  ;;  %276 = vst.msk [vmem:[#allocation2 + $0x188] sm:$0xff] %vm225_vm1, %v13233_v1 }
  0x1d   : > { %278 = vst.msk [vmem:[#allocation2 + $0x198] sm:$0xff] %vm225_vm1, %v13233_v1  ;;  %279 = vst.msk [vmem:[#allocation2 + $0x1a0] sm:$0xff] %vm225_vm1, %v13233_v1 }
  0x1e   : > { %253 = vst.msk [vmem:[#allocation2 + $0xd0] sm:$0x3] %vm228_vm2, %v13233_v1  ;;  %229 = vst.msk [vmem:[#allocation2 + $0x10] sm:$0x3] %vm228_vm2, %v13233_v1 }
  0x1f   : > { %232 = vst.msk [vmem:[#allocation2 + $0x28] sm:$0x3] %vm228_vm2, %v13233_v1  ;;  %235 = vst.msk [vmem:[#allocation2 + $0x40] sm:$0x3] %vm228_vm2, %v13233_v1 }
  0x20   : > { %238 = vst.msk [vmem:[#allocation2 + $0x58] sm:$0x3] %vm228_vm2, %v13233_v1  ;;  %241 = vst.msk [vmem:[#allocation2 + $0x70] sm:$0x3] %vm228_vm2, %v13233_v1 }
  0x21   : > { %244 = vst.msk [vmem:[#allocation2 + $0x88] sm:$0x3] %vm228_vm2, %v13233_v1  ;;  %247 = vst.msk [vmem:[#allocation2 + $0xa0] sm:$0x3] %vm228_vm2, %v13233_v1 }
  0x22   : > { %250 = vst.msk [vmem:[#allocation2 + $0xb8] sm:$0x3] %vm228_vm2, %v13233_v1  ;;  %256 = vst.msk [vmem:[#allocation2 + $0xe8] sm:$0x3] %vm228_vm2, %v13233_v1 }
  0x23   : > { %259 = vst.msk [vmem:[#allocation2 + $0x100] sm:$0x3] %vm228_vm2, %v13233_v1  ;;  %262 = vst.msk [vmem:[#allocation2 + $0x118] sm:$0x3] %vm228_vm2, %v13233_v1 }
  0x24   : > { %265 = vst.msk [vmem:[#allocation2 + $0x130] sm:$0x3] %vm228_vm2, %v13233_v1  ;;  %268 = vst.msk [vmem:[#allocation2 + $0x148] sm:$0x3] %vm228_vm2, %v13233_v1 }
  0x25   : > { %271 = vst.msk [vmem:[#allocation2 + $0x160] sm:$0x3] %vm228_vm2, %v13233_v1  ;;  %274 = vst.msk [vmem:[#allocation2 + $0x178] sm:$0x3] %vm228_vm2, %v13233_v1  ;;  %v9233_v12 = vld [vmem:[#allocation2 + $0x10] sm:$0x3] }
  0x26   : > { %277 = vst.msk [vmem:[#allocation2 + $0x190] sm:$0x3] %vm228_vm2, %v13233_v1  ;;  %280 = vst.msk [vmem:[#allocation2 + $0x1a8] sm:$0x3] %vm228_vm2, %v13233_v1  ;;  %v455_v15 = vrot.slane %v9233_v12, 1  ;;  %v308_v1 = vld [vmem:[%s9218_s30 + $0xd8] sm:$0xff] }
  0x27   : > { %328 = vst.msk [vmem:[#allocation2 + $0xc1] sm:$0xff] %vm225_vm1, %v295_v4  ;;  %329 = vst.msk [vmem:[#allocation2 + $0xc9] sm:$0xff] %vm225_vm1, %v296_v5 }
  0x28   : > { %314 = vst.msk [vmem:[#allocation2 + $0x19] sm:$0xff] %vm225_vm1, %v281_v6  ;;  %315 = vst.msk [vmem:[#allocation2 + $0x21] sm:$0xff] %vm225_vm1, %v282_v9  ;;  %v456_v24 = vsel %vm451_vm3, %v453_v11, %v455_v15 }
  0x29   : > { %330 = vst.msk [vmem:[#allocation2 + $0xd9] sm:$0xff] %vm225_vm1, %v297_v13  ;;  %331 = vst.msk [vmem:[#allocation2 + $0xe1] sm:$0xff] %vm225_vm1, %v298_v14  ;;  %8050 = vmatmul.mubr.msk.f32.vlgmr.msra.gmra.mxu0 %vm225_vm1, %v456_v24 }
  0x2a   : > { %316 = vst.msk [vmem:[#allocation2 + $0x31] sm:$0xff] %vm225_vm1, %v283_v16  ;;  %317 = vst.msk [vmem:[#allocation2 + $0x39] sm:$0xff] %vm225_vm1, %v284_v17  ;;  %8148 = vmatpush3.msk.msra.mxu0 %vm598_vm0, %v9162_v3 }
  0x2b   : > { %332 = vst.msk [vmem:[#allocation2 + $0xf1] sm:$0xff] %vm225_vm1, %v299_v18  ;;  %333 = vst.msk [vmem:[#allocation2 + $0xf9] sm:$0xff] %vm225_vm1, %v300_v21  ;;  %8247 = vmatprep.subr.msk.mxu0 %vm598_vm0, %v9247_v19 }
  0x2c   : > { %318 = vst.msk [vmem:[#allocation2 + $0x49] sm:$0xff] %vm225_vm1, %v285_v22  ;;  %319 = vst.msk [vmem:[#allocation2 + $0x51] sm:$0xff] %vm225_vm1, %v286_v23 }
  0x2d   : > { %334 = vst.msk [vmem:[#allocation2 + $0x109] sm:$0xff] %vm225_vm1, %v301_v25  ;;  %335 = vst.msk [vmem:[#allocation2 + $0x111] sm:$0xff] %vm225_vm1, %v302_v26 }
  0x2e   : > { %320 = vst.msk [vmem:[#allocation2 + $0x61] sm:$0xff] %vm225_vm1, %v287_v27  ;;  %321 = vst.msk [vmem:[#allocation2 + $0x69] sm:$0xff] %vm225_vm1, %v288_v28  ;;  %v9279_v34 = vld [vmem:[#allocation2 + $0xc0] sm:$0xff]  ;;  %v9281_v35 = vld [vmem:[#allocation2 + $0xc8] sm:$0xff] }
  0x2f   : > { %336 = vst.msk [vmem:[#allocation2 + $0x121] sm:$0xff] %vm225_vm1, %v303_v29  ;;  %337 = vst.msk [vmem:[#allocation2 + $0x129] sm:$0xff] %vm225_vm1, %v304_v30  ;;  %v9283_v36 = vld [vmem:[#allocation2 + $0xd0] sm:$0x3]  ;;  %v492_v37 = vrot.slane %v9279_v34, 1  ;;  %v493_v38 = vrot.slane %v9281_v35, 1 }
  0x30   : > { %322 = vst.msk [vmem:[#allocation2 + $0x79] sm:$0xff] %vm225_vm1, %v289_v31  ;;  %323 = vst.msk [vmem:[#allocation2 + $0x81] sm:$0xff] %vm225_vm1, %v290_v32  ;;  %v495_v39 = vrot.slane %v9283_v36, 1  ;;  %v9293_v40 = vld [vmem:[#allocation2 + $0x18] sm:$0xff]  ;;  %v9295_v41 = vld [vmem:[#allocation2 + $0x20] sm:$0xff] }
  0x31   : > { %338 = vst.msk [vmem:[#allocation2 + $0x139] sm:$0xff] %vm225_vm1, %v305_v33  ;;  %v457_v43 = vrot.slane %v9293_v40, 1  ;;  %v458_v44 = vrot.slane %v9295_v41, 1  ;;  %v9300_v45 = vld [vmem:[#allocation2 + $0xd8] sm:$0xff]  ;;  %v9302_v46 = vld [vmem:[#allocation2 + $0xe0] sm:$0xff]  ;;  %339 = vst.msk [vmem:[#allocation2 + $0x141] sm:$0xff] %vm225_vm1, %v306_v42  ;;  %v9313_v49 = vsel %vm451_vm3, %v492_v37, %v493_v38 }
  0x32   : > { %v9304_v47 = vld [vmem:[#allocation2 + $0x28] sm:$0x3]  ;;  %13385 = vst [vmem:[#allocation4_spill] sm:$0xff] %v9313_v49  ;;  %v9316_v50 = vsel %vm451_vm3, %v493_v38, %v495_v39  ;;  %v497_v51 = vrot.slane %v9300_v45, 1  ;;  %v498_v52 = vrot.slane %v9302_v46, 1  ;;  %v9322_v54 = vld [vmem:[#allocation2 + $0x30] sm:$0xff]  ;;  %8073 = vmatprep.mubr.msk.f32.mxu1 %vm225_vm1, %v9313_v49 }
  0x33   : > { %13386 = vst [vmem:[#allocation5_spill] sm:$0xff] %v9316_v50  ;;  %v9320_v53 = vld [vmem:[#allocation2 + $0xe8] sm:$0x3]  ;;  %v9324_v55 = vld [vmem:[#allocation2 + $0x38] sm:$0xff]  ;;  %v9329_v56 = vsel %vm451_vm3, %v457_v43, %v458_v44  ;;  %v460_v57 = vrot.slane %v9304_v47, 1  ;;  %v462_v59 = vrot.slane %v9322_v54, 1  ;;  %8074 = vmatmul.mubr.msk.f32.vlgmr.msra.gmra.mxu1 %vm225_vm1, %v9316_v50 }
  0x34   : > { %13387 = vst [vmem:[#allocation6_spill] sm:$0xff] %v9329_v56  ;;  %v500_v58 = vrot.slane %v9320_v53, 1  ;;  %v9334_v60 = vld [vmem:[#allocation2 + $0xf0] sm:$0xff]  ;;  %v9336_v61 = vld [vmem:[#allocation2 + $0xf8] sm:$0xff]  ;;  %v9338_v62 = vld [vmem:[#allocation2 + $0x48] sm:$0xff]  ;;  %8052 = vmatprep.mubr.msk.f32.mxu0 %vm225_vm1, %v9329_v56  ;;  %v9345_v63 = vsel %vm451_vm3, %v497_v51, %v498_v52  ;;  %v463_v0 = vrot.slane %v9324_v55, 1  ;;  %8098 = vmatpush3.msk.msra.mxu1 %vm598_vm0, %v9157_v2 }
  0x35   : > { %13388 = vst [vmem:[#allocation7_spill] sm:$0xff] %v9345_v63  ;;  %v502_v3 = vrot.slane %v9334_v60, 1  ;;  %v503_v4 = vrot.slane %v9336_v61, 1  ;;  %v9350_v5 = vld [vmem:[#allocation2 + $0x40] sm:$0x3]  ;;  %v9352_v6 = vld [vmem:[#allocation2 + $0x50] sm:$0xff]  ;;  %8076 = vmatprep.mubr.msk.f32.mxu1 %vm225_vm1, %v9345_v63  ;;  %v9359_v9 = vsel %vm451_vm3, %v458_v44, %v460_v57  ;;  %8197 = vmatprep.subr.msk.mxu1 %vm598_vm0, %v9310_v48 }
  0x36   : > { %13389 = vst [vmem:[#allocation8_spill] sm:$0xff] %v9359_v9  ;;  %v9362_v10 = vsel %vm451_vm3, %v498_v52, %v500_v58  ;;  %v465_v11 = vrot.slane %v9350_v5, 1  ;;  %v9365_v13 = vld [vmem:[#allocation2 + $0x100] sm:$0x3]  ;;  %v467_v14 = vrot.slane %v9338_v62, 1  ;;  %v9368_v15 = vld [vmem:[#allocation2 + $0x108] sm:$0xff]  ;;  %8053 = vmatmul.mubr.msk.f32.gmra.mxu0 %vm225_vm1, %v9359_v9  ;;  %v9375_v2 = vsel %vm451_vm3, %v462_v59, %v463_v0 }
  0x37   : > { %13390 = vst [vmem:[#allocation9_spill] sm:$0xff] %v9362_v10  ;;  %v9370_v16 = vld [vmem:[#allocation2 + $0x110] sm:$0xff]  ;;  %13391 = vst [vmem:[#allocation10_spill] sm:$0xff] %v9375_v2  ;;  %v9378_v17 = vsel %vm451_vm3, %v502_v3, %v503_v4  ;;  %v505_v18 = vrot.slane %v9365_v13, 1  ;;  %v468_v20 = vrot.slane %v9352_v6, 1  ;;  %8055 = vmatprep.mubr.msk.f32.mxu0 %vm225_vm1, %v9375_v2  ;;  %v507_v24 = vrot.slane %v9368_v15, 1  ;;  %8077 = vmatmul.mubr.msk.f32.gmra.mxu1 %vm225_vm1, %v9362_v10 }
  0x38   : > { %13392 = vst [vmem:[#allocation11_spill] sm:$0xff] %v9378_v17  ;;  %v9382_v21 = vld [vmem:[#allocation2 + $0x58] sm:$0x3]  ;;  %v9391_v23 = vsel %vm451_vm3, %v463_v0, %v465_v11  ;;  %v508_v25 = vrot.slane %v9370_v16, 1  ;;  %v9396_v27 = vld [vmem:[#allocation2 + $0x60] sm:$0xff]  ;;  %v9398_v28 = vld [vmem:[#allocation2 + $0x68] sm:$0xff]  ;;  %8079 = vmatprep.mubr.msk.f32.mxu1 %vm225_vm1, %v9378_v17 }
  0x39   : > { %v9384_v22 = vld [vmem:[#allocation2 + $0x118] sm:$0x3]  ;;  %13393 = vst [vmem:[#allocation12_spill] sm:$0xff] %v9391_v23  ;;  %v470_v26 = vrot.slane %v9382_v21, 1  ;;  %v9400_v29 = vld [vmem:[#allocation2 + $0x120] sm:$0xff]  ;;  %v9405_v30 = vsel %vm451_vm3, %v467_v14, %v468_v20  ;;  %v472_v31 = vrot.slane %v9396_v27, 1  ;;  %v9415_v37 = vsel %vm451_vm3, %v503_v4, %v505_v18 }
  0x3a   : > { %13394 = vst [vmem:[#allocation13_spill] sm:$0xff] %v9405_v30  ;;  %v9408_v32 = vld [vmem:[#allocation2 + $0x128] sm:$0xff]  ;;  %v9410_v33 = vld [vmem:[#allocation2 + $0x70] sm:$0x3]  ;;  %13395 = vst [vmem:[#allocation14_spill] sm:$0xff] %v9415_v37  ;;  %v510_v38 = vrot.slane %v9384_v22, 1  ;;  %8056 = vmatmul.mubr.msk.f32.gmra.mxu0 %vm225_vm1, %v9391_v23  ;;  %v9426_v44 = vsel %vm451_vm3, %v507_v24, %v508_v25 }
  0x3b   : > { %v473_v39 = vrot.slane %v9398_v28, 1  ;;  %v9419_v42 = vld [vmem:[#allocation2 + $0x78] sm:$0xff]  ;;  %v9421_v43 = vld [vmem:[#allocation2 + $0x80] sm:$0xff]  ;;  %13396 = vst [vmem:[#allocation15_spill] sm:$0xff] %v9426_v44  ;;  %v512_v51 = vrot.slane %v9400_v29, 1  ;;  %v513_v52 = vrot.slane %v9408_v32, 1  ;;  %8058 = vmatprep.mubr.msk.f32.mxu0 %vm225_vm1, %v9405_v30  ;;  %v9437_v59 = vsel %vm451_vm3, %v468_v20, %v470_v26  ;;  %8080 = vmatmul.mubr.msk.f32.gmra.mxu1 %vm225_vm1, %v9415_v37 }
  0x3c   : > { %v9430_v57 = vld [vmem:[#allocation2 + $0x130] sm:$0x3]  ;;  %v9432_v58 = vld [vmem:[#allocation2 + $0x138] sm:$0xff]  ;;  %13397 = vst [vmem:[#allocation16_spill] sm:$0xff] %v9437_v59  ;;  %v475_v0 = vrot.slane %v9410_v33, 1  ;;  %v9440_v3 = vld [vmem:[#allocation2 + $0x140] sm:$0xff]  ;;  %8082 = vmatprep.mubr.msk.f32.mxu1 %vm225_vm1, %v9426_v44  ;;  %v9459_v17 = vsel %vm451_vm3, %v508_v25, %v510_v38 }
  0x3d   : > { %v9442_v4 = vld [vmem:[#allocation2 + $0x88] sm:$0x3]  ;;  %v291_v11 = vld [vmem:[%s9218_s30 + $0x50] sm:$0xff]  ;;  %v9448_v14 = vsel %vm451_vm3, %v472_v31, %v473_v39  ;;  %v477_v18 = vrot.slane %v9419_v42, 1  ;;  %v478_v20 = vrot.slane %v9421_v43, 1  ;;  %v292_v24 = vld [vmem:[%s9218_s30 + $0x58] sm:$0xff]  ;;  %v9471_v44 = vsel %vm451_vm3, %v512_v51, %v513_v52 }
  0x3e   : > { %13398 = vst [vmem:[#allocation17_spill] sm:$0xff] %v9448_v14  ;;  %324 = vst.msk [vmem:[#allocation2 + $0x91] sm:$0xff] %vm225_vm1, %v291_v11  ;;  %v307_v26 = vld [vmem:[%s9218_s30 + $0xd0] sm:$0xff]  ;;  %v515_v37 = vrot.slane %v9430_v57, 1  ;;  %v293_v31 = vld [vmem:[%s9218_s30 + $0x60] sm:$0xff]  ;;  %8059 = vmatmul.mubr.msk.f32.gmra.mxu0 %vm225_vm1, %v9437_v59  ;;  %v517_v25 = vrot.slane %v9432_v58, 1  ;;  %v9484_v51 = vsel %vm451_vm3, %v473_v39, %v475_v0 }
  0x3f   : > { %13399 = vst [vmem:[#allocation18_spill] sm:$0xff] %v9459_v17  ;;  %325 = vst.msk [vmem:[#allocation2 + $0x99] sm:$0xff] %vm225_vm1, %v292_v24  ;;  %v294_v10 = vld [vmem:[%s9218_s30 + $0x68] sm:$0xff]  ;;  %v309_v11 = vld [vmem:[%s9218_s30 + $0xe0] sm:$0xff]  ;;  %v518_v38 = vrot.slane %v9440_v3, 1  ;;  %8061 = vmatprep.mubr.msk.f32.mxu0 %vm225_vm1, %v9448_v14  ;;  %v480_v24 = vrot.slane %v9442_v4, 1  ;;  %8083 = vmatmul.mubr.msk.f32.gmra.mxu1 %vm225_vm1, %v9459_v17 }
  0x40   : > { %340 = vst.msk [vmem:[#allocation2 + $0x151] sm:$0xff] %vm225_vm1, %v307_v26  ;;  %341 = vst.msk [vmem:[#allocation2 + $0x159] sm:$0xff] %vm225_vm1, %v308_v1  ;;  %v9475_v63 = vld [vmem:[#allocation2 + $0x148] sm:$0x3]  ;;  %8085 = vmatprep.mubr.msk.f32.mxu1 %vm225_vm1, %v9471_v44  ;;  %v9496_v26 = vsel %vm451_vm3, %v513_v52, %v515_v37  ;;  %v1120_v17 = vrot.slane %v9223_v7, 2 }
  0x41   : > { %13400 = vst [vmem:[#allocation19_spill] sm:$0xff] %v9471_v44  ;;  %326 = vst.msk [vmem:[#allocation2 + $0xa9] sm:$0xff] %vm225_vm1, %v293_v31  ;;  %v310_v1 = vld [vmem:[%s9218_s30 + $0xe8] sm:$0xff]  ;;  %v520_v31 = vrot.slane %v9475_v63, 1  ;;  %v9502_v39 = vsel %vm451_vm3, %v517_v25, %v518_v38  ;;  %v9507_v0 = vsel %vm451_vm3, %v478_v20, %v480_v24 }
  0x42   : > { %327 = vst.msk [vmem:[#allocation2 + $0xb1] sm:$0xff] %vm225_vm1, %v294_v10  ;;  %342 = vst.msk [vmem:[#allocation2 + $0x169] sm:$0xff] %vm225_vm1, %v309_v11  ;;  %v9491_v10 = vsel %vm451_vm3, %v477_v18, %v478_v20  ;;  %8062 = vmatmul.mubr.msk.f32.gmra.mxu0 %vm225_vm1, %v9484_v51  ;;  %v311_v11 = vld [vmem:[%s9218_s30 + $0xf0] sm:$0xff]  ;;  %v1121_v20 = vrot.slane %v9225_v8, 2 }
  0x43   : > { %13401 = vst [vmem:[#allocation20_spill] sm:$0xff] %v9484_v51  ;;  %343 = vst.msk [vmem:[#allocation2 + $0x171] sm:$0xff] %vm225_vm1, %v310_v1  ;;  %8064 = vmatprep.mubr.msk.f32.mxu0 %vm225_vm1, %v9491_v10  ;;  %v312_v1 = vld [vmem:[%s9218_s30 + $0xf8] sm:$0xff]  ;;  %8086 = vmatmul.mubr.msk.f32.gmra.mxu1 %vm225_vm1, %v9496_v26  ;;  %v9529_v24 = vsel %vm451_vm3, %v518_v38, %v520_v31 }
  0x44   : > { %13402 = vst [vmem:[#allocation21_spill] sm:$0xff] %v9491_v10  ;;  %13403 = vst [vmem:[#allocation22_spill] sm:$0xff] %v9496_v26  ;;  %8088 = vmatprep.mubr.msk.f32.mxu1 %vm225_vm1, %v9502_v39 }
  0x45   : > { %13404 = vst [vmem:[#allocation23_spill] sm:$0xff] %v9502_v39  ;;  %13405 = vst [vmem:[#allocation24_spill] sm:$0xff] %v9507_v0  ;;  %v9509_v18 = vld [vmem:[#allocation2 + $0x90] sm:$0xff] }
  0x46   : > { %v9515_v37 = vld [vmem:[#allocation2 + $0x98] sm:$0xff]  ;;  %v482_v52 = vrot.slane %v9509_v18, 1  ;;  %344 = vst.msk [vmem:[#allocation2 + $0x181] sm:$0xff] %vm225_vm1, %v311_v11  ;;  %345 = vst.msk [vmem:[#allocation2 + $0x189] sm:$0xff] %vm225_vm1, %v312_v1  ;;  %v9534_v10 = vld [vmem:[#allocation2 + $0xa0] sm:$0x3]  ;;  %8065 = vmatmul.mubr.msk.f32.gmra.mxu0 %vm225_vm1, %v9507_v0 }
  0x47   : > { %v9518_v44 = vld [vmem:[#allocation2 + $0x150] sm:$0xff]  ;;  %v9520_v25 = vld [vmem:[#allocation2 + $0x158] sm:$0xff]  ;;  %13407 = vst [vmem:[#allocation26_spill] sm:$0xff] %v9529_v24  ;;  %v483_v26 = vrot.slane %v9515_v37, 1  ;;  %v485_v11 = vrot.slane %v9534_v10, 1  ;;  %8089 = vmatmul.mubr.msk.f32.gmra.mxu1 %vm225_vm1, %v9529_v24 }
  0x48   : > { %13406 = vst [vmem:[#allocation25_spill] sm:$0xff] %v9520_v25  ;;  %v522_v50 = vrot.slane %v9518_v44, 1  ;;  %v523_v49 = vrot.slane %v9520_v25, 1  ;;  %v9536_v51 = vld [vmem:[#allocation2 + $0xa8] sm:$0xff]  ;;  %v9541_v1 = vld [vmem:[#allocation2 + $0x160] sm:$0x3] }
  0x49   : > { %13408 = vst [vmem:[#allocation27_spill] sm:$0xff] %v9541_v1  ;;  %v9543_v39 = vld [vmem:[#allocation2 + $0xb0] sm:$0xff]  ;;  %v487_v38 = vrot.slane %v9536_v51, 1  ;;  %v9546_v31 = vld [vmem:[#allocation2 + $0x168] sm:$0xff]  ;;  %v9549_v14 = vsel %vm451_vm3, %v482_v52, %v483_v26  ;;  %v525_v30 = vrot.slane %v9541_v1, 1  ;;  %v9565_v52 = vsel %vm451_vm3, %v483_v26, %v485_v11 }
  0x4a   : > { %13409 = vst [vmem:[#allocation28_spill] sm:$0xff] %v9549_v14  ;;  %v9552_v59 = vsel %vm451_vm3, %v522_v50, %v523_v49  ;;  %v488_v0 = vrot.slane %v9543_v39, 1  ;;  %v9556_v23 = vld [vmem:[#allocation2 + $0x170] sm:$0xff]  ;;  %v9558_v2 = vld [vmem:[#allocation2 + $0xb8] sm:$0x3]  ;;  %8067 = vmatprep.mubr.msk.f32.mxu0 %vm225_vm1, %v9549_v14  ;;  %13411 = vst [vmem:[#allocation30_spill] sm:$0xff] %v9565_v52 }
  0x4b   : > { %13410 = vst [vmem:[#allocation29_spill] sm:$0xff] %v9552_v59  ;;  %v527_v50 = vrot.slane %v9546_v31, 1  ;;  %v528_v9 = vrot.slane %v9556_v23, 1  ;;  %v490_v56 = vrot.slane %v9558_v2, 1  ;;  %v9570_v1 = vld [vmem:[#allocation2 + $0x178] sm:$0x3]  ;;  %8091 = vmatprep.mubr.msk.f32.mxu1 %vm225_vm1, %v9552_v59  ;;  %v9575_v25 = vsel %vm451_vm3, %v523_v49, %v525_v30  ;;  %8068 = vmatmul.mubr.msk.f32.gmra.mxu0 %vm225_vm1, %v9565_v52 }
  0x4c   : > { %13412 = vst [vmem:[#allocation31_spill] sm:$0xff] %v9575_v25  ;;  %v9578_v24 = vsel %vm451_vm3, %v487_v38, %v488_v0  ;;  %v530_v26 = vrot.slane %v9570_v1, 1  ;;  %v1123_v14 = vrot.slane %v9233_v12, 2  ;;  %8092 = vmatmul.mubr.msk.f32.gmra.mxu1 %vm225_vm1, %v9575_v25  ;;  %v1122_v30 = vsel %vm1119_vm4, %v1120_v17, %v1121_v20 }
  0x4d   : > { %13413 = vst [vmem:[#allocation32_spill] sm:$0xff] %v9578_v24  ;;  %v9584_v11 = vsel %vm451_vm3, %v527_v50, %v528_v9  ;;  %8070 = vmatprep.mubr.msk.f32.mxu0 %vm225_vm1, %v9578_v24  ;;  %v9590_v49 = vsel %vm451_vm3, %v488_v0, %v490_v56  ;;  %v1125_v38 = vrot.slane %v9293_v40, 2  ;;  %v1126_v59 = vrot.slane %v9295_v41, 2 }
  0x4e   : > { %13414 = vst [vmem:[#allocation33_spill] sm:$0xff] %v9584_v11  ;;  %13415 = vst [vmem:[#allocation34_spill] sm:$0xff] %v9590_v49  ;;  %8094 = vmatprep.mubr.msk.f32.mxu1 %vm225_vm1, %v9584_v11  ;;  %v9600_v12 = vsel %vm451_vm3, %v528_v9, %v530_v26  ;;  %v1124_v56 = vsel %vm1119_vm4, %v1121_v20, %v1123_v14  ;;  %v1128_v0 = vrot.slane %v9304_v47, 2  ;;  %v1130_v50 = vrot.slane %v9322_v54, 2  ;;  %v9619_v26 = vld [vmem:[%s13228_s1 + $0x18] sm:$0xf] }
  0x4f   : > { %13416 = vst [vmem:[#allocation35_spill] sm:$0xff] %v9600_v12  ;;  %8071 = vmatmul.mubr.msk.f32.gmra.mxu0 %vm225_vm1, %v9590_v49  ;;  %v9610_v17 = vsel %vm1119_vm4, %v1125_v38, %v1126_v59  ;;  %v1131_v9 = vrot.slane %v9324_v55, 2  ;;  %v1133_v14 = vrot.slane %v9350_v5, 2  ;;  %v1138_v5 = vrot.slane %v9382_v21, 2 }
  0x50   : > { %8149 = vmatprep.mubr.msk.f32.mxu0 %vm225_vm1, %v1122_v30  ;;  %8095 = vmatmul.mubr.msk.f32.gmra.mxu1 %vm225_vm1, %v9600_v12  ;;  %v9627_v47 = vsel %vm1119_vm4, %v1126_v59, %v1128_v0  ;;  %v1136_v30 = vrot.slane %v9352_v6, 2  ;;  %v1140_v59 = vrot.slane %v9396_v27, 2  ;;  %v1141_v38 = vrot.slane %v9398_v28, 2 }
  0x51   : > { %8099 = vmatprep.mubr.msk.f32.mxu1 %vm225_vm1, %v9223_v7  ;;  %v9633_v7 = vld [vmem:[%s13228_s1 + $0x14] sm:$0xf]  ;;  %v9638_v20 = vsel %vm1119_vm4, %v1130_v50, %v1131_v9  ;;  %v1145_v50 = vrot.slane %v9419_v42, 2 }
  0x52   : > { %v9672_v21 = vsel %vm1119_vm4, %v1136_v30, %v1138_v5  ;;  %v9678_v0 = vsel %vm1119_vm4, %v1140_v59, %v1141_v38  ;;  %v1151_v5 = vrot.slane %v9515_v37, 2  ;;  %v1153_v59 = vrot.slane %v9534_v10, 2 }
  0x53   : > { %8150 = vmatmul.mubr.msk.f32.vlgmr.msra.gmra.mxu0 %vm225_vm1, %v1124_v56  ;;  %v1143_v56 = vrot.slane %v9410_v33, 2 }
  0x54   : > { %8248 = vmatpush3.msk.msra.mxu0 %vm598_vm0, %v9247_v19  ;;  %8152 = vmatprep.mubr.msk.f32.mxu0 %vm225_vm1, %v9610_v17  ;;  %v1135_v19 = vrot.slane %v9338_v62, 2  ;;  %v9723_v10 = vsel %vm1119_vm4, %v1151_v5, %v1153_v59 }
  0x55   : > { %8100 = vmatmul.mubr.msk.f32.vlgmr.msra.gmra.mxu1 %vm225_vm1, %v9225_v8  ;;  %8347 = vmatprep.subr.msk.mxu0 %vm598_vm0, %v9619_v26  ;;  %v9655_v8 = vsel %vm1119_vm4, %v1131_v9, %v1133_v14  ;;  %v1146_v9 = vrot.slane %v9421_v43, 2  ;;  %v9689_v33 = vsel %vm1119_vm4, %v1141_v38, %v1143_v56  ;;  %v1148_v14 = vrot.slane %v9442_v4, 2 }
  0x56   : > { %8198 = vmatpush3.msk.msra.mxu1 %vm598_vm0, %v9310_v48  ;;  %8102 = vmatprep.mubr.msk.f32.mxu1 %vm225_vm1, %v9293_v40  ;;  %v9661_v48 = vsel %vm1119_vm4, %v1135_v19, %v1136_v30  ;;  %v1150_v30 = vrot.slane %v9509_v18, 2  ;;  %v1155_v56 = vrot.slane %v9536_v51, 2 }
  0x57   : > { %8153 = vmatmul.mubr.msk.f32.gmra.mxu0 %vm225_vm1, %v9627_v47  ;;  %8297 = vmatprep.subr.msk.mxu1 %vm598_vm0, %v9633_v7  ;;  %v9695_v19 = vsel %vm1119_vm4, %v1145_v50, %v1146_v9  ;;  %v9706_v4 = vsel %vm1119_vm4, %v1146_v9, %v1148_v14  ;;  %v1156_v50 = vrot.slane %v9543_v39, 2  ;;  %v1158_v9 = vrot.slane %v9558_v2, 2 }
  0x58   : > { %8155 = vmatprep.mubr.msk.f32.mxu0 %vm225_vm1, %v9638_v20  ;;  %13417 = vst [vmem:[#allocation36_spill] sm:$0xff] %v9695_v19  ;;  %v9712_v38 = vsel %vm1119_vm4, %v1150_v30, %v1151_v5  ;;  %v1160_v30 = vrot.slane %v9279_v34, 2  ;;  %v1163_v5 = vrot.slane %v9283_v36, 2 }
  0x59   : > { %8103 = vmatmul.mubr.msk.f32.gmra.mxu1 %vm225_vm1, %v9295_v41  ;;  %13418 = vst [vmem:[#allocation37_spill] sm:$0xff] %v9712_v38  ;;  %v9729_v14 = vsel %vm1119_vm4, %v1155_v56, %v1156_v50  ;;  %v9740_v2 = vsel %vm1119_vm4, %v1156_v50, %v1158_v9  ;;  %v1165_v56 = vrot.slane %v9300_v45, 2  ;;  %v1168_v50 = vrot.slane %v9320_v53, 2 }
  0x5a   : > { %8105 = vmatprep.mubr.msk.f32.mxu1 %vm225_vm1, %v9322_v54  ;;  %13419 = vst [vmem:[#allocation38_spill] sm:$0xff] %v9729_v14 }
  0x5b   : > { %8156 = vmatmul.mubr.msk.f32.gmra.mxu0 %vm225_vm1, %v9655_v8 }
  0x5c   : > { %8158 = vmatprep.mubr.msk.f32.mxu0 %vm225_vm1, %v9661_v48 }
  0x5d   : > { %8106 = vmatmul.mubr.msk.f32.gmra.mxu1 %vm225_vm1, %v9324_v55 }
  0x5e   : > { %8108 = vmatprep.mubr.msk.f32.mxu1 %vm225_vm1, %v9338_v62 }
  0x5f   : > { %8159 = vmatmul.mubr.msk.f32.gmra.mxu0 %vm225_vm1, %v9672_v21 }
  0x60   : > { %8161 = vmatprep.mubr.msk.f32.mxu0 %vm225_vm1, %v9678_v0 }
  0x61   : > { %8109 = vmatmul.mubr.msk.f32.gmra.mxu1 %vm225_vm1, %v9352_v6 }
  0x62   : > { %8111 = vmatprep.mubr.msk.f32.mxu1 %vm225_vm1, %v9396_v27 }
  0x63   : > { %8162 = vmatmul.mubr.msk.f32.gmra.mxu0 %vm225_vm1, %v9689_v33 }
  0x64   : > { %8164 = vmatprep.mubr.msk.f32.mxu0 %vm225_vm1, %v9695_v19  ;;  %v1161_v19 = vrot.slane %v9281_v35, 2 }
  0x65   : > { %8112 = vmatmul.mubr.msk.f32.gmra.mxu1 %vm225_vm1, %v9398_v28 }
  0x66   : > { %8114 = vmatprep.mubr.msk.f32.mxu1 %vm225_vm1, %v9419_v42  ;;  %v9746_v59 = vsel %vm1119_vm4, %v1160_v30, %v1161_v19  ;;  %v9757_v36 = vsel %vm1119_vm4, %v1161_v19, %v1163_v5  ;;  %v1170_v30 = vrot.slane %v9334_v60, 2  ;;  %v1173_v19 = vrot.slane %v9365_v13, 2 }
  0x67   : > { %8165 = vmatmul.mubr.msk.f32.gmra.mxu0 %vm225_vm1, %v9706_v4  ;;  %13420 = vst [vmem:[#allocation39_spill] sm:$0xff] %v9746_v59 }
  0x68   : > { %8167 = vmatprep.mubr.msk.f32.mxu0 %vm225_vm1, %v9712_v38  ;;  %v1166_v38 = vrot.slane %v9302_v46, 2 }
  0x69   : > { %8115 = vmatmul.mubr.msk.f32.gmra.mxu1 %vm225_vm1, %v9421_v43 }
  0x6a   : > { %8117 = vmatprep.mubr.msk.f32.mxu1 %vm225_vm1, %v9509_v18  ;;  %v9763_v9 = vsel %vm1119_vm4, %v1165_v56, %v1166_v38  ;;  %v9774_v53 = vsel %vm1119_vm4, %v1166_v38, %v1168_v50  ;;  %v1175_v56 = vrot.slane %v9368_v15, 2  ;;  %v1178_v38 = vrot.slane %v9384_v22, 2 }
  0x6b   : > { %8168 = vmatmul.mubr.msk.f32.gmra.mxu0 %vm225_vm1, %v9723_v10  ;;  %13421 = vst [vmem:[#allocation40_spill] sm:$0xff] %v9763_v9 }
  0x6c   : > { %8170 = vmatprep.mubr.msk.f32.mxu0 %vm225_vm1, %v9729_v14  ;;  %v1171_v14 = vrot.slane %v9336_v61, 2 }
  0x6d   : > { %8118 = vmatmul.mubr.msk.f32.gmra.mxu1 %vm225_vm1, %v9515_v37 }
  0x6e   : > { %8120 = vmatprep.mubr.msk.f32.mxu1 %vm225_vm1, %v9536_v51  ;;  %v9780_v5 = vsel %vm1119_vm4, %v1170_v30, %v1171_v14  ;;  %v9791_v13 = vsel %vm1119_vm4, %v1171_v14, %v1173_v19  ;;  %v1180_v30 = vrot.slane %v9400_v29, 2  ;;  %v1183_v14 = vrot.slane %v9430_v57, 2 }
  0x6f   : > { %8171 = vmatmul.mubr.msk.f32.gmra.mxu0 %vm225_vm1, %v9740_v2  ;;  %13422 = vst [vmem:[#allocation41_spill] sm:$0xff] %v9780_v5  ;;  %13423 = vst [vmem:[#allocation42_spill] sm:$0xff] %v9791_v13 }
  0x70   : > { %8173 = vmatprep.mubr.msk.f32.mxu0 %vm225_vm1, %v9746_v59  ;;  %v1176_v59 = vrot.slane %v9370_v16, 2 }
  0x71   : > { %8121 = vmatmul.mubr.msk.f32.gmra.mxu1 %vm225_vm1, %v9543_v39 }
  0x72   : > { %8123 = vmatprep.mubr.msk.f32.mxu1 %vm225_vm1, %v9279_v34  ;;  %v9797_v50 = vsel %vm1119_vm4, %v1175_v56, %v1176_v59  ;;  %v9808_v22 = vsel %vm1119_vm4, %v1176_v59, %v1178_v38  ;;  %v1185_v56 = vrot.slane %v9432_v58, 2  ;;  %v1188_v59 = vrot.slane %v9475_v63, 2 }
  0x73   : > { %8174 = vmatmul.mubr.msk.f32.gmra.mxu0 %vm225_vm1, %v9757_v36  ;;  %13424 = vst [vmem:[#allocation43_spill] sm:$0xff] %v9797_v50  ;;  %13425 = vst [vmem:[#allocation44_spill] sm:$0xff] %v9808_v22 }
  0x74   : > { %8176 = vmatprep.mubr.msk.f32.mxu0 %vm225_vm1, %v9763_v9  ;;  %v1181_v9 = vrot.slane %v9408_v32, 2 }
  0x75   : > { %8124 = vmatmul.mubr.msk.f32.gmra.mxu1 %vm225_vm1, %v9281_v35 }
  0x76   : > { %8126 = vmatprep.mubr.msk.f32.mxu1 %vm225_vm1, %v9300_v45  ;;  %v9814_v19 = vsel %vm1119_vm4, %v1180_v30, %v1181_v9  ;;  %v9825_v57 = vsel %vm1119_vm4, %v1181_v9, %v1183_v14  ;;  %v1190_v30 = vrot.slane %v9518_v44, 2  ;;  %v13428_v9 = vld [vmem:[#allocation27_spill] sm:$0xff] }
  0x77   : > { %8177 = vmatmul.mubr.msk.f32.gmra.mxu0 %vm225_vm1, %v9774_v53  ;;  %13426 = vst [vmem:[#allocation45_spill] sm:$0xff] %v9814_v19  ;;  %v1193_v14 = vrot.slane %v13428_v9, 2  ;;  %v13432_v9 = vld [vmem:[#allocation10_spill] sm:$0xff] }
  0x78   : > { %8179 = vmatprep.mubr.msk.f32.mxu0 %vm225_vm1, %v9780_v5  ;;  %v1186_v5 = vrot.slane %v9440_v3, 2 }
  0x79   : > { %8127 = vmatmul.mubr.msk.f32.gmra.mxu1 %vm225_vm1, %v9302_v46 }
  0x7a   : > { %8129 = vmatprep.mubr.msk.f32.mxu1 %vm225_vm1, %v9334_v60  ;;  %v9831_v38 = vsel %vm1119_vm4, %v1185_v56, %v1186_v5  ;;  %v9842_v63 = vsel %vm1119_vm4, %v1186_v5, %v1188_v59  ;;  %v1198_v59 = vrot.slane %v9570_v1, 2  ;;  %v13430_v1 = vld [vmem:[#allocation6_spill] sm:$0xff] }
  0x7b   : > { %8180 = vmatmul.mubr.msk.f32.gmra.mxu0 %vm225_vm1, %v9791_v13 }
  0x7c   : > { %8182 = vmatprep.mubr.msk.f32.mxu0 %vm225_vm1, %v9797_v50  ;;  %v13427_v50 = vld [vmem:[#allocation25_spill] sm:$0xff] }
  0x7d   : > { %8130 = vmatmul.mubr.msk.f32.gmra.mxu1 %vm225_vm1, %v9336_v61  ;;  %v1191_v13 = vrot.slane %v13427_v50, 2 }
  0x7e   : > { %8132 = vmatprep.mubr.msk.f32.mxu1 %vm225_vm1, %v9368_v15 }
  0x7f   : > { %8183 = vmatmul.mubr.msk.f32.gmra.mxu0 %vm225_vm1, %v9808_v22  ;;  %v9848_v56 = vsel %vm1119_vm4, %v1190_v30, %v1191_v13  ;;  %v1196_v22 = vrot.slane %v9556_v23, 2  ;;  %v9859_v5 = vsel %vm1119_vm4, %v1191_v13, %v1193_v14  ;;  %v9902_v14 = vld [vmem:[%s13228_s1 + $0x1c] sm:$0xf] }
  0x80   : > { %8185 = vmatprep.mubr.msk.f32.mxu0 %vm225_vm1, %v9814_v19  ;;  %v1195_v19 = vrot.slane %v9546_v31, 2 }
  0x81   : > { %8133 = vmatmul.mubr.msk.f32.gmra.mxu1 %vm225_vm1, %v9370_v16  ;;  %v9874_v13 = vsel %vm1119_vm4, %v1196_v22, %v1198_v59  ;;  %v13437_v59 = vld [vmem:[#allocation20_spill] sm:$0xff] }
  0x82   : > { %8135 = vmatprep.mubr.msk.f32.mxu1 %vm225_vm1, %v9400_v29  ;;  %v9865_v30 = vsel %vm1119_vm4, %v1195_v19, %v1196_v22  ;;  %13429 = vst [vmem:[#allocation25_spill] sm:$0xff] %v9874_v13  ;;  %v9891_v22 = vld [vmem:[%s13228_s1 + $0x20] sm:$0xf] }
  0x83   : > { %8186 = vmatmul.mubr.msk.f32.gmra.mxu0 %vm225_vm1, %v9825_v57  ;;  %v13431_v19 = vld [vmem:[#allocation8_spill] sm:$0xff] }
  0x84   : > { %8188 = vmatprep.mubr.msk.f32.mxu0 %vm225_vm1, %v9831_v38 }
  0x85   : > { %8136 = vmatmul.mubr.msk.f32.gmra.mxu1 %vm225_vm1, %v9408_v32 }
  0x86   : > { %8138 = vmatprep.mubr.msk.f32.mxu1 %vm225_vm1, %v9432_v58 }
  0x87   : > { %8189 = vmatmul.mubr.msk.f32.gmra.mxu0 %vm225_vm1, %v9842_v63 }
  0x88   : > { %8191 = vmatprep.mubr.msk.f32.mxu0 %vm225_vm1, %v9848_v56 }
  0x89   : > { %8139 = vmatmul.mubr.msk.f32.gmra.mxu1 %vm225_vm1, %v9440_v3 }
  0x8a   : > { %8141 = vmatprep.mubr.msk.f32.mxu1 %vm225_vm1, %v9518_v44 }
  0x8b   : > { %8192 = vmatmul.mubr.msk.f32.gmra.mxu0 %vm225_vm1, %v9859_v5 }
  0x8c   : > { %8194 = vmatprep.mubr.msk.f32.mxu0 %vm225_vm1, %v9865_v30 }
  0x8d   : > { %8142 = vmatmul.mubr.msk.f32.gmra.mxu1 %vm225_vm1, %v13427_v50 }
  0x8e   : > { %8144 = vmatprep.mubr.msk.f32.mxu1 %vm225_vm1, %v9546_v31 }
  0x8f   : > { %8195 = vmatmul.mubr.msk.f32.gmra.mxu0 %vm225_vm1, %v9874_v13 }
  0x90   : > { %8249 = vmatprep.mubr.msk.f32.mxu0 %vm225_vm1, %v13430_v1  ;;  %v13438_v1 = vld [vmem:[#allocation21_spill] sm:$0xff] }
  0x91   : > { %8145 = vmatmul.mubr.msk.f32.gmra.mxu1 %vm225_vm1, %v9556_v23 }
  0x92   : > { %8199 = vmatprep.mubr.msk.f32.mxu1 %vm225_vm1, %v9293_v40  ;;  %v13433_v40 = vld [vmem:[#allocation12_spill] sm:$0xff] }
  0x93   : > { %8250 = vmatmul.mubr.msk.f32.vlgmr.msra.gmra.mxu0 %vm225_vm1, %v13431_v19  ;;  %v13439_v19 = vld [vmem:[#allocation24_spill] sm:$0xff] }
  0x94   : > { %8348 = vmatpush3.msk.msra.mxu0 %vm598_vm0, %v9619_v26  ;;  %8252 = vmatprep.mubr.msk.f32.mxu0 %vm225_vm1, %v13432_v9  ;;  %v13434_v26 = vld [vmem:[#allocation13_spill] sm:$0xff] }
  0x95   : > { %8200 = vmatmul.mubr.msk.f32.vlgmr.msra.gmra.mxu1 %vm225_vm1, %v9295_v41  ;;  %8447 = vmatprep.subr.msk.mxu0 %vm598_vm0, %v9891_v22  ;;  %v13435_v41 = vld [vmem:[#allocation16_spill] sm:$0xff] }
  0x96   : > { %8298 = vmatpush3.msk.msra.mxu1 %vm598_vm0, %v9633_v7  ;;  %8202 = vmatprep.mubr.msk.f32.mxu1 %vm225_vm1, %v9322_v54  ;;  %v13436_v7 = vld [vmem:[#allocation17_spill] sm:$0xff] }
  0x97   : > { %8253 = vmatmul.mubr.msk.f32.gmra.mxu0 %vm225_vm1, %v13433_v40  ;;  %8397 = vmatprep.subr.msk.mxu1 %vm598_vm0, %v9902_v14 }
  0x98   : > { %8255 = vmatprep.mubr.msk.f32.mxu0 %vm225_vm1, %v13434_v26 }
  0x99   : > { %8203 = vmatmul.mubr.msk.f32.gmra.mxu1 %vm225_vm1, %v9324_v55 }
  0x9a   : > { %8205 = vmatprep.mubr.msk.f32.mxu1 %vm225_vm1, %v9338_v62 }
  0x9b   : > { %8256 = vmatmul.mubr.msk.f32.gmra.mxu0 %vm225_vm1, %v13435_v41 }
  0x9c   : > { %8258 = vmatprep.mubr.msk.f32.mxu0 %vm225_vm1, %v13436_v7  ;;  %v13440_v7 = vld [vmem:[#allocation28_spill] sm:$0xff] }
  0x9d   : > { %8206 = vmatmul.mubr.msk.f32.gmra.mxu1 %vm225_vm1, %v9352_v6 }
  0x9e   : > { %8208 = vmatprep.mubr.msk.f32.mxu1 %vm225_vm1, %v9396_v27 }
  0x9f   : > { %8259 = vmatmul.mubr.msk.f32.gmra.mxu0 %vm225_vm1, %v13437_v59  ;;  %v10014_v59 = vld [vmem:[#allocation2 + $0x190] sm:$0x3] }
  0xa0   : > { %8261 = vmatprep.mubr.msk.f32.mxu0 %vm225_vm1, %v13438_v1  ;;  %v13453_v1 = vld [vmem:[#allocation29_spill] sm:$0xff] }
  0xa1   : > { %8209 = vmatmul.mubr.msk.f32.gmra.mxu1 %vm225_vm1, %v9398_v28 }
  0xa2   : > { %8211 = vmatprep.mubr.msk.f32.mxu1 %vm225_vm1, %v9419_v42 }
  0xa3   : > { %8262 = vmatmul.mubr.msk.f32.gmra.mxu0 %vm225_vm1, %v13439_v19  ;;  %v13452_v19 = vld [vmem:[#allocation26_spill] sm:$0xff] }
  0xa4   : > { %8264 = vmatprep.mubr.msk.f32.mxu0 %vm225_vm1, %v13440_v7  ;;  %v13441_v7 = vld [vmem:[#allocation4_spill] sm:$0xff] }
  0xa5   : > { %8212 = vmatmul.mubr.msk.f32.gmra.mxu1 %vm225_vm1, %v9421_v43 }
  0xa6   : > { %8214 = vmatprep.mubr.msk.f32.mxu1 %vm225_vm1, %v9509_v18 }
  0xa7   : > { %8265 = vmatmul.mubr.msk.f32.gmra.mxu0 %vm225_vm1, %v9565_v52  ;;  %v13442_v52 = vld [vmem:[#allocation5_spill] sm:$0xff] }
  0xa8   : > { %8267 = vmatprep.mubr.msk.f32.mxu0 %vm225_vm1, %v9578_v24  ;;  %v13443_v24 = vld [vmem:[#allocation7_spill] sm:$0xff] }
  0xa9   : > { %8215 = vmatmul.mubr.msk.f32.gmra.mxu1 %vm225_vm1, %v9515_v37 }
  0xaa   : > { %8217 = vmatprep.mubr.msk.f32.mxu1 %vm225_vm1, %v9536_v51 }
  0xab   : > { %8268 = vmatmul.mubr.msk.f32.gmra.mxu0 %vm225_vm1, %v9590_v49  ;;  %v13444_v49 = vld [vmem:[#allocation9_spill] sm:$0xff] }
  0xac   : > { %8270 = vmatprep.mubr.msk.f32.mxu0 %vm225_vm1, %v13441_v7  ;;  %v13445_v7 = vld [vmem:[#allocation11_spill] sm:$0xff] }
  0xad   : > { %8218 = vmatmul.mubr.msk.f32.gmra.mxu1 %vm225_vm1, %v9543_v39 }
  0xae   : > { %8220 = vmatprep.mubr.msk.f32.mxu1 %vm225_vm1, %v9279_v34 }
  0xaf   : > { %8271 = vmatmul.mubr.msk.f32.gmra.mxu0 %vm225_vm1, %v13442_v52  ;;  %v13446_v52 = vld [vmem:[#allocation14_spill] sm:$0xff] }
  0xb0   : > { %8273 = vmatprep.mubr.msk.f32.mxu0 %vm225_vm1, %v13443_v24  ;;  %v13447_v24 = vld [vmem:[#allocation15_spill] sm:$0xff] }
  0xb1   : > { %8221 = vmatmul.mubr.msk.f32.gmra.mxu1 %vm225_vm1, %v9281_v35 }
  0xb2   : > { %8223 = vmatprep.mubr.msk.f32.mxu1 %vm225_vm1, %v9300_v45 }
  0xb3   : > { %8274 = vmatmul.mubr.msk.f32.gmra.mxu0 %vm225_vm1, %v13444_v49  ;;  %v13448_v49 = vld [vmem:[#allocation18_spill] sm:$0xff] }
  0xb4   : > { %8276 = vmatprep.mubr.msk.f32.mxu0 %vm225_vm1, %v13445_v7  ;;  %v13449_v7 = vld [vmem:[#allocation19_spill] sm:$0xff] }
  0xb5   : > { %8224 = vmatmul.mubr.msk.f32.gmra.mxu1 %vm225_vm1, %v9302_v46 }
  0xb6   : > { %8226 = vmatprep.mubr.msk.f32.mxu1 %vm225_vm1, %v9334_v60 }
  0xb7   : > { %8277 = vmatmul.mubr.msk.f32.gmra.mxu0 %vm225_vm1, %v13446_v52  ;;  %v13450_v52 = vld [vmem:[#allocation22_spill] sm:$0xff] }
  0xb8   : > { %8279 = vmatprep.mubr.msk.f32.mxu0 %vm225_vm1, %v13447_v24  ;;  %v13451_v24 = vld [vmem:[#allocation23_spill] sm:$0xff] }
  0xb9   : > { %8227 = vmatmul.mubr.msk.f32.gmra.mxu1 %vm225_vm1, %v9336_v61 }
  0xba   : > { %8229 = vmatprep.mubr.msk.f32.mxu1 %vm225_vm1, %v9368_v15 }
  0xbb   : > { %8280 = vmatmul.mubr.msk.f32.gmra.mxu0 %vm225_vm1, %v13448_v49  ;;  %v10002_v49 = vld [vmem:[#allocation2 + $0x180] sm:$0xff] }
  0xbc   : > { %8282 = vmatprep.mubr.msk.f32.mxu0 %vm225_vm1, %v13449_v7  ;;  %v10004_v7 = vld [vmem:[#allocation2 + $0x188] sm:$0xff] }
  0xbd   : > { %8230 = vmatmul.mubr.msk.f32.gmra.mxu1 %vm225_vm1, %v9370_v16 }
  0xbe   : > { %8232 = vmatprep.mubr.msk.f32.mxu1 %vm225_vm1, %v9400_v29 }
  0xbf   : > { %8283 = vmatmul.mubr.msk.f32.gmra.mxu0 %vm225_vm1, %v13450_v52  ;;  %v1796_v52 = vrot.slane %v10004_v7, 1 }
  0xc0   : > { %8285 = vmatprep.mubr.msk.f32.mxu0 %vm225_vm1, %v13451_v24  ;;  %v1795_v24 = vrot.slane %v10002_v49, 1 }
  0xc1   : > { %8233 = vmatmul.mubr.msk.f32.gmra.mxu1 %vm225_vm1, %v9408_v32 }
  0xc2   : > { %8235 = vmatprep.mubr.msk.f32.mxu1 %vm225_vm1, %v9432_v58 }
  0xc3   : > { %8286 = vmatmul.mubr.msk.f32.gmra.mxu0 %vm225_vm1, %v13452_v19  ;;  %v10026_v19 = vsel %vm451_vm3, %v1795_v24, %v1796_v52 }
  0xc4   : > { %8288 = vmatprep.mubr.msk.f32.mxu0 %vm225_vm1, %v13453_v1  ;;  %v1798_v1 = vrot.slane %v10014_v59, 1  ;;  %13454 = vst [vmem:[#allocation27_spill] sm:$0xff] %v10026_v19 }
  0xc5   : > { %8236 = vmatmul.mubr.msk.f32.gmra.mxu1 %vm225_vm1, %v9440_v3 }
  0xc6   : > { %8238 = vmatprep.mubr.msk.f32.mxu1 %vm225_vm1, %v9518_v44 }
  0xc7   : > { %8289 = vmatmul.mubr.msk.f32.gmra.mxu0 %vm225_vm1, %v9575_v25  ;;  %v10035_v25 = vsel %vm451_vm3, %v1796_v52, %v1798_v1 }
  0xc8   : > { %8291 = vmatprep.mubr.msk.f32.mxu0 %vm225_vm1, %v9584_v11  ;;  %13455 = vst [vmem:[#allocation6_spill] sm:$0xff] %v10035_v25 }
  0xc9   : > { %8239 = vmatmul.mubr.msk.f32.gmra.mxu1 %vm225_vm1, %v13427_v50 }
  0xca   : > { %8241 = vmatprep.mubr.msk.f32.mxu1 %vm225_vm1, %v9546_v31 }
  0xcb   : > { %8292 = vmatmul.mubr.msk.f32.gmra.mxu0 %vm225_vm1, %v9600_v12  ;;  %v2069_v12 = vrot.slane %v10014_v59, 2 }
  0xcc   : > { %8294 = vmatprep.mubr.msk.f32.mxu0 %vm225_vm1, %v10026_v19  ;;  %v10211_v19 = vld [vmem:[#allocation2 + $0x198] sm:$0xff] }
  0xcd   : > { %8242 = vmatmul.mubr.msk.f32.gmra.mxu1 %vm225_vm1, %v9556_v23 }
  0xce   : > { %8244 = vmatprep.mubr.msk.f32.mxu1 %vm225_vm1, %v10002_v49 }
  0xcf   : > { %8295 = vmatmul.mubr.msk.f32.gmra.mxu0 %vm225_vm1, %v10035_v25 }
  0xd0   : > { %8349 = vmatprep.mubr.msk.f32.mxu0 %vm225_vm1, %v9322_v54  ;;  %v13456_v54 = vld [vmem:[#allocation36_spill] sm:$0xff] }
  0xd1   : > { %8245 = vmatmul.mubr.msk.f32.gmra.mxu1 %vm225_vm1, %v10004_v7 }
  0xd2   : > { %8299 = vmatprep.mubr.msk.f32.mxu1 %vm225_vm1, %v9610_v17 }
  0xd3   : > { %8350 = vmatmul.mubr.msk.f32.vlgmr.msra.gmra.mxu0 %vm225_vm1, %v9324_v55  ;;  %v13457_v55 = vld [vmem:[#allocation37_spill] sm:$0xff] }
  0xd4   : > { %8448 = vmatpush3.msk.msra.mxu0 %vm598_vm0, %v9891_v22  ;;  %8352 = vmatprep.mubr.msk.f32.mxu0 %vm225_vm1, %v9338_v62  ;;  %v13458_v62 = vld [vmem:[#allocation38_spill] sm:$0xff]  ;;  %v2066_v22 = vrot.slane %v10002_v49, 2 }
  0xd5   : > { %8300 = vmatmul.mubr.msk.f32.vlgmr.msra.gmra.mxu1 %vm225_vm1, %v9627_v47 }
  0xd6   : > { %8398 = vmatpush3.msk.msra.mxu1 %vm598_vm0, %v9902_v14  ;;  %8302 = vmatprep.mubr.msk.f32.mxu1 %vm225_vm1, %v9638_v20 }
  0xd7   : > { %8353 = vmatmul.mubr.msk.f32.gmra.mxu0 %vm225_vm1, %v9352_v6  ;;  %v13459_v6 = vld [vmem:[#allocation39_spill] sm:$0xff] }
  0xd8   : > { %8355 = vmatprep.mubr.msk.f32.mxu0 %vm225_vm1, %v9396_v27 }
  0xd9   : > { %8303 = vmatmul.mubr.msk.f32.gmra.mxu1 %vm225_vm1, %v9655_v8 }
  0xda   : > { %8305 = vmatprep.mubr.msk.f32.mxu1 %vm225_vm1, %v9661_v48 }
  0xdb   : > { %8356 = vmatmul.mubr.msk.f32.gmra.mxu0 %vm225_vm1, %v9398_v28 }
  0xdc   : > { %8358 = vmatprep.mubr.msk.f32.mxu0 %vm225_vm1, %v9419_v42 }
  0xdd   : > { %8306 = vmatmul.mubr.msk.f32.gmra.mxu1 %vm225_vm1, %v9672_v21 }
  0xde   : > { %8308 = vmatprep.mubr.msk.f32.mxu1 %vm225_vm1, %v9678_v0 }
  0xdf   : > { %8359 = vmatmul.mubr.msk.f32.gmra.mxu0 %vm225_vm1, %v9421_v43  ;;  %v13463_v43 = vld [vmem:[#allocation43_spill] sm:$0xff] }
  0xe0   : > { %8361 = vmatprep.mubr.msk.f32.mxu0 %vm225_vm1, %v9509_v18 }
  0xe1   : > { %8309 = vmatmul.mubr.msk.f32.gmra.mxu1 %vm225_vm1, %v9689_v33 }
  0xe2   : > { %8311 = vmatprep.mubr.msk.f32.mxu1 %vm225_vm1, %v13456_v54 }
  0xe3   : > { %8362 = vmatmul.mubr.msk.f32.gmra.mxu0 %vm225_vm1, %v9515_v37  ;;  %v13465_v37 = vld [vmem:[#allocation45_spill] sm:$0xff] }
  0xe4   : > { %8364 = vmatprep.mubr.msk.f32.mxu0 %vm225_vm1, %v9536_v51 }
  0xe5   : > { %8312 = vmatmul.mubr.msk.f32.gmra.mxu1 %vm225_vm1, %v9706_v4 }
  0xe6   : > { %8314 = vmatprep.mubr.msk.f32.mxu1 %vm225_vm1, %v13457_v55 }
  0xe7   : > { %8365 = vmatmul.mubr.msk.f32.gmra.mxu0 %vm225_vm1, %v9543_v39 }
  0xe8   : > { %8367 = vmatprep.mubr.msk.f32.mxu0 %vm225_vm1, %v9279_v34 }
  0xe9   : > { %8315 = vmatmul.mubr.msk.f32.gmra.mxu1 %vm225_vm1, %v9723_v10  ;;  %v10111_v34 = vpop.f32.mrf.mxu0 }
  0xea   : > { %8317 = vmatprep.mubr.msk.f32.mxu1 %vm225_vm1, %v13458_v62 }
  0xeb   : > { %8368 = vmatmul.mubr.msk.f32.gmra.mxu0 %vm225_vm1, %v9281_v35  ;;  %v13460_v35 = vld [vmem:[#allocation40_spill] sm:$0xff] }
  0xec   : > { %8370 = vmatprep.mubr.msk.f32.mxu0 %vm225_vm1, %v9300_v45  ;;  %v10121_v45 = vpop.f32.mrf.mxu0 }
  0xed   : > { %8318 = vmatmul.mubr.msk.f32.gmra.mxu1 %vm225_vm1, %v9740_v2 }
  0xee   : > { %8320 = vmatprep.mubr.msk.f32.mxu1 %vm225_vm1, %v13459_v6 }
  0xef   : > { %8371 = vmatmul.mubr.msk.f32.gmra.mxu0 %vm225_vm1, %v9302_v46 }
  0xf0   : > { %8373 = vmatprep.mubr.msk.f32.mxu0 %vm225_vm1, %v9334_v60  ;;  %v13461_v60 = vld [vmem:[#allocation41_spill] sm:$0xff] }
  0xf1   : > { %8321 = vmatmul.mubr.msk.f32.gmra.mxu1 %vm225_vm1, %v9757_v36 }
  0xf2   : > { %8323 = vmatprep.mubr.msk.f32.mxu1 %vm225_vm1, %v13460_v35 }
  0xf3   : > { %8374 = vmatmul.mubr.msk.f32.gmra.mxu0 %vm225_vm1, %v9336_v61  ;;  %v10125_v46 = vpop.f32.mrf.mxu1 }
  0xf4   : > { %8376 = vmatprep.mubr.msk.f32.mxu0 %vm225_vm1, %v9368_v15  ;;  %v13462_v15 = vld [vmem:[#allocation42_spill] sm:$0xff] }
  0xf5   : > { %8324 = vmatmul.mubr.msk.f32.gmra.mxu1 %vm225_vm1, %v9774_v53  ;;  %v10131_v27 = vpop.f32.mrf.mxu1 }
  0xf6   : > { %8326 = vmatprep.mubr.msk.f32.mxu1 %vm225_vm1, %v13461_v60  ;;  %v10133_v28 = vpop.f32.mrf.mxu0 }
  0xf7   : > { %8377 = vmatmul.mubr.msk.f32.gmra.mxu0 %vm225_vm1, %v9370_v16  ;;  %v10139_v61 = vpop.f32.mrf.mxu1 }
  0xf8   : > { %8379 = vmatprep.mubr.msk.f32.mxu0 %vm225_vm1, %v9400_v29  ;;  %v10143_v42 = vpop.f32.mrf.mxu0  ;;  %v13464_v29 = vld [vmem:[#allocation44_spill] sm:$0xff] }
  0xf9   : > { %8327 = vmatmul.mubr.msk.f32.gmra.mxu1 %vm225_vm1, %v13462_v15  ;;  %v10147_v51 = vpop.f32.mrf.mxu1 }
  0xfa   : > { %8329 = vmatprep.mubr.msk.f32.mxu1 %vm225_vm1, %v13463_v43  ;;  %v10149_v39 = vpop.f32.mrf.mxu0 }
  0xfb   : > { %8380 = vmatmul.mubr.msk.f32.gmra.mxu0 %vm225_vm1, %v9408_v32  ;;  %v10155_v16 = vpop.f32.mrf.mxu1 }
  0xfc   : > { %8382 = vmatprep.mubr.msk.f32.mxu0 %vm225_vm1, %v9432_v58  ;;  %v10159_v18 = vpop.f32.mrf.mxu0 }
  0xfd   : > { %8330 = vmatmul.mubr.msk.f32.gmra.mxu1 %vm225_vm1, %v13464_v29  ;;  %v10163_v24 = vpop.f32.mrf.mxu1 }
  0xfe   : > { %8332 = vmatprep.mubr.msk.f32.mxu1 %vm225_vm1, %v13465_v37  ;;  %v10165_v52 = vpop.f32.mrf.mxu0 }
  0xff   : > { %8383 = vmatmul.mubr.msk.f32.gmra.mxu0 %vm225_vm1, %v9440_v3  ;;  %v10171_v32 = vpop.f32.mrf.mxu1 }
 0x100   : > { %8385 = vmatprep.mubr.msk.f32.mxu0 %vm225_vm1, %v9518_v44  ;;  %v10175_v58 = vpop.f32.mrf.mxu0 }
 0x101   : > { %8333 = vmatmul.mubr.msk.f32.gmra.mxu1 %vm225_vm1, %v9825_v57  ;;  %v10179_v17 = vpop.f32.mrf.mxu1 }
 0x102   : > { %8335 = vmatprep.mubr.msk.f32.mxu1 %vm225_vm1, %v9831_v38  ;;  %v10181_v47 = vpop.f32.mrf.mxu0 }
 0x103   : > { %8386 = vmatmul.mubr.msk.f32.gmra.mxu0 %vm225_vm1, %v13427_v50  ;;  %v10187_v44 = vpop.f32.mrf.mxu1 }
 0x104   : > { %8388 = vmatprep.mubr.msk.f32.mxu0 %vm225_vm1, %v9546_v31  ;;  %v10191_v3 = vpop.f32.mrf.mxu0  ;;  %v2067_v31 = vrot.slane %v10004_v7, 2 }
 0x105   : > { %8336 = vmatmul.mubr.msk.f32.gmra.mxu1 %vm225_vm1, %v9842_v63  ;;  %v10196_v14 = vpop.f32.mrf.mxu1 }
 0x106   : > { %8338 = vmatprep.mubr.msk.f32.mxu1 %vm225_vm1, %v9848_v56  ;;  %13466 = vst [vmem:[#allocation8_spill] sm:$0xff] %v10196_v14  ;;  %v10198_v1 = vpop.f32.mrf.mxu0 }
 0x107   : > { %8389 = vmatmul.mubr.msk.f32.gmra.mxu0 %vm225_vm1, %v9556_v23  ;;  %v10205_v50 = vpop.f32.mrf.mxu1 }
 0x108   : > { %8391 = vmatprep.mubr.msk.f32.mxu0 %vm225_vm1, %v10002_v49  ;;  %13467 = vst [vmem:[#allocation10_spill] sm:$0xff] %v10205_v50  ;;  %v10209_v25 = vpop.f32.mrf.mxu0  ;;  %v10223_v49 = vsel %vm1119_vm4, %v2066_v22, %v2067_v31  ;;  %v10227_v50 = vld [vmem:[#allocation2 + $0x1a0] sm:$0xff] }
 0x109   : > { %8339 = vmatmul.mubr.msk.f32.gmra.mxu1 %vm225_vm1, %v9859_v5  ;;  %v10216_v23 = vpop.f32.mrf.mxu1 }
 0x10a   : > { %8341 = vmatprep.mubr.msk.f32.mxu1 %vm225_vm1, %v9865_v30  ;;  %13468 = vst [vmem:[#allocation12_spill] sm:$0xff] %v10216_v23 }
 0x10b   : > { %v10218_v14 = vpop.f32.mrf.mxu0  ;;  %8392 = vmatmul.mubr.msk.f32.gmra.mxu0 %vm225_vm1, %v10004_v7  ;;  %v10238_v7 = vsel %vm1119_vm4, %v2067_v31, %v2069_v12 }
 0x10c   : > { %8394 = vmatprep.mubr.msk.f32.mxu0 %vm225_vm1, %v10211_v19  ;;  %v10229_v11 = vpop.f32.mrf.mxu1  ;;  %13470 = vst [vmem:[#allocation16_spill] sm:$0xff] %v10238_v7 }
 0x10d   : > { %13469 = vst [vmem:[#allocation13_spill] sm:$0xff] %v10229_v11  ;;  %8342 = vmatmul.mubr.msk.f32.gmra.mxu1 %vm225_vm1, %v9874_v13  ;;  %v10233_v59 = vpop.f32.mrf.mxu0 }
 0x10e   : > { %8344 = vmatprep.mubr.msk.f32.mxu1 %vm225_vm1, %v10223_v49  ;;  %v10240_v22 = vpop.f32.mrf.mxu1 }
 0x10f   : > { %13471 = vst [vmem:[#allocation36_spill] sm:$0xff] %v10240_v22  ;;  %v10242_v23 = vpop.f32.mrf.mxu0  ;;  %8395 = vmatmul.mubr.msk.f32.gmra.mxu0 %vm225_vm1, %v10227_v50 }
 0x110   : > { %8449 = vmatprep.mubr.msk.f32.mxu0 %vm225_vm1, %v9638_v20  ;;  %v10248_v11 = vpop.f32.mrf.mxu1 }
 0x111   : > { %13472 = vst [vmem:[#allocation37_spill] sm:$0xff] %v10248_v11  ;;  %8345 = vmatmul.mubr.msk.f32.gmra.mxu1 %vm225_vm1, %v10238_v7  ;;  %v10252_v13 = vpop.f32.mrf.mxu0 }
 0x112   : > { %8399 = vmatprep.mubr.msk.f32.mxu1 %vm225_vm1, %v13432_v9  ;;  %v10256_v12 = vpop.f32.mrf.mxu1 }
 0x113   : > { %13473 = vst [vmem:[#allocation38_spill] sm:$0xff] %v10256_v12  ;;  %v8151_v31 = vpop.f32.mrf.mxu0  ;;  %8450 = vmatmul.mubr.msk.f32.vlgmr.msra.gmra.mxu0 %vm225_vm1, %v9655_v8 }
 0x114   : > { %8452 = vmatprep.mubr.msk.f32.mxu0 %vm225_vm1, %v9661_v48 }
 0x115   : > { %v8101_v20 = vpop.f32.mrf.mxu1  ;;  %8400 = vmatmul.mubr.msk.f32.vlgmr.msra.gmra.mxu1 %vm225_vm1, %v13433_v40  ;;  %v1335_v11 = vpop.f32.mrf.mxu0 }
 0x116   : > { %v966_v22 = vadd.f32 %v8101_v20, %v10111_v34  ;;  %8402 = vmatprep.mubr.msk.f32.mxu1 %vm225_vm1, %v13434_v26  ;;  %v13474_v20 = vld [vmem:[#allocation17_spill] sm:$0xff] }
 0x117   : > { %v960_v9 = vpop.f32.mrf.mxu1  ;;  %v8154_v7 = vpop.f32.mrf.mxu0  ;;  %8453 = vmatmul.mubr.msk.f32.gmra.mxu0 %vm225_vm1, %v9672_v21 }
 0x118   : > { %v10269_v12 = vadd.f32 %v8151_v31, %v966_v22  ;;  %v961_v8 = vadd.f32 %v960_v9, %v10121_v45  ;;  %8455 = vmatprep.mubr.msk.f32.mxu0 %vm225_vm1, %v9678_v0 }
 0x119   : > { %v8104_v48 = vpop.f32.mrf.mxu1  ;;  %8403 = vmatmul.mubr.msk.f32.gmra.mxu1 %vm225_vm1, %v13435_v41  ;;  %v1345_v40 = vpop.f32.mrf.mxu0 }
 0x11a   : > { %v10276_v34 = vadd.f32 %v1335_v11, %v961_v8  ;;  %v976_v26 = vadd.f32 %v8104_v48, %v10133_v28  ;;  %8405 = vmatprep.mubr.msk.f32.mxu1 %vm225_vm1, %v13474_v20  ;;  %v13475_v11 = vld [vmem:[#allocation20_spill] sm:$0xff]  ;;  %v13476_v8 = vld [vmem:[#allocation21_spill] sm:$0xff] }
 0x11b   : > { %v970_v21 = vpop.f32.mrf.mxu1  ;;  %v8157_v22 = vpop.f32.mrf.mxu0  ;;  %8456 = vmatmul.mubr.msk.f32.gmra.mxu0 %vm225_vm1, %v9689_v33 }
 0x11c   : > { %v10283_v45 = vadd.f32 %v8154_v7, %v976_v26  ;;  %v971_v0 = vadd.f32 %v970_v21, %v10143_v42  ;;  %8458 = vmatprep.mubr.msk.f32.mxu0 %vm225_vm1, %v13456_v54  ;;  %v13478_v21 = vld [vmem:[#allocation28_spill] sm:$0xff] }
 0x11d   : > { %v8107_v41 = vpop.f32.mrf.mxu1  ;;  %8406 = vmatmul.mubr.msk.f32.gmra.mxu1 %vm225_vm1, %v13475_v11  ;;  %v1355_v28 = vpop.f32.mrf.mxu0 }
 0x11e   : > { %v10290_v31 = vadd.f32 %v1345_v40, %v971_v0  ;;  %v986_v9 = vadd.f32 %v8107_v41, %v10149_v39  ;;  %8408 = vmatprep.mubr.msk.f32.mxu1 %vm225_vm1, %v13476_v8  ;;  %v13477_v40 = vld [vmem:[#allocation24_spill] sm:$0xff]  ;;  %v13479_v41 = vld [vmem:[#allocation30_spill] sm:$0xff] }
 0x11f   : > { %v980_v33 = vpop.f32.mrf.mxu1  ;;  %v8160_v7 = vpop.f32.mrf.mxu0  ;;  %8459 = vmatmul.mubr.msk.f32.gmra.mxu0 %vm225_vm1, %v9706_v4  ;;  %v3375_v0 = vld [vmem:[%s13230_s3] sm:$0xf] }
 0x120   : > { %v10297_v42 = vadd.f32 %v8157_v22, %v986_v9  ;;  %v981_v54 = vadd.f32 %v980_v33, %v10159_v18  ;;  %8461 = vmatprep.mubr.msk.f32.mxu0 %vm225_vm1, %v13457_v55  ;;  %8497 = vmatprep.subr.msk.mxu1 %vm598_vm0, %v3375_v0  ;;  %v13480_v9 = vld [vmem:[#allocation32_spill] sm:$0xff] }
 0x121   : > { %v8110_v48 = vpop.f32.mrf.mxu1  ;;  %8409 = vmatmul.mubr.msk.f32.gmra.mxu1 %vm225_vm1, %v13477_v40  ;;  %v1365_v39 = vpop.f32.mrf.mxu0 }
 0x122   : > { %v10304_v26 = vadd.f32 %v1355_v28, %v981_v54  ;;  %v996_v20 = vadd.f32 %v8110_v48, %v10165_v52  ;;  %8411 = vmatprep.mubr.msk.f32.mxu1 %vm225_vm1, %v13478_v21  ;;  %8498 = vmatpush3.msk.msra.mxu1 %vm598_vm0, %v3375_v0  ;;  %v13481_v54 = vld [vmem:[#allocation34_spill] sm:$0xff]  ;;  %v7118_v21 = vld [vmem:[%s13229_s2 + $0x8] sm:$0xff]  ;;  %v13484_v0 = vld [vmem:[#allocation7_spill] sm:$0xff] }
 0x123   : > { %v990_v4 = vpop.f32.mrf.mxu1  ;;  %v8163_v22 = vpop.f32.mrf.mxu0  ;;  %8462 = vmatmul.mubr.msk.f32.gmra.mxu0 %vm225_vm1, %v9723_v10  ;;  %8547 = vmatprep.subr.mxu0 %v7118_v21 }
 0x124   : > { %v10311_v18 = vadd.f32 %v8160_v7, %v996_v20  ;;  %v991_v55 = vadd.f32 %v990_v4, %v10175_v58  ;;  %8464 = vmatprep.mubr.msk.f32.mxu0 %vm225_vm1, %v13458_v62  ;;  %v13483_v4 = vld [vmem:[#allocation5_spill] sm:$0xff]  ;;  %8548 = vmatpush3.msra.mxu0 %v7118_v21 }
 0x125   : > { %v8113_v52 = vpop.f32.mrf.mxu1  ;;  %8412 = vmatmul.mubr.msk.f32.gmra.mxu1 %vm225_vm1, %v13479_v41  ;;  %v1375_v11 = vpop.f32.mrf.mxu0 }
 0x126   : > { %v10322_v28 = vadd.f32 %v1365_v39, %v991_v55  ;;  %v1006_v10 = vadd.f32 %v8113_v52, %v10181_v47  ;;  %8414 = vmatprep.mubr.msk.f32.mxu1 %vm225_vm1, %v13480_v9  ;;  %v13482_v39 = vld [vmem:[#allocation4_spill] sm:$0xff] }
 0x127   : > { %v1000_v62 = vpop.f32.mrf.mxu1  ;;  %v8166_v58 = vpop.f32.mrf.mxu0  ;;  %8465 = vmatmul.mubr.msk.f32.gmra.mxu0 %vm225_vm1, %v9740_v2 }
 0x128   : > { %v10330_v8 = vadd.f32 %v8163_v22, %v1006_v10  ;;  %v1001_v33 = vadd.f32 %v1000_v62, %v10191_v3  ;;  %8467 = vmatprep.mubr.msk.f32.mxu0 %vm225_vm1, %v13459_v6  ;;  %v13485_v10 = vld [vmem:[#allocation9_spill] sm:$0xff] }
 0x129   : > { %v8116_v7 = vpop.f32.mrf.mxu1  ;;  %8415 = vmatmul.mubr.msk.f32.gmra.mxu1 %vm225_vm1, %v13481_v54  ;;  %v1385_v47 = vpop.f32.mrf.mxu0  ;;  %v13487_v54 = vld [vmem:[#allocation14_spill] sm:$0xff] }
 0x12a   : > { %v10337_v48 = vadd.f32 %v1375_v11, %v1001_v33  ;;  %v1016_v40 = vadd.f32 %v8116_v7, %v10198_v1  ;;  %8417 = vmatprep.mubr.msk.f32.mxu1 %vm225_vm1, %v13482_v39  ;;  %v13488_v39 = vld [vmem:[#allocation15_spill] sm:$0xff] }
 0x12b   : > { %v1010_v2 = vpop.f32.mrf.mxu1  ;;  %v8169_v20 = vpop.f32.mrf.mxu0  ;;  %8468 = vmatmul.mubr.msk.f32.gmra.mxu0 %vm225_vm1, %v9757_v36 }
 0x12c   : > { %v10344_v3 = vadd.f32 %v8166_v58, %v1016_v40  ;;  %v1011_v6 = vadd.f32 %v1010_v2, %v10209_v25  ;;  %8470 = vmatprep.mubr.msk.f32.mxu0 %vm225_vm1, %v13460_v35  ;;  %v13486_v58 = vld [vmem:[#allocation11_spill] sm:$0xff] }
 0x12d   : > { %v8119_v1 = vpop.f32.mrf.mxu1  ;;  %8418 = vmatmul.mubr.msk.f32.gmra.mxu1 %vm225_vm1, %v13483_v4  ;;  %v1395_v22 = vpop.f32.mrf.mxu0  ;;  %v13490_v4 = vld [vmem:[#allocation19_spill] sm:$0xff] }
 0x12e   : > { %v10354_v55 = vadd.f32 %v1385_v47, %v1011_v6  ;;  %v1026_v36 = vadd.f32 %v8119_v1, %v10218_v14  ;;  %8420 = vmatprep.mubr.msk.f32.mxu1 %vm225_vm1, %v13484_v0  ;;  %v13489_v6 = vld [vmem:[#allocation18_spill] sm:$0xff] }
 0x12f   : > { %v1020_v25 = vpop.f32.mrf.mxu1  ;;  %v8172_v35 = vpop.f32.mrf.mxu0  ;;  %8471 = vmatmul.mubr.msk.f32.gmra.mxu0 %vm225_vm1, %v9774_v53  ;;  %v13491_v0 = vld [vmem:[#allocation22_spill] sm:$0xff] }
 0x130   : > { %v10361_v52 = vadd.f32 %v8169_v20, %v1026_v36  ;;  %v1021_v41 = vadd.f32 %v1020_v25, %v10233_v59  ;;  %8473 = vmatprep.mubr.msk.f32.mxu0 %vm225_vm1, %v13461_v60 }
 0x131   : > { %v8122_v11 = vpop.f32.mrf.mxu1  ;;  %8421 = vmatmul.mubr.msk.f32.gmra.mxu1 %vm225_vm1, %v13485_v10  ;;  %v1405_v14 = vpop.f32.mrf.mxu0  ;;  %v13493_v10 = vld [vmem:[#allocation26_spill] sm:$0xff] }
 0x132   : > { %v10368_v9 = vadd.f32 %v1395_v22, %v1021_v41  ;;  %v1036_v62 = vadd.f32 %v8122_v11, %v10242_v23  ;;  %8423 = vmatprep.mubr.msk.f32.mxu1 %vm225_vm1, %v13486_v58 }
 0x133   : > { %v1030_v53 = vpop.f32.mrf.mxu1  ;;  %v8175_v33 = vpop.f32.mrf.mxu0  ;;  %8474 = vmatmul.mubr.msk.f32.gmra.mxu0 %vm225_vm1, %v13462_v15 }
 0x134   : > { %v10375_v59 = vadd.f32 %v8172_v35, %v1036_v62  ;;  %v1031_v60 = vadd.f32 %v1030_v53, %v10252_v13  ;;  %8476 = vmatprep.mubr.msk.f32.mxu0 %vm225_vm1, %v13463_v43  ;;  %v13492_v35 = vld [vmem:[#allocation23_spill] sm:$0xff]  ;;  %v13494_v62 = vld [vmem:[#allocation29_spill] sm:$0xff]  ;;  %v2877_v53 = vrot.slane %v10211_v19, 2 }
 0x135   : > { %v8125_v7 = vpop.f32.mrf.mxu1  ;;  %8424 = vmatmul.mubr.msk.f32.gmra.mxu1 %vm225_vm1, %v13487_v54  ;;  %v1415_v23 = vpop.f32.mrf.mxu0  ;;  %v13496_v54 = vld [vmem:[#allocation33_spill] sm:$0xff] }
 0x136   : > { %v10382_v47 = vadd.f32 %v1405_v14, %v1031_v60  ;;  %v1046_v40 = vadd.f32 %v8125_v7, %v10125_v46  ;;  %8426 = vmatprep.mubr.msk.f32.mxu1 %vm225_vm1, %v13488_v39  ;;  %v13495_v60 = vld [vmem:[#allocation31_spill] sm:$0xff]  ;;  %v13497_v39 = vld [vmem:[#allocation25_spill] sm:$0xff] }
 0x137   : > { %v1040_v15 = vpop.f32.mrf.mxu1  ;;  %v8178_v2 = vpop.f32.mrf.mxu0  ;;  %8477 = vmatmul.mubr.msk.f32.gmra.mxu0 %vm225_vm1, %v13464_v29 }
 0x138   : > { %v10389_v13 = vadd.f32 %v8175_v33, %v1046_v40  ;;  %v1041_v43 = vadd.f32 %v1040_v15, %v10131_v27  ;;  %8479 = vmatprep.mubr.msk.f32.mxu0 %vm225_vm1, %v13465_v37  ;;  %v401_v15 = vld [vmem:[#allocation2 + $0x1a8] sm:$0x3] }
 0x139   : > { %v8128_v20 = vpop.f32.mrf.mxu1  ;;  %8427 = vmatmul.mubr.msk.f32.gmra.mxu1 %vm225_vm1, %v13489_v6  ;;  %v10396_v46 = vpop.f32.mrf.mxu0 }
 0x13a   : > { %v10398_v21 = vadd.f32 %v1415_v23, %v1041_v43  ;;  %v1056_v1 = vadd.f32 %v8128_v20, %v10139_v61  ;;  %8429 = vmatprep.mubr.msk.f32.mxu1 %vm225_vm1, %v13490_v4  ;;  %v2607_v23 = vrot.slane %v10227_v50, 1  ;;  %v13498_v43 = vld [vmem:[#allocation8_spill] sm:$0xff]  ;;  %v13500_v4 = vld [vmem:[#allocation10_spill] sm:$0xff] }
 0x13b   : > { %v1050_v29 = vpop.f32.mrf.mxu1  ;;  %v8181_v22 = vpop.f32.mrf.mxu0  ;;  %8480 = vmatmul.mubr.msk.f32.gmra.mxu0 %vm225_vm1, %v9825_v57 }
 0x13c   : > { %v10405_v27 = vadd.f32 %v8178_v2, %v1056_v1  ;;  %v10408_v37 = vadd.f32 %v1050_v29, %v10147_v51  ;;  %8482 = vmatprep.mubr.msk.f32.mxu0 %vm225_vm1, %v9831_v38  ;;  %v13499_v1 = vld [vmem:[#allocation35_spill] sm:$0xff] }
 0x13d   : > { %v8131_v36 = vpop.f32.mrf.mxu1  ;;  %8430 = vmatmul.mubr.msk.f32.gmra.mxu1 %vm225_vm1, %v13491_v0  ;;  %v10414_v61 = vpop.f32.mrf.mxu0 }
 0x13e   : > { %v1066_v25 = vadd.f32 %v8131_v36, %v10155_v16  ;;  %8432 = vmatprep.mubr.msk.f32.mxu1 %vm225_vm1, %v13492_v35  ;;  %v2609_v36 = vrot.slane %v401_v15, 1  ;;  %v13502_v35 = vld [vmem:[#allocation16_spill] sm:$0xff] }
 0x13f   : > { %v1060_v57 = vpop.f32.mrf.mxu1  ;;  %v8184_v41 = vpop.f32.mrf.mxu0  ;;  %8483 = vmatmul.mubr.msk.f32.gmra.mxu0 %vm225_vm1, %v9842_v63 }
 0x140   : > { %v10421_v51 = vadd.f32 %v8181_v22, %v1066_v25  ;;  %v10424_v38 = vadd.f32 %v1060_v57, %v10163_v24  ;;  %8485 = vmatprep.mubr.msk.f32.mxu0 %vm225_vm1, %v9848_v56  ;;  %v13501_v22 = vld [vmem:[#allocation27_spill] sm:$0xff] }
 0x141   : > { %v8134_v11 = vpop.f32.mrf.mxu1  ;;  %8433 = vmatmul.mubr.msk.f32.gmra.mxu1 %vm225_vm1, %v13493_v10  ;;  %v10430_v16 = vpop.f32.mrf.mxu0 }
 0x142   : > { %v1076_v14 = vadd.f32 %v8134_v11, %v10171_v32  ;;  %8435 = vmatprep.mubr.msk.f32.mxu1 %vm225_vm1, %v13494_v62  ;;  %v2878_v32 = vrot.slane %v10227_v50, 2  ;;  %v13504_v62 = vld [vmem:[#allocation6_spill] sm:$0xff] }
 0x143   : > { %v1070_v63 = vpop.f32.mrf.mxu1  ;;  %v8187_v58 = vpop.f32.mrf.mxu0  ;;  %8486 = vmatmul.mubr.msk.f32.gmra.mxu0 %vm225_vm1, %v9859_v5 }
 0x144   : > { %v10437_v24 = vadd.f32 %v8184_v41, %v1076_v14  ;;  %v10440_v56 = vadd.f32 %v1070_v63, %v10179_v17  ;;  %8488 = vmatprep.mubr.msk.f32.mxu0 %vm225_vm1, %v9865_v30  ;;  %v2606_v17 = vrot.slane %v10211_v19, 1  ;;  %v2879_v50 = vsel %vm1119_vm4, %v2877_v53, %v2878_v32  ;;  %v13503_v41 = vld [vmem:[#allocation12_spill] sm:$0xff] }
 0x145   : > { %v8137_v33 = vpop.f32.mrf.mxu1  ;;  %8436 = vmatmul.mubr.msk.f32.gmra.mxu1 %vm225_vm1, %v13495_v60  ;;  %v10448_v7 = vpop.f32.mrf.mxu0 }
 0x146   : > { %v1086_v5 = vadd.f32 %v8137_v33, %v10187_v44  ;;  %8438 = vmatprep.mubr.msk.f32.mxu1 %vm225_vm1, %v13496_v54  ;;  %v2880_v44 = vrot.slane %v401_v15, 2  ;;  %v2610_v33 = vsel %vm451_vm3, %v2607_v23, %v2609_v36  ;;  %v3343_v54 = vld [vmem:[%s9218_s30] sm:$0xff]  ;;  %v13507_v15 = vld [vmem:[#allocation37_spill] sm:$0xff] }
 0x147   : > { %v1080_v30 = vpop.f32.mrf.mxu1  ;;  %v8190_v40 = vpop.f32.mrf.mxu0  ;;  %8489 = vmatmul.mubr.msk.f32.gmra.mxu0 %vm225_vm1, %v13497_v39 }
 0x148   : > { %v10457_v2 = vadd.f32 %v8187_v58, %v1086_v5  ;;  %v10460_v20 = vadd.f32 %v1080_v30, %v13498_v43  ;;  %8491 = vmatprep.mubr.msk.f32.mxu0 %vm225_vm1, %v10223_v49  ;;  %v2608_v49 = vsel %vm451_vm3, %v2606_v17, %v2607_v23  ;;  %v2881_v10 = vsel %vm1119_vm4, %v2878_v32, %v2880_v44  ;;  %v13505_v58 = vld [vmem:[#allocation13_spill] sm:$0xff]  ;;  %v13506_v17 = vld [vmem:[#allocation36_spill] sm:$0xff] }
 0x149   : > { %v8140_v6 = vpop.f32.mrf.mxu1  ;;  %8439 = vmatmul.mubr.msk.f32.gmra.mxu1 %vm225_vm1, %v13499_v1  ;;  %v10466_v19 = vpop.f32.mrf.mxu0  ;;  %v3344_v23 = vld [vmem:[%s9218_s30 + $0x8] sm:$0xff]  ;;  %v3345_v1 = vld [vmem:[%s9218_s30 + $0x10] sm:$0xff] }
 0x14a   : > { %v1096_v29 = vadd.f32 %v8140_v6, %v13500_v4  ;;  %8441 = vmatprep.mubr.msk.f32.mxu1 %vm225_vm1, %v13501_v22  ;;  %v13508_v4 = vld [vmem:[#allocation38_spill] sm:$0xff] }
 0x14b   : > { %v1090_v0 = vpop.f32.mrf.mxu1  ;;  %v8193_v25 = vpop.f32.mrf.mxu0  ;;  %8492 = vmatmul.mubr.msk.f32.gmra.mxu0 %vm225_vm1, %v13502_v35 }
 0x14c   : > { %v10475_v57 = vadd.f32 %v8190_v40, %v1096_v29  ;;  %v10478_v11 = vadd.f32 %v1090_v0, %v13503_v41  ;;  %8494 = vmatprep.mubr.msk.f32.mxu0 %vm225_vm1, %v2879_v50  ;;  %v3347_v41 = vld [vmem:[%s9218_s30 + $0x20] sm:$0xff] }
 0x14d   : > { %v8143_v14 = vpop.f32.mrf.mxu1  ;;  %8442 = vmatmul.mubr.msk.f32.gmra.mxu1 %vm225_vm1, %v13504_v62  ;;  %v10484_v63 = vpop.f32.mrf.mxu0 }
 0x14e   : > { %v1106_v53 = vadd.f32 %v8143_v14, %v13505_v58  ;;  %8444 = vmatprep.mubr.msk.f32.mxu1 %vm225_vm1, %v2608_v49 }
 0x14f   : > { %v1100_v60 = vpop.f32.mrf.mxu1  ;;  %v8196_v5 = vpop.f32.mrf.mxu0  ;;  %8495 = vmatmul.mubr.msk.f32.gmra.mxu0 %vm225_vm1, %v2881_v10 }
 0x150   : > { %v10491_v32 = vadd.f32 %v8193_v25, %v1106_v53  ;;  %v10494_v30 = vadd.f32 %v1100_v60, %v13506_v17  ;;  %v3346_v25 = vld [vmem:[%s9218_s30 + $0x18] sm:$0xff]  ;;  %v13509_v17 = vmov 0.0  }
 0x151   : > { %v8146_v40 = vpop.f32.mrf.mxu1  ;;  %8445 = vmatmul.mubr.msk.f32.gmra.mxu1 %vm225_vm1, %v2610_v33  ;;  %v10497_v39 = vpop.f32.mrf.mxu0  ;;  %3258 = vst.msk [vmem:[#allocation3 + $0x20] sm:$0xff] %vm3252_vm5, %v13509_v17  ;;  %3253 = vst.msk [vmem:[#allocation3] sm:$0xff] %vm3252_vm5, %v13509_v17 }
 0x152   : > { %v1116_v43 = vadd.f32 %v8146_v40, %v13507_v15  ;;  %8499 = vmatprep.mubr.msk.f32.mxu1 %vm225_vm1, %v3343_v54  ;;  %3254 = vst.msk [vmem:[#allocation3 + $0x8] sm:$0xff] %vm3252_vm5, %v13509_v17  ;;  %3257 = vst.msk [vmem:[#allocation3 + $0x18] sm:$0xff] %vm3252_vm5, %v13509_v17  ;;  %v3350_v15 = vld [vmem:[%s9218_s30 + $0x38] sm:$0xff] }
 0x153   : > { %v1110_v44 = vpop.f32.mrf.mxu1  ;;  %v8251_v6 = vpop.f32.mrf.mxu0  ;;  %3260 = vst.msk [vmem:[#allocation3 + $0x30] sm:$0xff] %vm3252_vm5, %v13509_v17  ;;  %3261 = vst.msk [vmem:[#allocation3 + $0x38] sm:$0xff] %vm3252_vm5, %v13509_v17 }
 0x154   : > { %v10503_v50 = vadd.f32 %v8196_v5, %v1116_v43  ;;  %v10506_v29 = vadd.f32 %v1110_v44, %v13508_v4  ;;  %v10529_v5 = vld [vmem:[%s9218_s30 + $0x30] sm:$0xff]  ;;  %3263 = vst.msk [vmem:[#allocation3 + $0x48] sm:$0xff] %vm3252_vm5, %v13509_v17  ;;  %3264 = vst.msk [vmem:[#allocation3 + $0x50] sm:$0xff] %vm3252_vm5, %v13509_v17  ;;  %v3351_v44 = vld [vmem:[%s9218_s30 + $0x40] sm:$0xff] }
 0x155   : > { %v8201_v22 = vpop.f32.mrf.mxu1  ;;  %v10508_v36 = vpop.f32.mrf.mxu0  ;;  %8500 = vmatmul.mubr.msk.f32.vlgmr.msra.gmra.mxu1 %vm225_vm1, %v3344_v23  ;;  %3266 = vst.msk [vmem:[#allocation3 + $0x60] sm:$0xff] %vm3252_vm5, %v13509_v17  ;;  %3267 = vst.msk [vmem:[#allocation3 + $0x68] sm:$0xff] %vm3252_vm5, %v13509_v17 }
 0x156   : > { %v1763_v0 = vadd.f32 %v8201_v22, %v10269_v12  ;;  %8502 = vmatprep.mubr.msk.f32.mxu1 %vm225_vm1, %v3345_v1  ;;  %v3348_v12 = vld [vmem:[%s9218_s30 + $0x28] sm:$0xff]  ;;  %3269 = vst.msk [vmem:[#allocation3 + $0x78] sm:$0xff] %vm3252_vm5, %v13509_v17  ;;  %3270 = vst.msk [vmem:[#allocation3 + $0x80] sm:$0xff] %vm3252_vm5, %v13509_v17 }
 0x157   : > { %v1603_v35 = vpop.f32.mrf.mxu1  ;;  %v8254_v49 = vpop.f32.mrf.mxu0  ;;  %3272 = vst.msk [vmem:[#allocation3 + $0x90] sm:$0xff] %vm3252_vm5, %v13509_v17  ;;  %3273 = vst.msk [vmem:[#allocation3 + $0x98] sm:$0xff] %vm3252_vm5, %v13509_v17 }
 0x158   : > { %v10515_v10 = vadd.f32 %v8251_v6, %v1763_v0  ;;  %v10518_v14 = vadd.f32 %v1603_v35, %v10276_v34  ;;  %3275 = vst.msk [vmem:[#allocation3 + $0xa8] sm:$0xff] %vm3252_vm5, %v13509_v17  ;;  %3276 = vst.msk [vmem:[#allocation3 + $0xb0] sm:$0xff] %vm3252_vm5, %v13509_v17  ;;  %v3352_v0 = vld [vmem:[%s9218_s30 + $0x48] sm:$0xff] }
 0x159   : > { %v8204_v62 = vpop.f32.mrf.mxu1  ;;  %v10520_v58 = vpop.f32.mrf.mxu0  ;;  %8503 = vmatmul.mubr.msk.f32.gmra.mxu1 %vm225_vm1, %v3346_v25  ;;  %3278 = vst.msk [vmem:[#allocation3 + $0xc0] sm:$0xff] %vm3252_vm5, %v13509_v17  ;;  %3279 = vst.msk [vmem:[#allocation3 + $0xc8] sm:$0xff] %vm3252_vm5, %v13509_v17 }
 0x15a   : > { %v1765_v53 = vadd.f32 %v8204_v62, %v10283_v45  ;;  %8505 = vmatprep.mubr.msk.f32.mxu1 %vm225_vm1, %v3347_v41  ;;  %3281 = vst.msk [vmem:[#allocation3 + $0xd8] sm:$0xff] %vm3252_vm5, %v13509_v17  ;;  %3282 = vst.msk [vmem:[#allocation3 + $0xe0] sm:$0xff] %vm3252_vm5, %v13509_v17 }
 0x15b   : > { %v1613_v33 = vpop.f32.mrf.mxu1  ;;  %v10526_v60 = vpop.f32.mrf.mxu0  ;;  %3284 = vst.msk [vmem:[#allocation3 + $0xf0] sm:$0xff] %vm3252_vm5, %v13509_v17  ;;  %3285 = vst.msk [vmem:[#allocation3 + $0xf8] sm:$0xff] %vm3252_vm5, %v13509_v17 }
 0x15c   : > { %v10531_v54 = vadd.f32 %v8254_v49, %v1765_v53  ;;  %v10534_v34 = vadd.f32 %v1613_v33, %v10290_v31  ;;  %3287 = vst.msk [vmem:[#allocation3 + $0x108] sm:$0xff] %vm3252_vm5, %v13509_v17  ;;  %3288 = vst.msk [vmem:[#allocation3 + $0x110] sm:$0xff] %vm3252_vm5, %v13509_v17  ;;  %v3353_v49 = vld [vmem:[%s9218_s30 + $0x50] sm:$0xff]  ;;  %v10672_v53 = vld [vmem:[#allocation3 + $0x8] sm:$0xff] }
 0x15d   : > { %3290 = vst.msk [vmem:[#allocation3 + $0x120] sm:$0xff] %vm3252_vm5, %v13509_v17  ;;  %3291 = vst.msk [vmem:[#allocation3 + $0x128] sm:$0xff] %vm3252_vm5, %v13509_v17  ;;  %v8207_v45 = vpop.f32.mrf.mxu1  ;;  %v10608_v31 = vpop.f32.mrf.mxu0  ;;  %8506 = vmatmul.mubr.msk.f32.gmra.mxu1 %vm225_vm1, %v3348_v12 }
 0x15e   : > { %3293 = vst.msk [vmem:[#allocation3 + $0x138] sm:$0xff] %vm3252_vm5, %v13509_v17  ;;  %3294 = vst.msk [vmem:[#allocation3 + $0x140] sm:$0xff] %vm3252_vm5, %v13509_v17  ;;  %v1767_v40 = vadd.f32 %v8207_v45, %v10297_v42  ;;  %8508 = vmatprep.mubr.msk.f32.mxu1 %vm225_vm1, %v10529_v5  ;;  %v3878_v5 = vrot.slane %v10672_v53, 1  ;;  %v3354_v45 = vld [vmem:[%s9218_s30 + $0x58] sm:$0xff] }
 0x15f   : > { %3296 = vst.msk [vmem:[#allocation3 + $0x150] sm:$0xff] %vm3252_vm5, %v13509_v17  ;;  %3297 = vst.msk [vmem:[#allocation3 + $0x158] sm:$0xff] %vm3252_vm5, %v13509_v17  ;;  %v1623_v43 = vpop.f32.mrf.mxu1  ;;  %v8260_v23 = vpop.f32.mrf.mxu0 }
 0x160   : > { %3299 = vst.msk [vmem:[#allocation3 + $0x168] sm:$0xff] %vm3252_vm5, %v13509_v17  ;;  %3300 = vst.msk [vmem:[#allocation3 + $0x170] sm:$0xff] %vm3252_vm5, %v13509_v17  ;;  %v10653_v6 = vadd.f32 %v10526_v60, %v1767_v40  ;;  %v10656_v1 = vadd.f32 %v1623_v43, %v10304_v26  ;;  %v10670_v26 = vld [vmem:[#allocation3] sm:$0xff] }
 0x161   : > { %3302 = vst.msk [vmem:[#allocation3 + $0x180] sm:$0xff] %vm3252_vm5, %v13509_v17  ;;  %3303 = vst.msk [vmem:[#allocation3 + $0x188] sm:$0xff] %vm3252_vm5, %v13509_v17  ;;  %v8210_v4 = vpop.f32.mrf.mxu1  ;;  %v10658_v22 = vpop.f32.mrf.mxu0  ;;  %8509 = vmatmul.mubr.msk.f32.gmra.mxu1 %vm225_vm1, %v3350_v15  ;;  %v3877_v60 = vrot.slane %v10670_v26, 1 }
 0x162   : > { %3305 = vst.msk [vmem:[#allocation3 + $0x198] sm:$0xff] %vm3252_vm5, %v13509_v17  ;;  %3306 = vst.msk [vmem:[#allocation3 + $0x1a0] sm:$0xff] %vm3252_vm5, %v13509_v17  ;;  %v1769_v42 = vadd.f32 %v8210_v4, %v10311_v18  ;;  %8511 = vmatprep.mubr.msk.f32.mxu1 %vm225_vm1, %v3351_v44  ;;  %v3828_v18 = vld [vmem:[%s13229_s2] sm:$0xff] }
 0x163   : > { %3259 = vst.msk [vmem:[#allocation3 + $0x28] sm:$0x3] %vm3255_vm6, %v13509_v17  ;;  %3256 = vst.msk [vmem:[#allocation3 + $0x10] sm:$0x3] %vm3255_vm6, %v13509_v17  ;;  %v1633_v25 = vpop.f32.mrf.mxu1  ;;  %v8263_v35 = vpop.f32.mrf.mxu0  ;;  %8597 = vmatprep.subr.mxu1 %v3828_v18  ;;  %v3879_v44 = vsel %vm451_vm3, %v3877_v60, %v3878_v5 }
 0x164   : > { %3262 = vst.msk [vmem:[#allocation3 + $0x40] sm:$0x3] %vm3255_vm6, %v13509_v17  ;;  %3265 = vst.msk [vmem:[#allocation3 + $0x58] sm:$0x3] %vm3255_vm6, %v13509_v17  ;;  %v10665_v41 = vadd.f32 %v8260_v23, %v1769_v42  ;;  %v10668_v62 = vadd.f32 %v1633_v25, %v10322_v28  ;;  %v3355_v23 = vld [vmem:[%s9218_s30 + $0x60] sm:$0xff]  ;;  %8598 = vmatpush3.msra.mxu1 %v3828_v18  ;;  %8549 = vmatprep.mubr.msk.f32.mxu0 %vm3252_vm5, %v3879_v44  ;;  %v3357_v18 = vld [vmem:[%s9218_s30 + $0x70] sm:$0xff] }
 0x165   : > { %3268 = vst.msk [vmem:[#allocation3 + $0x70] sm:$0x3] %vm3255_vm6, %v13509_v17  ;;  %3271 = vst.msk [vmem:[#allocation3 + $0x88] sm:$0x3] %vm3255_vm6, %v13509_v17  ;;  %v8213_v12 = vpop.f32.mrf.mxu1  ;;  %v10674_v33 = vpop.f32.mrf.mxu0  ;;  %8512 = vmatmul.mubr.msk.f32.gmra.mxu1 %vm225_vm1, %v3352_v0 }
 0x166   : > { %3274 = vst.msk [vmem:[#allocation3 + $0xa0] sm:$0x3] %vm3255_vm6, %v13509_v17  ;;  %3277 = vst.msk [vmem:[#allocation3 + $0xb8] sm:$0x3] %vm3255_vm6, %v13509_v17  ;;  %8514 = vmatprep.mubr.msk.f32.mxu1 %vm225_vm1, %v3353_v49 }
 0x167   : > { %3280 = vst.msk [vmem:[#allocation3 + $0xd0] sm:$0x3] %vm3255_vm6, %v13509_v17  ;;  %3283 = vst.msk [vmem:[#allocation3 + $0xe8] sm:$0x3] %vm3255_vm6, %v13509_v17  ;;  %v1643_v15 = vpop.f32.mrf.mxu1  ;;  %v8266_v43 = vpop.f32.mrf.mxu0 }
 0x168   : > { %3286 = vst.msk [vmem:[#allocation3 + $0x100] sm:$0x3] %vm3255_vm6, %v13509_v17  ;;  %3289 = vst.msk [vmem:[#allocation3 + $0x118] sm:$0x3] %vm3255_vm6, %v13509_v17  ;;  %v10690_v42 = vadd.f32 %v1643_v15, %v10337_v48 }
 0x169   : > { %3292 = vst.msk [vmem:[#allocation3 + $0x130] sm:$0x3] %vm3255_vm6, %v13509_v17  ;;  %3295 = vst.msk [vmem:[#allocation3 + $0x148] sm:$0x3] %vm3255_vm6, %v13509_v17  ;;  %v8216_v0 = vpop.f32.mrf.mxu1  ;;  %v10694_v25 = vpop.f32.mrf.mxu0  ;;  %8515 = vmatmul.mubr.msk.f32.gmra.mxu1 %vm225_vm1, %v3354_v45  ;;  %v3358_v45 = vld [vmem:[%s9218_s30 + $0x78] sm:$0xff] }
 0x16a   : > { %3298 = vst.msk [vmem:[#allocation3 + $0x160] sm:$0x3] %vm3255_vm6, %v13509_v17  ;;  %3301 = vst.msk [vmem:[#allocation3 + $0x178] sm:$0x3] %vm3255_vm6, %v13509_v17  ;;  %v3776_v28 = vld [vmem:[#allocation3 + $0x10] sm:$0x3]  ;;  %v1773_v49 = vadd.f32 %v8216_v0, %v10344_v3  ;;  %8517 = vmatprep.mubr.msk.f32.mxu1 %vm225_vm1, %v3355_v23 }
 0x16b   : > { %3304 = vst.msk [vmem:[#allocation3 + $0x190] sm:$0x3] %vm3255_vm6, %v13509_v17  ;;  %3307 = vst.msk [vmem:[#allocation3 + $0x1a8] sm:$0x3] %vm3255_vm6, %v13509_v17  ;;  %v1771_v17 = vadd.f32 %v8213_v12, %v10330_v8  ;;  %v3880_v40 = vrot.slane %v3776_v28, 1  ;;  %v1653_v48 = vpop.f32.mrf.mxu1  ;;  %v8269_v12 = vpop.f32.mrf.mxu0  ;;  %v3359_v23 = vld [vmem:[%s9218_s30 + $0x80] sm:$0xff] }
 0x16c   : > { %13510 = vst [vmem:[#allocation39_spill] sm:$0xff] %v10665_v41  ;;  %v10702_v60 = vadd.f32 %v8266_v43, %v1773_v49  ;;  %v3360_v0 = vld [vmem:[%s9218_s30 + $0x88] sm:$0xff] }
 0x16d   : > { %v10687_v4 = vadd.f32 %v8263_v35, %v1771_v17  ;;  %v3881_v8 = vsel %vm451_vm3, %v3878_v5, %v3880_v40  ;;  %v3356_v35 = vld [vmem:[%s9218_s30 + $0x68] sm:$0xff]  ;;  %v10705_v5 = vadd.f32 %v1653_v48, %v10354_v55  ;;  %v8219_v28 = vpop.f32.mrf.mxu1  ;;  %v10707_v17 = vpop.f32.mrf.mxu0  ;;  %v3361_v48 = vld [vmem:[%s9218_s30 + $0x90] sm:$0xff] }
 0x16e   : > { %8550 = vmatmul.mubr.msk.f32.vlgmr.msra.gmra.mxu0 %vm3252_vm5, %v3881_v8  ;;  %13512 = vst [vmem:[#allocation41_spill] sm:$0xff] %v10702_v60  ;;  %8518 = vmatmul.mubr.msk.f32.gmra.mxu1 %vm225_vm1, %v3356_v35  ;;  %v1775_v3 = vadd.f32 %v8219_v28, %v10361_v52 }
 0x16f   : > { %13511 = vst [vmem:[#allocation40_spill] sm:$0xff] %v10687_v4  ;;  %8520 = vmatprep.mubr.msk.f32.mxu1 %vm225_vm1, %v3357_v18  ;;  %v1663_v40 = vpop.f32.mrf.mxu1  ;;  %v8272_v15 = vpop.f32.mrf.mxu0  ;;  %v7183_v18 = vld [vmem:[%s13229_s2 + $0x10] sm:$0xff] }
 0x170   : > { %v10714_v43 = vadd.f32 %v8269_v12, %v1775_v3  ;;  %v10717_v55 = vadd.f32 %v1663_v40, %v10368_v9  ;;  %8647 = vmatprep.subr.mxu0 %v7183_v18 }
 0x171   : > { %v8222_v44 = vpop.f32.mrf.mxu1  ;;  %v10719_v8 = vpop.f32.mrf.mxu0  ;;  %8648 = vmatpush3.msra.mxu0 %v7183_v18 }
 0x172   : > { %13513 = vst [vmem:[#allocation42_spill] sm:$0xff] %v10714_v43  ;;  %8521 = vmatmul.mubr.msk.f32.gmra.mxu1 %vm225_vm1, %v3358_v45  ;;  %v1777_v52 = vadd.f32 %v8222_v44, %v10375_v59  ;;  %v3362_v45 = vld [vmem:[%s9218_s30 + $0x98] sm:$0xff] }
 0x173   : > { %8523 = vmatprep.mubr.msk.f32.mxu1 %vm225_vm1, %v3359_v23  ;;  %v1673_v49 = vpop.f32.mrf.mxu1  ;;  %v8275_v35 = vpop.f32.mrf.mxu0 }
 0x174   : > { %v10726_v12 = vadd.f32 %v8272_v15, %v1777_v52  ;;  %v10729_v9 = vadd.f32 %v1673_v49, %v10382_v47  ;;  %v3363_v15 = vld [vmem:[%s9218_s30 + $0xa0] sm:$0xff]  ;;  %v3364_v49 = vld [vmem:[%s9218_s30 + $0xa8] sm:$0xff] }
 0x175   : > { %v8225_v28 = vpop.f32.mrf.mxu1  ;;  %v10734_v3 = vpop.f32.mrf.mxu0 }
 0x176   : > { %13514 = vst [vmem:[#allocation43_spill] sm:$0xff] %v10726_v12  ;;  %8524 = vmatmul.mubr.msk.f32.gmra.mxu1 %vm225_vm1, %v3360_v0  ;;  %v1779_v59 = vadd.f32 %v8225_v28, %v10389_v13 }
 0x177   : > { %8526 = vmatprep.mubr.msk.f32.mxu1 %vm225_vm1, %v3361_v48  ;;  %v1683_v47 = vpop.f32.mrf.mxu1  ;;  %v8278_v40 = vpop.f32.mrf.mxu0 }
 0x178   : > { %v10741_v23 = vadd.f32 %v8275_v35, %v1779_v59  ;;  %v10744_v44 = vadd.f32 %v1683_v47, %v10398_v21  ;;  %v3365_v35 = vld [vmem:[%s9218_s30 + $0xb0] sm:$0xff] }
 0x179   : > { %v8228_v52 = vpop.f32.mrf.mxu1  ;;  %v10746_v0 = vpop.f32.mrf.mxu0 }
 0x17a   : > { %13515 = vst [vmem:[#allocation44_spill] sm:$0xff] %v10741_v23  ;;  %8527 = vmatmul.mubr.msk.f32.gmra.mxu1 %vm225_vm1, %v3362_v45  ;;  %v1781_v13 = vadd.f32 %v8228_v52, %v10405_v27  ;;  %v3366_v27 = vld [vmem:[%s9218_s30 + $0xb8] sm:$0xff]  ;;  %v3367_v52 = vld [vmem:[%s9218_s30 + $0xc0] sm:$0xff] }
 0x17b   : > { %8529 = vmatprep.mubr.msk.f32.mxu1 %vm225_vm1, %v3363_v15  ;;  %v10752_v48 = vpop.f32.mrf.mxu1  ;;  %v8281_v18 = vpop.f32.mrf.mxu0 }
 0x17c   : > { %v10755_v28 = vadd.f32 %v8278_v40, %v1781_v13 }
 0x17d   : > { %v8231_v21 = vpop.f32.mrf.mxu1  ;;  %v10757_v59 = vpop.f32.mrf.mxu0 }
 0x17e   : > { %13516 = vst [vmem:[#allocation45_spill] sm:$0xff] %v10755_v28  ;;  %8530 = vmatmul.mubr.msk.f32.gmra.mxu1 %vm225_vm1, %v3364_v49  ;;  %v1783_v45 = vadd.f32 %v8231_v21, %v10421_v51  ;;  %v3368_v51 = vld [vmem:[%s9218_s30 + $0xc8] sm:$0xff]  ;;  %v3369_v28 = vld [vmem:[%s9218_s30 + $0xd0] sm:$0xff] }
 0x17f   : > { %8532 = vmatprep.mubr.msk.f32.mxu1 %vm225_vm1, %v3365_v35  ;;  %v10763_v47 = vpop.f32.mrf.mxu1  ;;  %v8284_v15 = vpop.f32.mrf.mxu0 }
 0x180   : > { %v10766_v23 = vadd.f32 %v8281_v18, %v1783_v45 }
 0x181   : > { %v8234_v40 = vpop.f32.mrf.mxu1  ;;  %v10768_v13 = vpop.f32.mrf.mxu0 }
 0x182   : > { %13517 = vst [vmem:[#allocation17_spill] sm:$0xff] %v10766_v23  ;;  %8533 = vmatmul.mubr.msk.f32.gmra.mxu1 %vm225_vm1, %v3366_v27  ;;  %v1785_v49 = vadd.f32 %v8234_v40, %v10437_v24  ;;  %v3370_v24 = vld [vmem:[%s9218_s30 + $0xd8] sm:$0xff]  ;;  %v3371_v23 = vld [vmem:[%s9218_s30 + $0xe0] sm:$0xff] }
 0x183   : > { %8535 = vmatprep.mubr.msk.f32.mxu1 %vm225_vm1, %v3367_v52  ;;  %v10774_v35 = vpop.f32.mrf.mxu1  ;;  %v8287_v21 = vpop.f32.mrf.mxu0 }
 0x184   : > { %v10777_v12 = vadd.f32 %v8284_v15, %v1785_v49 }
 0x185   : > { %v8237_v18 = vpop.f32.mrf.mxu1  ;;  %v10779_v45 = vpop.f32.mrf.mxu0 }
 0x186   : > { %13518 = vst [vmem:[#allocation20_spill] sm:$0xff] %v10777_v12  ;;  %8536 = vmatmul.mubr.msk.f32.gmra.mxu1 %vm225_vm1, %v3368_v51  ;;  %v1787_v27 = vadd.f32 %v8237_v18, %v10457_v2  ;;  %v3372_v2 = vld [vmem:[%s9218_s30 + $0xe8] sm:$0xff]  ;;  %v3373_v12 = vld [vmem:[%s9218_s30 + $0xf0] sm:$0xff] }
 0x187   : > { %8538 = vmatprep.mubr.msk.f32.mxu1 %vm225_vm1, %v3369_v28  ;;  %v10785_v52 = vpop.f32.mrf.mxu1  ;;  %v8290_v40 = vpop.f32.mrf.mxu0 }
 0x188   : > { %v10788_v43 = vadd.f32 %v8287_v21, %v1787_v27 }
 0x189   : > { %v8240_v15 = vpop.f32.mrf.mxu1  ;;  %v10790_v49 = vpop.f32.mrf.mxu0 }
 0x18a   : > { %13519 = vst [vmem:[#allocation21_spill] sm:$0xff] %v10788_v43  ;;  %8539 = vmatmul.mubr.msk.f32.gmra.mxu1 %vm225_vm1, %v3370_v24  ;;  %v1789_v51 = vadd.f32 %v8240_v15, %v10475_v57  ;;  %v3374_v24 = vld [vmem:[%s9218_s30 + $0xf8] sm:$0xff] }
 0x18b   : > { %8541 = vmatprep.mubr.msk.f32.mxu1 %vm225_vm1, %v3371_v23  ;;  %v10796_v18 = vpop.f32.mrf.mxu1  ;;  %v8293_v28 = vpop.f32.mrf.mxu0 }
 0x18c   : > { %v10799_v60 = vadd.f32 %v8290_v40, %v1789_v51 }
 0x18d   : > { %v8243_v4 = vpop.f32.mrf.mxu1  ;;  %v10801_v21 = vpop.f32.mrf.mxu0 }
 0x18e   : > { %13520 = vst [vmem:[#allocation24_spill] sm:$0xff] %v10799_v60  ;;  %8542 = vmatmul.mubr.msk.f32.gmra.mxu1 %vm225_vm1, %v3372_v2  ;;  %v1791_v27 = vadd.f32 %v8243_v4, %v10491_v32 }
 0x18f   : > { %8544 = vmatprep.mubr.msk.f32.mxu1 %vm225_vm1, %v3373_v12  ;;  %v10807_v57 = vpop.f32.mrf.mxu1  ;;  %v8296_v23 = vpop.f32.mrf.mxu0 }
 0x190   : > { %v10809_v15 = vadd.f32 %v8293_v28, %v1791_v27 }
 0x191   : > { %v8246_v43 = vpop.f32.mrf.mxu1  ;;  %v10811_v41 = vpop.f32.mrf.mxu0 }
 0x192   : > { %13521 = vst [vmem:[#allocation28_spill] sm:$0xff] %v10809_v15  ;;  %13522 = vst [vmem:[#allocation30_spill] sm:$0xff] %v10811_v41  ;;  %8545 = vmatmul.mubr.msk.f32.gmra.mxu1 %vm225_vm1, %v3374_v24  ;;  %v1793_v40 = vadd.f32 %v8246_v43, %v10503_v50 }
 0x193   : > { %8599 = vmatprep.mubr.msk.f32.mxu1 %vm3252_vm5, %v10670_v26  ;;  %v10817_v51 = vpop.f32.mrf.mxu1  ;;  %v10819_v32 = vpop.f32.mrf.mxu0 }
 0x194   : > { %13523 = vst [vmem:[#allocation32_spill] sm:$0xff] %v10819_v32  ;;  %v10821_v4 = vadd.f32 %v8296_v23, %v1793_v40 }
 0x195   : > { %v10823_v12 = vpop.f32.mrf.mxu1  ;;  %v10825_v2 = vpop.f32.mrf.mxu0 }
 0x196   : > { %13524 = vst [vmem:[#allocation34_spill] sm:$0xff] %v10821_v4  ;;  %13525 = vst [vmem:[#allocation4_spill] sm:$0xff] %v10825_v2  ;;  %8600 = vmatmul.mubr.msk.f32.vlgmr.msra.gmra.mxu1 %vm3252_vm5, %v10672_v53 }
 0x197   : > { %v10829_v28 = vpop.f32.mrf.mxu1  ;;  %v10831_v27 = vpop.f32.mrf.mxu0 }
 0x198   : > { %13526 = vst [vmem:[#allocation5_spill] sm:$0xff] %v10831_v27 }
 0x199   : > { %v10833_v50 = vpop.f32.mrf.mxu1  ;;  %v10835_v26 = vpop.f32.mrf.mxu0 }
 0x19a   : > { %13527 = vst [vmem:[#allocation7_spill] sm:$0xff] %v10835_v26 }
 0x19b   : > { %v10837_v43 = vpop.f32.mrf.mxu1  ;;  %v10839_v24 = vpop.f32.mrf.mxu0 }
 0x19c   : > { %13528 = vst [vmem:[#allocation9_spill] sm:$0xff] %v10839_v24 }
 0x19d   : > { %v10841_v23 = vpop.f32.mrf.mxu1  ;;  %v10843_v40 = vpop.f32.mrf.mxu0 }
 0x19e   : > { %13529 = vst [vmem:[#allocation11_spill] sm:$0xff] %v10843_v40  ;;  %v7216_v40 = vld [vmem:[%s13229_s2 + $0x18] sm:$0xff] }
 0x19f   : > { %v10845_v4 = vpop.f32.mrf.mxu1  ;;  %v10847_v15 = vpop.f32.mrf.mxu0  ;;  %8697 = vmatprep.subr.mxu1 %v7216_v40 }
 0x1a0   : > { %13530 = vst [vmem:[#allocation14_spill] sm:$0xff] %v10845_v4  ;;  %13531 = vst [vmem:[#allocation15_spill] sm:$0xff] %v10847_v15  ;;  %8698 = vmatpush3.msra.mxu1 %v7216_v40 }
 0x1a1   : > { %v10849_v53 = vpop.f32.mrf.mxu1  ;;  %v10851_v60 = vpop.f32.mrf.mxu0 }
 0x1a2   : > { %13532 = vst [vmem:[#allocation18_spill] sm:$0xff] %v10849_v53  ;;  %13533 = vst [vmem:[#allocation19_spill] sm:$0xff] %v10851_v60 }
 0x1a3   : > { %v10853_v27 = vpop.f32.mrf.mxu1  ;;  %v10855_v2 = vpop.f32.mrf.mxu0 }
 0x1a4   : > { %13534 = vst [vmem:[#allocation22_spill] sm:$0xff] %v10853_v27  ;;  %13535 = vst [vmem:[#allocation23_spill] sm:$0xff] %v10855_v2  ;;  %v7249_v2 = vld [vmem:[%s13229_s2 + $0x20] sm:$0xff] }
 0x1a5   : > { %v10857_v26 = vpop.f32.mrf.mxu1  ;;  %v10859_v32 = vpop.f32.mrf.mxu0  ;;  %8747 = vmatprep.subr.mxu0 %v7249_v2 }
 0x1a6   : > { %13536 = vst [vmem:[#allocation26_spill] sm:$0xff] %v10857_v26  ;;  %13537 = vst [vmem:[#allocation29_spill] sm:$0xff] %v10859_v32 }
 0x1a7   : > { %v10864_v24 = vpop.f32.mrf.mxu1  ;;  %v10866_v15 = vpop.f32.mrf.mxu0 }
 0x1a8   : > { %13538 = vst [vmem:[#allocation31_spill] sm:$0xff] %v10864_v24  ;;  %13539 = vst [vmem:[#allocation33_spill] sm:$0xff] %v10866_v15 }
 0x1a9   : > { %v10868_v41 = vpop.f32.mrf.mxu1  ;;  %v10870_v60 = vpop.f32.mrf.mxu0 }
 0x1aa   : > { %13540 = vst [vmem:[#allocation25_spill] sm:$0xff] %v10868_v41  ;;  %13541 = vst [vmem:[#allocation8_spill] sm:$0xff] %v10870_v60 }
 0x1ab   : > { %v10875_v32 = vpop.f32.mrf.mxu1  ;;  %v10877_v26 = vpop.f32.mrf.mxu0 }
 0x1ac   : > { %13542 = vst [vmem:[#allocation35_spill] sm:$0xff] %v10875_v32  ;;  %13543 = vst [vmem:[#allocation10_spill] sm:$0xff] %v10877_v26 }
 0x1ad   : > { %v10879_v27 = vpop.f32.mrf.mxu1  ;;  %v10881_v53 = vpop.f32.mrf.mxu0 }
 0x1ae   : > { %13544 = vst [vmem:[#allocation27_spill] sm:$0xff] %v10879_v27  ;;  %13545 = vst [vmem:[#allocation16_spill] sm:$0xff] %v10881_v53 }
 0x1af   : > { %v10883_v24 = vpop.f32.mrf.mxu1  ;;  %v10885_v40 = vpop.f32.mrf.mxu0 }
 0x1b0   : > { %13546 = vst [vmem:[#allocation12_spill] sm:$0xff] %v10883_v24  ;;  %13547 = vst [vmem:[#allocation6_spill] sm:$0xff] %v10885_v40 }
 0x1b1   : > { %v10887_v15 = vpop.f32.mrf.mxu1  ;;  %v10889_v60 = vpop.f32.mrf.mxu0 }
 0x1b2   : > { %13548 = vst [vmem:[#allocation13_spill] sm:$0xff] %v10887_v15  ;;  %13549 = vst [vmem:[#allocation36_spill] sm:$0xff] %v10889_v60 }
 0x1b3   : > { %v10891_v41 = vpop.f32.mrf.mxu1  ;;  %v10893_v4 = vpop.f32.mrf.mxu0 }
 0x1b4   : > { %13550 = vst [vmem:[#allocation37_spill] sm:$0xff] %v10891_v41  ;;  %13551 = vst [vmem:[#allocation38_spill] sm:$0xff] %v10893_v4 }
 0x1b5   : > { %v10895_v2 = vpop.f32.mrf.mxu1  ;;  %v10897_v32 = vpop.f32.mrf.mxu0 }
 0x1b6   : > { %13552 = vst [vmem:[#allocation46_spill] sm:$0xff] %v10895_v2  ;;  %13553 = vst [vmem:[#allocation47_spill] sm:$0xff] %v10897_v32 }
 0x1b7   : > { %v10899_v26 = vpop.f32.mrf.mxu1  ;;  %v10901_v27 = vpop.f32.mrf.mxu0 }
 0x1b8   : > { %13554 = vst [vmem:[#allocation48_spill] sm:$0xff] %v10899_v26  ;;  %13555 = vst [vmem:[#allocation49_spill] sm:$0xff] %v10901_v27 }
 0x1b9   : > { %v10903_v53 = vpop.f32.mrf.mxu1  ;;  %v10905_v24 = vpop.f32.mrf.mxu0 }
 0x1ba   : > { %13556 = vst [vmem:[#allocation50_spill] sm:$0xff] %v10903_v53  ;;  %13557 = vst [vmem:[#allocation51_spill] sm:$0xff] %v10905_v24 }
 0x1bb   : > { %v10907_v40 = vpop.f32.mrf.mxu1  ;;  %v10909_v15 = vpop.f32.mrf.mxu0 }
 0x1bc   : > { %13558 = vst [vmem:[#allocation52_spill] sm:$0xff] %v10907_v40  ;;  %13559 = vst [vmem:[#allocation53_spill] sm:$0xff] %v10909_v15 }
 0x1bd   : > { %v10911_v60 = vpop.f32.mrf.mxu1  ;;  %v10913_v41 = vpop.f32.mrf.mxu0 }
 0x1be   : > { %13560 = vst [vmem:[#allocation54_spill] sm:$0xff] %v10911_v60  ;;  %13561 = vst [vmem:[#allocation55_spill] sm:$0xff] %v10913_v41 }
 0x1bf   : > { %v10915_v4 = vpop.f32.mrf.mxu1  ;;  %v10917_v2 = vpop.f32.mrf.mxu0 }
 0x1c0   : > { %13562 = vst [vmem:[#allocation56_spill] sm:$0xff] %v10915_v4  ;;  %13563 = vst [vmem:[#allocation57_spill] sm:$0xff] %v10917_v2  ;;  %v1512_v2 = vadd.f32 %v10396_v46, %v10408_v37  ;;  %v1524_v46 = vadd.f32 %v10497_v39, %v10506_v29  ;;  %v2034_v37 = vadd.f32 %v10508_v36, %v10518_v14 }
 0x1c1   : > { %v10919_v32 = vpop.f32.mrf.mxu1  ;;  %v10921_v26 = vpop.f32.mrf.mxu0  ;;  %v2042_v39 = vadd.f32 %v10674_v33, %v10690_v42  ;;  %v2044_v29 = vadd.f32 %v10694_v25, %v10705_v5  ;;  %v2046_v36 = vadd.f32 %v10707_v17, %v10717_v55 }
 0x1c2   : > { %13564 = vst [vmem:[#allocation58_spill] sm:$0xff] %v10921_v26  ;;  %v1514_v26 = vadd.f32 %v10414_v61, %v10424_v38  ;;  %v2036_v61 = vadd.f32 %v10520_v58, %v10534_v34  ;;  %v1780_v38 = vadd.f32 %v10752_v48, %v1512_v2 }
 0x1c3   : > { %v10923_v27 = vpop.f32.mrf.mxu1  ;;  %v10925_v53 = vpop.f32.mrf.mxu0 }
 0x1c4   : > { %13565 = vst [vmem:[#allocation59_spill] sm:$0xff] %v10925_v53  ;;  %v1516_v53 = vadd.f32 %v10430_v16, %v10440_v56  ;;  %v1782_v16 = vadd.f32 %v10763_v47, %v1514_v26  ;;  %v10993_v33 = vadd.f32 %v10746_v0, %v1780_v38  ;;  %v13571_v0 = vld [vmem:[#allocation14_spill] sm:$0xff] }
 0x1c5   : > { %v10927_v24 = vpop.f32.mrf.mxu1  ;;  %v10929_v40 = vpop.f32.mrf.mxu0  ;;  %v13573_v47 = vld [vmem:[#allocation18_spill] sm:$0xff] }
 0x1c6   : > { %13566 = vst [vmem:[#allocation60_spill] sm:$0xff] %v10927_v24  ;;  %13567 = vst [vmem:[#allocation61_spill] sm:$0xff] %v10929_v40  ;;  %v1518_v40 = vadd.f32 %v10448_v7, %v10460_v20  ;;  %v1784_v56 = vadd.f32 %v10774_v35, %v1516_v53  ;;  %v10996_v42 = vadd.f32 %v10757_v59, %v1782_v16  ;;  %v13572_v59 = vld [vmem:[#allocation39_spill] sm:$0xff] }
 0x1c7   : > { %v10931_v15 = vpop.f32.mrf.mxu1  ;;  %v10933_v60 = vpop.f32.mrf.mxu0  ;;  %v13585_v16 = vld [vmem:[#allocation7_spill] sm:$0xff] }
 0x1c8   : > { %13568 = vst [vmem:[#allocation62_spill] sm:$0xff] %v10931_v15  ;;  %13569 = vst [vmem:[#allocation63_spill] sm:$0xff] %v10933_v60  ;;  %v1520_v60 = vadd.f32 %v10466_v19, %v10478_v11  ;;  %v2038_v19 = vadd.f32 %v10608_v31, %v10656_v1  ;;  %v2040_v11 = vadd.f32 %v10658_v22, %v10668_v62 }
 0x1c9   : > { %v10935_v41 = vpop.f32.mrf.mxu1  ;;  %v10937_v4 = vpop.f32.mrf.mxu0  ;;  %v2048_v31 = vadd.f32 %v10719_v8, %v10729_v9  ;;  %v2050_v1 = vadd.f32 %v10734_v3, %v10744_v44  ;;  %v1792_v22 = vadd.f32 %v10817_v51, %v1524_v46  ;;  %v2306_v62 = vadd.f32 %v10823_v12, %v10515_v10 }
 0x1ca   : > { %13570 = vst [vmem:[#allocation64_spill] sm:$0xff] %v10937_v4  ;;  %v1522_v4 = vadd.f32 %v10484_v63, %v10494_v30  ;;  %v1786_v63 = vadd.f32 %v10785_v52, %v1518_v40  ;;  %v1788_v30 = vadd.f32 %v10796_v18, %v1520_v60  ;;  %v10999_v25 = vadd.f32 %v10768_v13, %v1784_v56  ;;  %v13574_v52 = vld [vmem:[#allocation30_spill] sm:$0xff]  ;;  %v13583_v40 = vld [vmem:[#allocation35_spill] sm:$0xff] }
 0x1cb   : > { %v10947_v24 = vpop.f32.mrf.mxu1  ;;  %v10949_v15 = vpop.f32.mrf.mxu0  ;;  %v2305_v60 = vadd.f32 %v10829_v28, %v2034_v37  ;;  %v2308_v8 = vadd.f32 %v10833_v50, %v10531_v54  ;;  %v2307_v9 = vadd.f32 %v10837_v43, %v2036_v61  ;;  %v2310_v44 = vadd.f32 %v10841_v23, %v10653_v6  ;;  %v13575_v54 = vld [vmem:[#allocation32_spill] sm:$0xff]  ;;  %v13580_v50 = vld [vmem:[#allocation31_spill] sm:$0xff]  ;;  %v13581_v43 = vld [vmem:[#allocation41_spill] sm:$0xff] }
 0x1cc   : > { %v1790_v14 = vadd.f32 %v10807_v57, %v1522_v4  ;;  %v11007_v55 = vadd.f32 %v10779_v45, %v1786_v63  ;;  %v11010_v10 = vadd.f32 %v10790_v49, %v1788_v30  ;;  %v2309_v48 = vadd.f32 %v13571_v0, %v2038_v19  ;;  %v13576_v57 = vld [vmem:[#allocation22_spill] sm:$0xff]  ;;  %v13579_v28 = vld [vmem:[#allocation4_spill] sm:$0xff]  ;;  %v13582_v23 = vld [vmem:[#allocation25_spill] sm:$0xff] }
 0x1cd   : > { %v10964_v7 = vpop.f32.mrf.mxu1  ;;  %v10966_v20 = vpop.f32.mrf.mxu0  ;;  %v2312_v13 = vadd.f32 %v13573_v47, %v13572_v59  ;;  %v11026_v49 = vadd.f32 %v13574_v52, %v1792_v22  ;;  %v2574_v18 = vadd.f32 %v13575_v54, %v2306_v62  ;;  %v2311_v51 = vadd.f32 %v13576_v57, %v2040_v11  ;;  %v13578_v4 = vld [vmem:[#allocation26_spill] sm:$0xff]  ;;  %v13584_v61 = vld [vmem:[#allocation5_spill] sm:$0xff]  ;;  %v13587_v11 = vld [vmem:[#allocation27_spill] sm:$0xff] }
 0x1ce   : > { %v11016_v3 = vadd.f32 %v10801_v21, %v1790_v14  ;;  %v13577_v21 = vld [vmem:[#allocation40_spill] sm:$0xff]  ;;  %v2573_v6 = vadd.f32 %v13579_v28, %v2305_v60  ;;  %v2313_v26 = vadd.f32 %v13580_v50, %v2042_v39  ;;  %v2316_v53 = vadd.f32 %v13582_v23, %v13581_v43  ;;  %v13586_v19 = vld [vmem:[#allocation42_spill] sm:$0xff]  ;;  %v13588_v14 = vld [vmem:[#allocation9_spill] sm:$0xff] }
 0x1cf   : > { %v10981_v58 = vpop.f32.mrf.mxu1  ;;  %v10983_v34 = vpop.f32.mrf.mxu0  ;;  %v2314_v12 = vadd.f32 %v13578_v4, %v13577_v21  ;;  %v2315_v2 = vadd.f32 %v13583_v40, %v2044_v29  ;;  %v2576_v38 = vadd.f32 %v13584_v61, %v2308_v8  ;;  %v2575_v56 = vadd.f32 %v13585_v16, %v2307_v9  ;;  %v13589_v62 = vld [vmem:[#allocation11_spill] sm:$0xff]  ;;  %v13591_v59 = vld [vmem:[#allocation12_spill] sm:$0xff]  ;;  %v13598_v23 = vld [vmem:[#allocation13_spill] sm:$0xff] }
 0x1d0   : > { %v2318_v63 = vadd.f32 %v13587_v11, %v13586_v19  ;;  %v2578_v22 = vadd.f32 %v13588_v14, %v2310_v44  ;;  %v2577_v60 = vadd.f32 %v13589_v62, %v2309_v48  ;;  %v13590_v39 = vld [vmem:[#allocation15_spill] sm:$0xff]  ;;  %v2317_v47 = vadd.f32 %v13591_v59, %v2046_v36  ;;  %v11048_v29 = vld [vmem:[%s13231_s4] ss:$0 sm:$0xff]  ;;  %v13594_v48 = vld [vmem:[#allocation29_spill] sm:$0xff] }
 0x1d1   : > { %v11002_v5 = vpop.f32.mrf.mxu1  ;;  %v11004_v17 = vpop.f32.mrf.mxu0  ;;  %v2580_v0 = vadd.f32 %v13590_v39, %v2312_v13  ;;  %v13592_v9 = vld [vmem:[#allocation19_spill] sm:$0xff]  ;;  %v11057_v4 = vadd.f32 %v13594_v48, %v2313_v26  ;;  %v13595_v13 = vld [vmem:[#allocation33_spill] sm:$0xff]  ;;  %v13596_v28 = vld [vmem:[#allocation8_spill] sm:$0xff] }
 0x1d2   : > { %v11051_v54 = vadd.f32 %v13592_v9, %v2311_v51  ;;  %v13593_v57 = vld [vmem:[#allocation23_spill] sm:$0xff]  ;;  %v11060_v36 = vadd.f32 %v13595_v13, %v2316_v53  ;;  %v11063_v50 = vadd.f32 %v13596_v28, %v2315_v2  ;;  %v11070_v51 = vld [vmem:[%s13231_s4 + $0x1] ss:$0 sm:$0xff]  ;;  %v13601_v19 = vld [vmem:[#allocation37_spill] sm:$0xff] }
 0x1d3   : > { %v11023_v35 = vpop.f32.mrf.mxu1  ;;  %v8451_v45 = vpop.f32.mrf.mxu0  ;;  %v13597_v43 = vld [vmem:[#allocation43_spill] sm:$0xff]  ;;  %v13600_v16 = vld [vmem:[#allocation16_spill] sm:$0xff]  ;;  %v2319_v11 = vadd.f32 %v13601_v19, %v2048_v31  ;;  %v13603_v14 = vld [vmem:[#allocation46_spill] sm:$0xff] }
 0x1d4   : > { %v2320_v40 = vadd.f32 %v13598_v23, %v13597_v43  ;;  %v11077_v2 = vadd.f32 %v13600_v16, %v2317_v47  ;;  %v13604_v39 = vld [vmem:[#allocation48_spill] sm:$0xff]  ;;  %v13606_v47 = vld [vmem:[#allocation45_spill] sm:$0xff]  ;;  %v13610_v23 = vld [vmem:[#allocation54_spill] sm:$0xff] }
 0x1d5   : > { %v8401_v46 = vpop.f32.mrf.mxu1  ;;  %v2957_v37 = vpop.f32.mrf.mxu0  ;;  %v2321_v59 = vadd.f32 %v13604_v39, %v2050_v1  ;;  %v13608_v31 = vld [vmem:[#allocation52_spill] sm:$0xff]  ;;  %v13609_v43 = vld [vmem:[#allocation17_spill] sm:$0xff] }
 0x1d6   : > { %v2846_v30 = vadd.f32 %v8401_v46, %v2574_v18  ;;  %v11054_v18 = vadd.f32 %v13593_v57, %v2314_v12  ;;  %v2323_v28 = vadd.f32 %v13608_v31, %v10993_v33  ;;  %v2326_v1 = vadd.f32 %v13610_v23, %v13609_v43 }
 0x1d7   : > { %v2686_v8 = vpop.f32.mrf.mxu1  ;;  %v8454_v52 = vpop.f32.mrf.mxu0 }
 0x1d8   : > { %v3117_v44 = vadd.f32 %v8451_v45, %v2846_v30  ;;  %v2845_v21 = vadd.f32 %v2686_v8, %v2573_v6  ;;  %v13599_v6 = vld [vmem:[#allocation10_spill] sm:$0xff]  ;;  %v13602_v30 = vld [vmem:[#allocation44_spill] sm:$0xff] }
 0x1d9   : > { %v8404_v12 = vpop.f32.mrf.mxu1  ;;  %v2967_v45 = vpop.f32.mrf.mxu0  ;;  %v11073_v46 = vadd.f32 %v13599_v6, %v2318_v63  ;;  %v2322_v62 = vadd.f32 %v13603_v14, %v13602_v30  ;;  %v13613_v30 = vld [vmem:[#allocation47_spill] sm:$0xff] }
 0x1da   : > { %v3153_v26 = vmul.f32 %v11048_v29, %v3117_v44  ;;  %v3116_v53 = vadd.f32 %v2957_v37, %v2845_v21  ;;  %v2848_v61 = vadd.f32 %v8404_v12, %v2576_v38  ;;  %v13605_v37 = vld [vmem:[#allocation6_spill] sm:$0xff]  ;;  %v11103_v14 = vadd.f32 %v13613_v30, %v2321_v59  ;;  %v13619_v30 = vld [vmem:[#allocation21_spill] sm:$0xff] }
 0x1db   : > { %v2696_v8 = vpop.f32.mrf.mxu1  ;;  %v8457_v9 = vpop.f32.mrf.mxu0  ;;  %v11086_v38 = vadd.f32 %v13605_v37, %v2320_v40  ;;  %v13607_v21 = vld [vmem:[#allocation50_spill] sm:$0xff]  ;;  %v13615_v37 = vld [vmem:[#allocation51_spill] sm:$0xff] }
 0x1dc   : > { %v3189_v57 = vadd.f32 %v11070_v51, %v3153_v26  ;;  %v3152_v63 = vmul.f32 %v11048_v29, %v3116_v53  ;;  %v3119_v48 = vadd.f32 %v8454_v52, %v2848_v61  ;;  %v2847_v44 = vadd.f32 %v2696_v8, %v2575_v56  ;;  %v13611_v53 = vld [vmem:[#allocation36_spill] sm:$0xff]  ;;  %v13612_v61 = vld [vmem:[#allocation38_spill] sm:$0xff] }
 0x1dd   : > { %v2324_v13 = vadd.f32 %v13607_v21, %v13606_v47  ;;  %v8407_v12 = vpop.f32.mrf.mxu1  ;;  %v2977_v6 = vpop.f32.mrf.mxu0  ;;  %v11097_v40 = vadd.f32 %v13611_v53, %v2319_v11  ;;  %v11100_v19 = vadd.f32 %v13612_v61, %v2322_v62  ;;  %v11112_v62 = vadd.f32 %v13615_v37, %v2323_v28  ;;  %v13616_v47 = vld [vmem:[#allocation53_spill] sm:$0xff]  ;;  %v13623_v37 = vld [vmem:[#allocation55_spill] sm:$0xff] }
 0x1de   : > { %v3221_v16 = vmax.f32 %v3189_v57, 0.0  ;;  %v3188_v26 = vadd.f32 %v11070_v51, %v3152_v63  ;;  %v3155_v52 = vmul.f32 %v11048_v29, %v3119_v48  ;;  %v3118_v56 = vadd.f32 %v2967_v45, %v2847_v44  ;;  %v13614_v44 = vld [vmem:[#allocation49_spill] sm:$0xff] }
 0x1df   : > { %v2850_v33 = vadd.f32 %v8407_v12, %v2578_v22  ;;  %v2706_v39 = vpop.f32.mrf.mxu1  ;;  %v8460_v8 = vpop.f32.mrf.mxu0  ;;  %v11109_v11 = vadd.f32 %v13614_v44, %v2324_v13  ;;  %v11115_v59 = vadd.f32 %v13616_v47, %v2326_v1  ;;  %v2327_v1 = vadd.f32 %v10923_v27, %v10999_v25  ;;  %v13624_v47 = vld [vmem:[#allocation57_spill] sm:$0xff] }
 0x1e0   : > { %3310 = vst.msk [vmem:[#allocation3 + $0x21] sm:$0xff] %vm3252_vm5, %v3221_v16  ;;  %v3220_v57 = vmax.f32 %v3188_v26, 0.0  ;;  %v3191_v63 = vadd.f32 %v11070_v51, %v3155_v52  ;;  %v3154_v48 = vmul.f32 %v11048_v29, %v3118_v56  ;;  %v2849_v45 = vadd.f32 %v2706_v39, %v2577_v60  ;;  %v13617_v60 = vld [vmem:[#allocation56_spill] sm:$0xff] }
 0x1e1   : > { %v3121_v22 = vadd.f32 %v8457_v9, %v2850_v33  ;;  %v8410_v21 = vpop.f32.mrf.mxu1  ;;  %v2987_v31 = vpop.f32.mrf.mxu0  ;;  %v2325_v13 = vadd.f32 %v13617_v60, %v10996_v42  ;;  %v13618_v26 = vld [vmem:[#allocation20_spill] sm:$0xff] }
 0x1e2   : > { %3309 = vst.msk [vmem:[#allocation3 + $0x19] sm:$0xff] %vm3252_vm5, %v3220_v57  ;;  %v3223_v43 = vmax.f32 %v3191_v63, 0.0  ;;  %v3190_v23 = vadd.f32 %v11070_v51, %v3154_v48  ;;  %v3120_v12 = vadd.f32 %v2977_v6, %v2849_v45  ;;  %v2852_v16 = vadd.f32 %v8410_v21, %v2580_v0  ;;  %v13620_v42 = vld [vmem:[#allocation60_spill] sm:$0xff]  ;;  %v13625_v21 = vld [vmem:[#allocation58_spill] sm:$0xff] }
 0x1e3   : > { %v2328_v28 = vadd.f32 %v10919_v32, %v13618_v26  ;;  %v3157_v9 = vmul.f32 %v11048_v29, %v3121_v22  ;;  %v2716_v52 = vpop.f32.mrf.mxu1  ;;  %v8463_v56 = vpop.f32.mrf.mxu0  ;;  %v2330_v33 = vadd.f32 %v13620_v42, %v13619_v30  ;;  %v13621_v32 = vld [vmem:[#allocation62_spill] sm:$0xff]  ;;  %v13622_v57 = vld [vmem:[#allocation24_spill] sm:$0xff] }
 0x1e4   : > { %3312 = vst.msk [vmem:[#allocation3 + $0x39] sm:$0xff] %vm3252_vm5, %v3223_v43  ;;  %v3222_v53 = vmax.f32 %v3190_v23, 0.0  ;;  %v3156_v61 = vmul.f32 %v11048_v29, %v3120_v12  ;;  %v3123_v6 = vadd.f32 %v8460_v8, %v2852_v16  ;;  %v2851_v0 = vadd.f32 %v2716_v52, %v11051_v54 }
 0x1e5   : > { %v2329_v39 = vadd.f32 %v13621_v32, %v11007_v55  ;;  %v2332_v27 = vadd.f32 %v10935_v41, %v13622_v57  ;;  %v3193_v25 = vadd.f32 %v11070_v51, %v3157_v9  ;;  %v8413_v63 = vpop.f32.mrf.mxu1  ;;  %v2997_v48 = vpop.f32.mrf.mxu0  ;;  %v11143_v55 = vld [vmem:[%s13229_s2 + $0x28] sm:$0xff]  ;;  %v11146_v41 = vadd.f32 %v13623_v37, %v2325_v13  ;;  %v13626_v13 = vld [vmem:[#allocation59_spill] sm:$0xff] }
 0x1e6   : > { %3311 = vst.msk [vmem:[#allocation3 + $0x31] sm:$0xff] %vm3252_vm5, %v3222_v53  ;;  %v3192_v45 = vadd.f32 %v11070_v51, %v3156_v61  ;;  %v3159_v8 = vmul.f32 %v11048_v29, %v3123_v6  ;;  %v3122_v54 = vadd.f32 %v2987_v31, %v2851_v0  ;;  %v2854_v44 = vadd.f32 %v8413_v63, %v11054_v18 }
 0x1e7   : > { %v11149_v22 = vadd.f32 %v13624_v47, %v2328_v28  ;;  %v11152_v43 = vadd.f32 %v13625_v21, %v2327_v1  ;;  %v3225_v23 = vmax.f32 %v3193_v25, 0.0  ;;  %v2726_v12 = vpop.f32.mrf.mxu1  ;;  %v8466_v16 = vpop.f32.mrf.mxu0  ;;  %8797 = vmatprep.subr.mxu1 %v11143_v55  ;;  %v11157_v9 = vld [vmem:[#allocation3 + $0x28] sm:$0x3]  ;;  %v11160_v52 = vadd.f32 %v13626_v13, %v2330_v33  ;;  %v13627_v28 = vld [vmem:[#allocation61_spill] sm:$0xff] }
 0x1e8   : > { %v3224_v18 = vmax.f32 %v3192_v45, 0.0  ;;  %v3195_v31 = vadd.f32 %v11070_v51, %v3159_v8  ;;  %v3158_v60 = vmul.f32 %v11048_v29, %v3122_v54  ;;  %v3125_v26 = vadd.f32 %v8463_v56, %v2854_v44  ;;  %v13628_v1 = vld [vmem:[#allocation63_spill] sm:$0xff] }
 0x1e9   : > { %v11163_v53 = vadd.f32 %v13627_v28, %v2329_v39  ;;  %v11166_v61 = vadd.f32 %v13628_v1, %v2332_v27  ;;  %3314 = vst.msk [vmem:[#allocation3 + $0x51] sm:$0xff] %vm3252_vm5, %v3225_v23  ;;  %v2853_v6 = vadd.f32 %v2726_v12, %v11057_v4  ;;  %v8416_v0 = vpop.f32.mrf.mxu1  ;;  %v11170_v30 = vld [vmem:[#allocation3 + $0x18] sm:$0xff]  ;;  %v3007_v42 = vpop.f32.mrf.mxu0  ;;  %v11172_v56 = vld [vmem:[#allocation3 + $0x20] sm:$0xff]  ;;  %v3885_v8 = vrot.slane %v11157_v9, 1 }
 0x1ea   : > { %3313 = vst.msk [vmem:[#allocation3 + $0x49] sm:$0xff] %vm3252_vm5, %v3224_v18  ;;  %v3227_v33 = vmax.f32 %v3195_v31, 0.0  ;;  %v3194_v32 = vadd.f32 %v11070_v51, %v3158_v60  ;;  %v3161_v39 = vmul.f32 %v11048_v29, %v3125_v26  ;;  %v2856_v57 = vadd.f32 %v8416_v0, %v11060_v36  ;;  %8602 = vmatprep.mubr.msk.f32.mxu1 %vm3252_vm5, %v11170_v30 }
 0x1eb   : > { %v3124_v27 = vadd.f32 %v2997_v48, %v2853_v6  ;;  %v3882_v4 = vrot.slane %v11170_v30, 1  ;;  %v2736_v25 = vpop.f32.mrf.mxu1  ;;  %8603 = vmatmul.mubr.msk.f32.gmra.mxu1 %vm3252_vm5, %v11172_v56  ;;  %v8469_v63 = vpop.f32.mrf.mxu0  ;;  %v3883_v45 = vrot.slane %v11172_v56, 1  ;;  %v11188_v48 = vld [vmem:[#allocation3 + $0x40] sm:$0x3]  ;;  %v2331_v47 = vadd.f32 %v10947_v24, %v11010_v10 }
 0x1ec   : > { %3316 = vst.msk [vmem:[#allocation3 + $0x69] sm:$0xff] %vm3252_vm5, %v3227_v33  ;;  %v3226_v54 = vmax.f32 %v3194_v32, 0.0  ;;  %v3197_v36 = vadd.f32 %v11070_v51, %v3161_v39  ;;  %v3127_v44 = vadd.f32 %v8466_v16, %v2856_v57  ;;  %v2855_v37 = vadd.f32 %v2736_v25, %v11063_v50 }
 0x1ed   : > { %v3160_v21 = vmul.f32 %v11048_v29, %v3124_v27  ;;  %v8419_v23 = vpop.f32.mrf.mxu1  ;;  %v11194_v12 = vsel %vm451_vm3, %v3882_v4, %v3883_v45  ;;  %v11197_v18 = vsel %vm451_vm3, %v3883_v45, %v3885_v8  ;;  %v11199_v31 = vld [vmem:[#allocation3 + $0x30] sm:$0xff]  ;;  %v3017_v60 = vpop.f32.mrf.mxu0  ;;  %v11201_v16 = vld [vmem:[#allocation3 + $0x38] sm:$0xff]  ;;  %v3890_v0 = vrot.slane %v11188_v48, 1 }
 0x1ee   : > { %3315 = vst.msk [vmem:[#allocation3 + $0x61] sm:$0xff] %vm3252_vm5, %v3226_v54  ;;  %v3229_v50 = vmax.f32 %v3197_v36, 0.0  ;;  %v3163_v26 = vmul.f32 %v11048_v29, %v3127_v44  ;;  %v3126_v24 = vadd.f32 %v3007_v42, %v2855_v37  ;;  %v2858_v10 = vadd.f32 %v8419_v23, %v11073_v46  ;;  %8552 = vmatprep.mubr.msk.f32.mxu0 %vm3252_vm5, %v11194_v12  ;;  %v13629_v27 = vld [vmem:[#allocation64_spill] sm:$0xff] }
 0x1ef   : > { %8605 = vmatprep.mubr.msk.f32.mxu1 %vm3252_vm5, %v11199_v31  ;;  %v3196_v13 = vadd.f32 %v11070_v51, %v3160_v21  ;;  %8553 = vmatmul.mubr.msk.f32.gmra.mxu0 %vm3252_vm5, %v11197_v18  ;;  %v2746_v28 = vpop.f32.mrf.mxu1  ;;  %v8472_v1 = vpop.f32.mrf.mxu0  ;;  %v3887_v6 = vrot.slane %v11199_v31, 1  ;;  %v3888_v46 = vrot.slane %v11201_v16, 1  ;;  %v11225_v4 = vadd.f32 %v13629_v27, %v2331_v47 }
 0x1f0   : > { %8606 = vmatmul.mubr.msk.f32.gmra.mxu1 %vm3252_vm5, %v11201_v16  ;;  %3318 = vst.msk [vmem:[#allocation3 + $0x81] sm:$0xff] %vm3252_vm5, %v3229_v50  ;;  %v3199_v42 = vadd.f32 %v11070_v51, %v3163_v26  ;;  %v3162_v33 = vmul.f32 %v11048_v29, %v3126_v24  ;;  %v3129_v32 = vadd.f32 %v8469_v63, %v2858_v10  ;;  %v11222_v57 = vld [vmem:[#allocation3 + $0x58] sm:$0x3] }
 0x1f1   : > { %v2857_v39 = vadd.f32 %v2746_v28, %v11077_v2  ;;  %v3228_v25 = vmax.f32 %v3196_v13, 0.0  ;;  %v8422_v45 = vpop.f32.mrf.mxu1  ;;  %v11228_v8 = vsel %vm451_vm3, %v3887_v6, %v3888_v46  ;;  %v11231_v54 = vsel %vm451_vm3, %v3888_v46, %v3890_v0  ;;  %v11233_v36 = vld [vmem:[#allocation3 + $0x48] sm:$0xff]  ;;  %v3027_v44 = vpop.f32.mrf.mxu0  ;;  %v11235_v37 = vld [vmem:[#allocation3 + $0x50] sm:$0xff] }
 0x1f2   : > { %v3231_v63 = vmax.f32 %v3199_v42, 0.0  ;;  %v3198_v2 = vadd.f32 %v11070_v51, %v3162_v33  ;;  %v3165_v21 = vmul.f32 %v11048_v29, %v3129_v32  ;;  %8555 = vmatprep.mubr.msk.f32.mxu0 %vm3252_vm5, %v11228_v8  ;;  %8608 = vmatprep.mubr.msk.f32.mxu1 %vm3252_vm5, %v11233_v36  ;;  %v2860_v23 = vadd.f32 %v8422_v45, %v11086_v38  ;;  %v13630_v0 = vld [vmem:[#allocation28_spill] sm:$0xff] }
 0x1f3   : > { %v3128_v47 = vadd.f32 %v3017_v60, %v2857_v39  ;;  %3317 = vst.msk [vmem:[#allocation3 + $0x79] sm:$0xff] %vm3252_vm5, %v3228_v25  ;;  %8556 = vmatmul.mubr.msk.f32.gmra.mxu0 %vm3252_vm5, %v11231_v54  ;;  %v2756_v50 = vpop.f32.mrf.mxu1  ;;  %v8475_v26 = vpop.f32.mrf.mxu0  ;;  %v3892_v60 = vrot.slane %v11233_v36, 1  ;;  %v3893_v24 = vrot.slane %v11235_v37, 1  ;;  %v3895_v10 = vrot.slane %v11222_v57, 1  ;;  %v11256_v46 = vld [vmem:[#allocation3 + $0x70] sm:$0x3] }
 0x1f4   : > { %8609 = vmatmul.mubr.msk.f32.gmra.mxu1 %vm3252_vm5, %v11235_v37  ;;  %3320 = vst.msk [vmem:[#allocation3 + $0x99] sm:$0xff] %vm3252_vm5, %v3231_v63  ;;  %v3230_v13 = vmax.f32 %v3198_v2, 0.0  ;;  %v3201_v28 = vadd.f32 %v11070_v51, %v3165_v21  ;;  %v2859_v6 = vadd.f32 %v2756_v50, %v11097_v40  ;;  %v2334_v42 = vadd.f32 %v10964_v7, %v13630_v0 }
 0x1f5   : > { %v3164_v38 = vmul.f32 %v11048_v29, %v3128_v47  ;;  %v3131_v33 = vadd.f32 %v8472_v1, %v2860_v23  ;;  %v8425_v32 = vpop.f32.mrf.mxu1  ;;  %v11261_v39 = vsel %vm451_vm3, %v3892_v60, %v3893_v24  ;;  %v11264_v27 = vsel %vm451_vm3, %v3893_v24, %v3895_v10  ;;  %v11266_v25 = vld [vmem:[#allocation3 + $0x60] sm:$0xff]  ;;  %v3037_v45 = vpop.f32.mrf.mxu0  ;;  %v11268_v63 = vld [vmem:[#allocation3 + $0x68] sm:$0xff] }
 0x1f6   : > { %13631 = vst [vmem:[#allocation14_spill] sm:$0xff] %v11264_v27  ;;  %3319 = vst.msk [vmem:[#allocation3 + $0x91] sm:$0xff] %vm3252_vm5, %v3230_v13  ;;  %v3233_v40 = vmax.f32 %v3201_v28, 0.0  ;;  %v3130_v21 = vadd.f32 %v3027_v44, %v2859_v6  ;;  %v2862_v7 = vadd.f32 %v8425_v32, %v11100_v19  ;;  %8558 = vmatprep.mubr.msk.f32.mxu0 %vm3252_vm5, %v11261_v39  ;;  %8611 = vmatprep.mubr.msk.f32.mxu1 %vm3252_vm5, %v11266_v25 }
 0x1f7   : > { %v3200_v2 = vadd.f32 %v11070_v51, %v3164_v38  ;;  %v3167_v1 = vmul.f32 %v11048_v29, %v3131_v33  ;;  %8559 = vmatmul.mubr.msk.f32.gmra.mxu0 %vm3252_vm5, %v11264_v27  ;;  %v2766_v47 = vpop.f32.mrf.mxu1  ;;  %v8478_v23 = vpop.f32.mrf.mxu0  ;;  %v3897_v44 = vrot.slane %v11266_v25, 1  ;;  %v3898_v19 = vrot.slane %v11268_v63, 1  ;;  %v11288_v28 = vld [vmem:[#allocation3 + $0x88] sm:$0x3] }
 0x1f8   : > { %8612 = vmatmul.mubr.msk.f32.gmra.mxu1 %vm3252_vm5, %v11268_v63  ;;  %v3900_v50 = vrot.slane %v11256_v46, 1  ;;  %3322 = vst.msk [vmem:[#allocation3 + $0xb1] sm:$0xff] %vm3252_vm5, %v3233_v40  ;;  %v3166_v24 = vmul.f32 %v11048_v29, %v3130_v21  ;;  %v3133_v10 = vadd.f32 %v8475_v26, %v2862_v7  ;;  %v2861_v13 = vadd.f32 %v2766_v47, %v11103_v14 }
 0x1f9   : > { %v3232_v60 = vmax.f32 %v3200_v2, 0.0  ;;  %v11291_v38 = vadd.f32 %v10949_v15, %v2334_v42  ;;  %v3203_v6 = vadd.f32 %v11070_v51, %v3167_v1  ;;  %v8428_v0 = vpop.f32.mrf.mxu1  ;;  %v11295_v33 = vsel %vm451_vm3, %v3897_v44, %v3898_v19  ;;  %v3047_v40 = vpop.f32.mrf.mxu0 }
 0x1fa   : > { %13632 = vst [vmem:[#allocation39_spill] sm:$0xff] %v11295_v33  ;;  %v11298_v32 = vsel %vm451_vm3, %v3898_v19, %v3900_v50  ;;  %v3202_v26 = vadd.f32 %v11070_v51, %v3166_v24  ;;  %v3169_v14 = vmul.f32 %v11048_v29, %v3133_v10  ;;  %v3132_v2 = vadd.f32 %v3037_v45, %v2861_v13  ;;  %v11306_v42 = vld [vmem:[#allocation3 + $0x78] sm:$0xff]  ;;  %v11308_v21 = vld [vmem:[#allocation3 + $0x80] sm:$0xff] }
 0x1fb   : > { %13633 = vst [vmem:[#allocation18_spill] sm:$0xff] %v11298_v32  ;;  %3321 = vst.msk [vmem:[#allocation3 + $0xa9] sm:$0xff] %vm3252_vm5, %v3232_v60  ;;  %v2864_v15 = vadd.f32 %v8428_v0, %v11109_v11  ;;  %8561 = vmatprep.mubr.msk.f32.mxu0 %vm3252_vm5, %v11295_v33  ;;  %v3235_v7 = vmax.f32 %v3203_v6, 0.0  ;;  %8614 = vmatprep.mubr.msk.f32.mxu1 %vm3252_vm5, %v11306_v42  ;;  %v2776_v1 = vpop.f32.mrf.mxu1  ;;  %v8481_v47 = vpop.f32.mrf.mxu0  ;;  %v3902_v45 = vrot.slane %v11306_v42, 1  ;;  %v3903_v11 = vrot.slane %v11308_v21, 1 }
 0x1fc   : > { %8562 = vmatmul.mubr.msk.f32.gmra.mxu0 %vm3252_vm5, %v11298_v32  ;;  %v3905_v44 = vrot.slane %v11288_v28, 1  ;;  %v3234_v19 = vmax.f32 %v3202_v26, 0.0  ;;  %v3205_v50 = vadd.f32 %v11070_v51, %v3169_v14  ;;  %v3168_v60 = vmul.f32 %v11048_v29, %v3132_v2  ;;  %8615 = vmatmul.mubr.msk.f32.gmra.mxu1 %vm3252_vm5, %v11308_v21  ;;  %v11321_v10 = vld [vmem:[#allocation3 + $0xa0] sm:$0x3] }
 0x1fd   : > { %v3135_v24 = vadd.f32 %v8478_v23, %v2864_v15  ;;  %v2333_v13 = vadd.f32 %v10981_v58, %v11016_v3  ;;  %3324 = vst.msk [vmem:[#allocation3 + $0xc9] sm:$0xff] %vm3252_vm5, %v3235_v7  ;;  %v2863_v6 = vadd.f32 %v2776_v1, %v11112_v62  ;;  %v8431_v0 = vpop.f32.mrf.mxu1  ;;  %v11328_v26 = vsel %vm451_vm3, %v3902_v45, %v3903_v11  ;;  %v11333_v23 = vld [vmem:[#allocation3 + $0x90] sm:$0xff]  ;;  %v3057_v2 = vpop.f32.mrf.mxu0  ;;  %v11335_v15 = vld [vmem:[#allocation3 + $0x98] sm:$0xff] }
 0x1fe   : > { %13634 = vst [vmem:[#allocation30_spill] sm:$0xff] %v11328_v26  ;;  %v11331_v14 = vsel %vm451_vm3, %v3903_v11, %v3905_v44  ;;  %3323 = vst.msk [vmem:[#allocation3 + $0xc1] sm:$0xff] %vm3252_vm5, %v3234_v19  ;;  %v3237_v32 = vmax.f32 %v3205_v50, 0.0  ;;  %v3204_v58 = vadd.f32 %v11070_v51, %v3168_v60  ;;  %v2866_v62 = vadd.f32 %v8431_v0, %v11115_v59 }
 0x1ff   : > { %13635 = vst [vmem:[#allocation32_spill] sm:$0xff] %v11331_v14  ;;  %v3171_v3 = vmul.f32 %v11048_v29, %v3135_v24  ;;  %8564 = vmatprep.mubr.msk.f32.mxu0 %vm3252_vm5, %v11328_v26  ;;  %8617 = vmatprep.mubr.msk.f32.mxu1 %vm3252_vm5, %v11333_v23  ;;  %v3134_v7 = vadd.f32 %v3047_v40, %v2863_v6  ;;  %v2786_v1 = vpop.f32.mrf.mxu1  ;;  %v8484_v45 = vpop.f32.mrf.mxu0  ;;  %v3907_v11 = vrot.slane %v11333_v23, 1  ;;  %v3908_v44 = vrot.slane %v11335_v15, 1  ;;  %v11355_v40 = vld [vmem:[#allocation3 + $0xb8] sm:$0x3] }
 0x200   : > { %8565 = vmatmul.mubr.msk.f32.gmra.mxu0 %vm3252_vm5, %v11331_v14  ;;  %v3910_v19 = vrot.slane %v11321_v10, 1  ;;  %3326 = vst.msk [vmem:[#allocation3 + $0xe1] sm:$0xff] %vm3252_vm5, %v3237_v32  ;;  %v3236_v59 = vmax.f32 %v3204_v58, 0.0  ;;  %v3137_v60 = vadd.f32 %v8481_v47, %v2866_v62  ;;  %v2865_v24 = vadd.f32 %v2786_v1, %v11146_v41  ;;  %8618 = vmatmul.mubr.msk.f32.gmra.mxu1 %vm3252_vm5, %v11335_v15 }
 0x201   : > { %v3207_v50 = vadd.f32 %v11070_v51, %v3171_v3  ;;  %v11358_v6 = vadd.f32 %v10966_v20, %v2333_v13  ;;  %v3170_v0 = vmul.f32 %v11048_v29, %v3134_v7  ;;  %v8434_v14 = vpop.f32.mrf.mxu1  ;;  %v11362_v26 = vsel %vm451_vm3, %v3907_v11, %v3908_v44  ;;  %v3067_v41 = vpop.f32.mrf.mxu0 }
 0x202   : > { %13636 = vst [vmem:[#allocation22_spill] sm:$0xff] %v11362_v26  ;;  %v11365_v32 = vsel %vm451_vm3, %v3908_v44, %v3910_v19  ;;  %v11367_v47 = vld [vmem:[#allocation3 + $0xa8] sm:$0xff]  ;;  %v11369_v58 = vld [vmem:[#allocation3 + $0xb0] sm:$0xff]  ;;  %3325 = vst.msk [vmem:[#allocation3 + $0xd9] sm:$0xff] %vm3252_vm5, %v3236_v59  ;;  %v3173_v20 = vmul.f32 %v11048_v29, %v3137_v60  ;;  %v3136_v13 = vadd.f32 %v3057_v2, %v2865_v24  ;;  %8567 = vmatprep.mubr.msk.f32.mxu0 %vm3252_vm5, %v11362_v26 }
 0x203   : > { %13637 = vst [vmem:[#allocation40_spill] sm:$0xff] %v11365_v32  ;;  %v3239_v3 = vmax.f32 %v3207_v50, 0.0  ;;  %v2868_v62 = vadd.f32 %v8434_v14, %v11149_v22  ;;  %8620 = vmatprep.mubr.msk.f32.mxu1 %vm3252_vm5, %v11367_v47  ;;  %v3206_v7 = vadd.f32 %v11070_v51, %v3170_v0  ;;  %v2796_v1 = vpop.f32.mrf.mxu1  ;;  %v8487_v11 = vpop.f32.mrf.mxu0  ;;  %v3912_v44 = vrot.slane %v11367_v47, 1  ;;  %v13638_v24 = vld [vmem:[#allocation34_spill] sm:$0xff] }
 0x204   : > { %8568 = vmatmul.mubr.msk.f32.gmra.mxu0 %vm3252_vm5, %v11365_v32  ;;  %v3913_v19 = vrot.slane %v11369_v58, 1  ;;  %v3915_v2 = vrot.slane %v11355_v40, 1  ;;  %v3209_v22 = vadd.f32 %v11070_v51, %v3173_v20  ;;  %v3172_v14 = vmul.f32 %v11048_v29, %v3136_v13  ;;  %8621 = vmatmul.mubr.msk.f32.gmra.mxu1 %vm3252_vm5, %v11369_v58  ;;  %v11390_v60 = vld [vmem:[#allocation3 + $0xd0] sm:$0x3] }
 0x205   : > { %3328 = vst.msk [vmem:[#allocation3 + $0xf9] sm:$0xff] %vm3252_vm5, %v3239_v3  ;;  %v3139_v59 = vadd.f32 %v8484_v45, %v2868_v62  ;;  %v2867_v50 = vadd.f32 %v2796_v1, %v11152_v43  ;;  %v2336_v0 = vadd.f32 %v11002_v5, %v13638_v24  ;;  %v3238_v32 = vmax.f32 %v3206_v7, 0.0  ;;  %v8437_v26 = vpop.f32.mrf.mxu1  ;;  %v11400_v20 = vld [vmem:[#allocation3 + $0xc0] sm:$0xff]  ;;  %v3077_v45 = vpop.f32.mrf.mxu0  ;;  %v11402_v43 = vld [vmem:[#allocation3 + $0xc8] sm:$0xff] }
 0x206   : > { %v11395_v33 = vsel %vm451_vm3, %v3912_v44, %v3913_v19  ;;  %v11398_v3 = vsel %vm451_vm3, %v3913_v19, %v3915_v2  ;;  %v3241_v13 = vmax.f32 %v3209_v22, 0.0  ;;  %v3208_v62 = vadd.f32 %v11070_v51, %v3172_v14  ;;  %8623 = vmatprep.mubr.msk.f32.mxu1 %vm3252_vm5, %v11400_v20 }
 0x207   : > { %13639 = vst [vmem:[#allocation26_spill] sm:$0xff] %v11395_v33  ;;  %13640 = vst [vmem:[#allocation4_spill] sm:$0xff] %v11398_v3  ;;  %v3175_v1 = vmul.f32 %v11048_v29, %v3139_v59  ;;  %v3138_v27 = vadd.f32 %v3067_v41, %v2867_v50  ;;  %8570 = vmatprep.mubr.msk.f32.mxu0 %vm3252_vm5, %v11395_v33  ;;  %v2870_v5 = vadd.f32 %v8437_v26, %v11160_v52  ;;  %v2806_v7 = vpop.f32.mrf.mxu1  ;;  %v8490_v44 = vpop.f32.mrf.mxu0  ;;  %v11423_v26 = vld [vmem:[#allocation3 + $0xe8] sm:$0x3] }
 0x208   : > { %3327 = vst.msk [vmem:[#allocation3 + $0xf1] sm:$0xff] %vm3252_vm5, %v3238_v32  ;;  %8571 = vmatmul.mubr.msk.f32.gmra.mxu0 %vm3252_vm5, %v11398_v3  ;;  %v3917_v19 = vrot.slane %v11400_v20, 1  ;;  %v3918_v2 = vrot.slane %v11402_v43, 1  ;;  %v3920_v41 = vrot.slane %v11390_v60, 1  ;;  %3330 = vst.msk [vmem:[#allocation3 + $0x111] sm:$0xff] %vm3252_vm5, %v3241_v13  ;;  %v3240_v22 = vmax.f32 %v3208_v62, 0.0  ;;  %8624 = vmatmul.mubr.msk.f32.gmra.mxu1 %vm3252_vm5, %v11402_v43 }
 0x209   : > { %v3211_v14 = vadd.f32 %v11070_v51, %v3175_v1  ;;  %v3174_v32 = vmul.f32 %v11048_v29, %v3138_v27  ;;  %v2869_v52 = vadd.f32 %v2806_v7, %v11163_v53  ;;  %v11426_v59 = vadd.f32 %v10983_v34, %v2336_v0  ;;  %v8440_v24 = vpop.f32.mrf.mxu1  ;;  %v11434_v62 = vld [vmem:[#allocation3 + $0xd8] sm:$0xff]  ;;  %v3087_v27 = vpop.f32.mrf.mxu0  ;;  %v11436_v53 = vld [vmem:[#allocation3 + $0xe0] sm:$0xff] }
 0x20a   : > { %v3141_v50 = vadd.f32 %v8487_v11, %v2870_v5  ;;  %v11429_v3 = vsel %vm451_vm3, %v3917_v19, %v3918_v2  ;;  %v11432_v13 = vsel %vm451_vm3, %v3918_v2, %v3920_v41  ;;  %3329 = vst.msk [vmem:[#allocation3 + $0x109] sm:$0xff] %vm3252_vm5, %v3240_v22  ;;  %v2872_v11 = vadd.f32 %v8440_v24, %v11166_v61 }
 0x20b   : > { %13641 = vst [vmem:[#allocation31_spill] sm:$0xff] %v11429_v3  ;;  %13642 = vst [vmem:[#allocation41_spill] sm:$0xff] %v11432_v13  ;;  %v3243_v1 = vmax.f32 %v3211_v14, 0.0  ;;  %v3210_v7 = vadd.f32 %v11070_v51, %v3174_v32  ;;  %v3140_v34 = vadd.f32 %v3077_v45, %v2869_v52  ;;  %8573 = vmatprep.mubr.msk.f32.mxu0 %vm3252_vm5, %v11429_v3  ;;  %8626 = vmatprep.mubr.msk.f32.mxu1 %vm3252_vm5, %v11434_v62  ;;  %v2816_v5 = vpop.f32.mrf.mxu1  ;;  %v8493_v19 = vpop.f32.mrf.mxu0 }
 0x20c   : > { %v3177_v0 = vmul.f32 %v11048_v29, %v3141_v50  ;;  %8574 = vmatmul.mubr.msk.f32.gmra.mxu0 %vm3252_vm5, %v11432_v13  ;;  %v3922_v2 = vrot.slane %v11434_v62, 1  ;;  %v3923_v41 = vrot.slane %v11436_v53, 1  ;;  %v3925_v45 = vrot.slane %v11423_v26, 1  ;;  %8627 = vmatmul.mubr.msk.f32.gmra.mxu1 %vm3252_vm5, %v11436_v53  ;;  %v11456_v52 = vld [vmem:[#allocation3 + $0x100] sm:$0x3] }
 0x20d   : > { %3332 = vst.msk [vmem:[#allocation3 + $0x129] sm:$0xff] %vm3252_vm5, %v3243_v1  ;;  %v3242_v61 = vmax.f32 %v3210_v7, 0.0  ;;  %v3176_v22 = vmul.f32 %v11048_v29, %v3140_v34  ;;  %v3143_v14 = vadd.f32 %v8490_v44, %v2872_v11  ;;  %v2871_v32 = vadd.f32 %v2816_v5, %v11225_v4  ;;  %v8443_v13 = vpop.f32.mrf.mxu1  ;;  %v3097_v44 = vpop.f32.mrf.mxu0 }
 0x20e   : > { %v2335_v50 = vadd.f32 %v11023_v35, %v11026_v49  ;;  %v3213_v24 = vadd.f32 %v11070_v51, %v3177_v0  ;;  %v11462_v3 = vsel %vm451_vm3, %v3922_v2, %v3923_v41  ;;  %v11465_v1 = vsel %vm451_vm3, %v3923_v41, %v3925_v45 }
 0x20f   : > { %13643 = vst [vmem:[#allocation25_spill] sm:$0xff] %v11462_v3  ;;  %13644 = vst [vmem:[#allocation35_spill] sm:$0xff] %v11465_v1  ;;  %v3212_v4 = vadd.f32 %v11070_v51, %v3176_v22  ;;  %v3179_v7 = vmul.f32 %v11048_v29, %v3143_v14  ;;  %v3142_v34 = vadd.f32 %v3087_v27, %v2871_v32  ;;  %8576 = vmatprep.mubr.msk.f32.mxu0 %vm3252_vm5, %v11462_v3  ;;  %v11473_v35 = vld [vmem:[#allocation3 + $0xf0] sm:$0xff]  ;;  %v11475_v49 = vld [vmem:[#allocation3 + $0xf8] sm:$0xff]  ;;  %v2826_v5 = vpop.f32.mrf.mxu1 }
 0x210   : > { %3331 = vst.msk [vmem:[#allocation3 + $0x121] sm:$0xff] %vm3252_vm5, %v3242_v61  ;;  %v2874_v11 = vadd.f32 %v8443_v13, %v11291_v38  ;;  %v3245_v0 = vmax.f32 %v3213_v24, 0.0  ;;  %8577 = vmatmul.mubr.msk.f32.gmra.mxu0 %vm3252_vm5, %v11465_v1  ;;  %8629 = vmatprep.mubr.msk.f32.mxu1 %vm3252_vm5, %v11473_v35  ;;  %v3927_v2 = vrot.slane %v11473_v35, 1  ;;  %v3928_v27 = vrot.slane %v11475_v49, 1  ;;  %v8496_v13 = vpop.f32.mrf.mxu0  ;;  %v11488_v14 = vld [vmem:[#allocation3 + $0x118] sm:$0x3] }
 0x211   : > { %v3930_v38 = vrot.slane %v11456_v52, 1  ;;  %v3244_v41 = vmax.f32 %v3212_v4, 0.0  ;;  %v3215_v45 = vadd.f32 %v11070_v51, %v3179_v7  ;;  %v3178_v61 = vmul.f32 %v11048_v29, %v3142_v34  ;;  %8630 = vmatmul.mubr.msk.f32.gmra.mxu1 %vm3252_vm5, %v11475_v49  ;;  %v8446_v1 = vpop.f32.mrf.mxu1  ;;  %v11499_v7 = vld [vmem:[#allocation3 + $0x108] sm:$0xff] }
 0x212   : > { %v3145_v22 = vadd.f32 %v8493_v19, %v2874_v11  ;;  %v2603_v32 = vadd.f32 %v11004_v17, %v2335_v50  ;;  %3334 = vst.msk [vmem:[#allocation3 + $0x141] sm:$0xff] %vm3252_vm5, %v3245_v0  ;;  %v2873_v24 = vadd.f32 %v2826_v5, %v11358_v6  ;;  %v11494_v3 = vsel %vm451_vm3, %v3927_v2, %v3928_v27  ;;  %v11501_v19 = vld [vmem:[#allocation3 + $0x110] sm:$0xff]  ;;  %v3107_v5 = vpop.f32.mrf.mxu0 }
 0x213   : > { %13645 = vst [vmem:[#allocation5_spill] sm:$0xff] %v11494_v3  ;;  %v11497_v4 = vsel %vm451_vm3, %v3928_v27, %v3930_v38  ;;  %3333 = vst.msk [vmem:[#allocation3 + $0x139] sm:$0xff] %vm3252_vm5, %v3244_v41  ;;  %v3247_v34 = vmax.f32 %v3215_v45, 0.0  ;;  %v3214_v17 = vadd.f32 %v11070_v51, %v3178_v61  ;;  %v2876_v6 = vadd.f32 %v8446_v1, %v11426_v59  ;;  %v2836_v0 = vpop.f32.mrf.mxu1 }
 0x214   : > { %13646 = vst [vmem:[#allocation7_spill] sm:$0xff] %v11497_v4  ;;  %v3181_v50 = vmul.f32 %v11048_v29, %v3145_v22  ;;  %8579 = vmatprep.mubr.msk.f32.mxu0 %vm3252_vm5, %v11494_v3  ;;  %8632 = vmatprep.mubr.msk.f32.mxu1 %vm3252_vm5, %v11499_v7  ;;  %v3144_v11 = vadd.f32 %v3097_v44, %v2873_v24  ;;  %v3932_v2 = vrot.slane %v11499_v7, 1  ;;  %v3933_v27 = vrot.slane %v11501_v19, 1  ;;  %v11520_v44 = vld [vmem:[#allocation3 + $0x130] sm:$0x3] }
 0x215   : > { %8580 = vmatmul.mubr.msk.f32.gmra.mxu0 %vm3252_vm5, %v11497_v4  ;;  %v3935_v38 = vrot.slane %v11488_v14, 1  ;;  %3336 = vst.msk [vmem:[#allocation3 + $0x159] sm:$0xff] %vm3252_vm5, %v3247_v34  ;;  %v3246_v59 = vmax.f32 %v3214_v17, 0.0  ;;  %v2875_v41 = vadd.f32 %v2836_v0, %v2603_v32  ;;  %v3147_v45 = vadd.f32 %v8496_v13, %v2876_v6  ;;  %8633 = vmatmul.mubr.msk.f32.gmra.mxu1 %vm3252_vm5, %v11501_v19  ;;  %v11533_v17 = vpop.f32.mrf.mxu1 }
 0x216   : > { %v3217_v1 = vadd.f32 %v11070_v51, %v3181_v50  ;;  %v3180_v61 = vmul.f32 %v11048_v29, %v3144_v11  ;;  %v11524_v22 = vsel %vm451_vm3, %v3932_v2, %v3933_v27  ;;  %13649 = vst [vmem:[#allocation9_spill] sm:$0xff] %v11533_v17  ;;  %v3940_v2 = vrot.slane %v11520_v44, 1  ;;  %v9008_v17 = vld [vmem:[#allocation3] sm:$0xff] }
 0x217   : > { %13647 = vst [vmem:[#allocation42_spill] sm:$0xff] %v11524_v22  ;;  %v11527_v24 = vsel %vm451_vm3, %v3933_v27, %v3935_v38  ;;  %v11529_v4 = vld [vmem:[#allocation3 + $0x120] sm:$0xff]  ;;  %v11531_v34 = vld [vmem:[#allocation3 + $0x128] sm:$0xff]  ;;  %3335 = vst.msk [vmem:[#allocation3 + $0x151] sm:$0xff] %vm3252_vm5, %v3246_v59  ;;  %v3183_v32 = vmul.f32 %v11048_v29, %v3147_v45  ;;  %v3146_v50 = vadd.f32 %v3107_v5, %v2875_v41  ;;  %8582 = vmatprep.mubr.msk.f32.mxu0 %vm3252_vm5, %v11524_v22  ;;  %v11547_v27 = vpop.f32.mrf.mxu1 }
 0x218   : > { %13648 = vst [vmem:[#allocation27_spill] sm:$0xff] %v11527_v24  ;;  %v3249_v13 = vmax.f32 %v3217_v1, 0.0  ;;  %8635 = vmatprep.mubr.msk.f32.mxu1 %vm3252_vm5, %v11529_v4  ;;  %v3937_v6 = vrot.slane %v11529_v4, 1  ;;  %v3216_v11 = vadd.f32 %v11070_v51, %v3180_v61  ;;  %v3938_v0 = vrot.slane %v11531_v34, 1  ;;  %13650 = vst [vmem:[#allocation11_spill] sm:$0xff] %v11547_v27 }
 0x219   : > { %8583 = vmatmul.mubr.msk.f32.gmra.mxu0 %vm3252_vm5, %v11527_v24  ;;  %v3219_v5 = vadd.f32 %v11070_v51, %v3183_v32  ;;  %v3182_v38 = vmul.f32 %v11048_v29, %v3146_v50  ;;  %8636 = vmatmul.mubr.msk.f32.gmra.mxu1 %vm3252_vm5, %v11531_v34  ;;  %v11554_v59 = vld [vmem:[#allocation3 + $0x148] sm:$0x3]  ;;  %v11567_v32 = vpop.f32.mrf.mxu1 }
 0x21a   : > { %3338 = vst.msk [vmem:[#allocation3 + $0x171] sm:$0xff] %vm3252_vm5, %v3249_v13  ;;  %v3248_v1 = vmax.f32 %v3216_v11, 0.0  ;;  %v11557_v41 = vsel %vm451_vm3, %v3937_v6, %v3938_v0  ;;  %v11560_v45 = vsel %vm451_vm3, %v3938_v0, %v3940_v2  ;;  %v11562_v61 = vld [vmem:[#allocation3 + $0x138] sm:$0xff]  ;;  %v11564_v27 = vld [vmem:[#allocation3 + $0x140] sm:$0xff]  ;;  %v3945_v13 = vrot.slane %v11554_v59, 1  ;;  %13653 = vst [vmem:[#allocation19_spill] sm:$0xff] %v11567_v32 }
 0x21b   : > { %13651 = vst [vmem:[#allocation15_spill] sm:$0xff] %v11557_v41  ;;  %13652 = vst [vmem:[#allocation12_spill] sm:$0xff] %v11560_v45  ;;  %v3251_v29 = vmax.f32 %v3219_v5, 0.0  ;;  %v3218_v50 = vadd.f32 %v11070_v51, %v3182_v38  ;;  %8585 = vmatprep.mubr.msk.f32.mxu0 %vm3252_vm5, %v11557_v41  ;;  %8638 = vmatprep.mubr.msk.f32.mxu1 %vm3252_vm5, %v11562_v61  ;;  %v3942_v6 = vrot.slane %v11562_v61, 1  ;;  %v3943_v11 = vrot.slane %v11564_v27, 1  ;;  %v11581_v2 = vpop.f32.mrf.mxu1 }
 0x21c   : > { %3337 = vst.msk [vmem:[#allocation3 + $0x169] sm:$0xff] %vm3252_vm5, %v3248_v1  ;;  %v11579_v0 = vld [vmem:[#allocation3 + $0x160] sm:$0x3]  ;;  %13654 = vst [vmem:[#allocation23_spill] sm:$0xff] %v11581_v2 }
 0x21d   : > { %8586 = vmatmul.mubr.msk.f32.gmra.mxu0 %vm3252_vm5, %v11560_v45  ;;  %3340 = vst.msk [vmem:[#allocation3 + $0x189] sm:$0xff] %vm3252_vm5, %v3251_v29  ;;  %v3250_v51 = vmax.f32 %v3218_v50, 0.0  ;;  %8639 = vmatmul.mubr.msk.f32.gmra.mxu1 %vm3252_vm5, %v11564_v27  ;;  %v11587_v5 = vsel %vm451_vm3, %v3942_v6, %v3943_v11  ;;  %v11590_v38 = vsel %vm451_vm3, %v3943_v11, %v3945_v13  ;;  %v11598_v2 = vpop.f32.mrf.mxu1  ;;  %v3950_v13 = vrot.slane %v11579_v0, 1  ;;  %v9009_v45 = vld [vmem:[#allocation3 + $0x8] sm:$0xff] }
 0x21e   : > { %13655 = vst [vmem:[#allocation29_spill] sm:$0xff] %v11587_v5  ;;  %13656 = vst [vmem:[#allocation33_spill] sm:$0xff] %v11590_v38  ;;  %8588 = vmatprep.mubr.msk.f32.mxu0 %vm3252_vm5, %v11587_v5  ;;  %v11594_v1 = vld [vmem:[#allocation3 + $0x150] sm:$0xff]  ;;  %v11596_v32 = vld [vmem:[#allocation3 + $0x158] sm:$0xff]  ;;  %v4537_v5 = vrot.slane %v9008_v17, 2 }
 0x21f   : > { %13657 = vst [vmem:[#allocation8_spill] sm:$0xff] %v11598_v2  ;;  %3339 = vst.msk [vmem:[#allocation3 + $0x181] sm:$0xff] %vm3252_vm5, %v3250_v51  ;;  %8641 = vmatprep.mubr.msk.f32.mxu1 %vm3252_vm5, %v11594_v1  ;;  %v3947_v29 = vrot.slane %v11594_v1, 1  ;;  %v3948_v50 = vrot.slane %v11596_v32, 1  ;;  %v11608_v6 = vpop.f32.mrf.mxu1 }
 0x220   : > { %13658 = vst [vmem:[#allocation43_spill] sm:$0xff] %v11608_v6 }
 0x221   : > { %8589 = vmatmul.mubr.msk.f32.gmra.mxu0 %vm3252_vm5, %v11590_v38  ;;  %8642 = vmatmul.mubr.msk.f32.gmra.mxu1 %vm3252_vm5, %v11596_v32  ;;  %v11613_v11 = vsel %vm451_vm3, %v3947_v29, %v3948_v50  ;;  %v11616_v51 = vsel %vm451_vm3, %v3948_v50, %v3950_v13  ;;  %v11618_v2 = vld [vmem:[#allocation3 + $0x178] sm:$0x3]  ;;  %v4538_v38 = vrot.slane %v9009_v45, 2  ;;  %v11622_v41 = vpop.f32.mrf.mxu1  ;;  %v9010_v45 = vld [vmem:[#allocation3 + $0x10] sm:$0x3] }
 0x222   : > { %13659 = vst [vmem:[#allocation13_spill] sm:$0xff] %v11613_v11  ;;  %13660 = vst [vmem:[#allocation10_spill] sm:$0xff] %v11616_v51  ;;  %8591 = vmatprep.mubr.msk.f32.mxu0 %vm3252_vm5, %v11613_v11  ;;  %v3955_v50 = vrot.slane %v11618_v2, 1 }
 0x223   : > { %13661 = vst [vmem:[#allocation16_spill] sm:$0xff] %v11622_v41  ;;  %v11624_v6 = vld [vmem:[#allocation3 + $0x168] sm:$0xff]  ;;  %v11626_v24 = vld [vmem:[#allocation3 + $0x170] sm:$0xff]  ;;  %v11635_v13 = vpop.f32.mrf.mxu1  ;;  %v4540_v41 = vrot.slane %v9010_v45, 2  ;;  %v4539_v22 = vsel %vm1119_vm4, %v4537_v5, %v4538_v38  ;;  %v4543_v45 = vrot.slane %v11172_v56, 2 }
 0x224   : > { %8644 = vmatprep.mubr.msk.f32.mxu1 %vm3252_vm5, %v11624_v6  ;;  %v3952_v29 = vrot.slane %v11624_v6, 1  ;;  %v3953_v17 = vrot.slane %v11626_v24, 1  ;;  %13662 = vst [vmem:[#allocation37_spill] sm:$0xff] %v11635_v13  ;;  %v4542_v13 = vrot.slane %v11170_v30, 2 }
 0x225   : > { %8592 = vmatmul.mubr.msk.f32.gmra.mxu0 %vm3252_vm5, %v11616_v51  ;;  %8645 = vmatmul.mubr.msk.f32.gmra.mxu1 %vm3252_vm5, %v11626_v24  ;;  %v11648_v3 = vpop.f32.mrf.mxu1  ;;  %v4541_v5 = vsel %vm1119_vm4, %v4538_v38, %v4540_v41  ;;  %v4548_v41 = vrot.slane %v11201_v16, 2 }
 0x226   : > { %8699 = vmatprep.mubr.msk.f32.mxu1 %vm3252_vm5, %v11170_v30  ;;  %v11642_v51 = vsel %vm451_vm3, %v3952_v29, %v3953_v17  ;;  %v11645_v11 = vsel %vm451_vm3, %v3953_v17, %v3955_v50  ;;  %13663 = vst [vmem:[#allocation44_spill] sm:$0xff] %v11648_v3  ;;  %v11661_v29 = vld [vmem:[%s13229_s2 + $0x38] sm:$0xff]  ;;  %v11675_v17 = vld [vmem:[%s13229_s2 + $0x30] sm:$0xff]  ;;  %v4545_v50 = vrot.slane %v11157_v9, 2  ;;  %v4552_v9 = vrot.slane %v11233_v36, 2  ;;  %v13719_v3 = vld [vmem:[#allocation41_spill] sm:$0xff] }
 0x227   : > { %8594 = vmatprep.mubr.msk.f32.mxu0 %vm3252_vm5, %v11642_v51  ;;  %v11656_v33 = vpop.f32.mrf.mxu1 }
 0x228   : > { %13664 = vst [vmem:[#allocation46_spill] sm:$0xff] %v11656_v33  ;;  %v4615_v33 = vrot.slane %v11618_v2, 2  ;;  %v11994_v2 = vld [vmem:[%s13229_s2 + $0x40] sm:$0xff] }
 0x229   : > { %8595 = vmatmul.mubr.msk.f32.gmra.mxu0 %vm3252_vm5, %v11645_v11  ;;  %8700 = vmatmul.mubr.msk.f32.vlgmr.msra.gmra.mxu1 %vm3252_vm5, %v11172_v56  ;;  %v11670_v30 = vpop.f32.mrf.mxu1  ;;  %v11680_v56 = vsel %vm1119_vm4, %v4542_v13, %v4543_v45  ;;  %v11700_v13 = vsel %vm1119_vm4, %v4543_v45, %v4545_v50  ;;  %v4557_v50 = vrot.slane %v11266_v25, 2 }
 0x22a   : > { %8649 = vmatprep.mubr.msk.f32.mxu0 %vm3252_vm5, %v4539_v22  ;;  %8702 = vmatprep.mubr.msk.f32.mxu1 %vm3252_vm5, %v11199_v31  ;;  %13665 = vst [vmem:[#allocation48_spill] sm:$0xff] %v11670_v30  ;;  %v4547_v22 = vrot.slane %v11199_v31, 2  ;;  %v4600_v30 = vrot.slane %v11520_v44, 2  ;;  %v4605_v44 = vrot.slane %v11554_v59, 2  ;;  %v4610_v59 = vrot.slane %v11579_v0, 2  ;;  %v11972_v0 = vld [vmem:[#allocation3 + $0x188] sm:$0xff] }
 0x22b   : > { %8798 = vmatpush3.msra.mxu1 %v11143_v55  ;;  %v11684_v38 = vpop.f32.mrf.mxu1  ;;  %v9011_v55 = vld [vmem:[%s13229_s2 + $0x20] sm:$0xff] }
 0x22c   : > { %8897 = vmatprep.subr.mxu1 %v11661_v29  ;;  %13666 = vst [vmem:[#allocation6_spill] sm:$0xff] %v11684_v38  ;;  %v4603_v38 = vrot.slane %v11564_v27, 2 }
 0x22d   : > { %8650 = vmatmul.mubr.msk.f32.vlgmr.msra.gmra.mxu0 %vm3252_vm5, %v4541_v5  ;;  %8703 = vmatmul.mubr.msk.f32.gmra.mxu1 %vm3252_vm5, %v11201_v16  ;;  %v11705_v5 = vsel %vm1119_vm4, %v4547_v22, %v4548_v41  ;;  %v4553_v16 = vrot.slane %v11235_v37, 2 }
 0x22e   : > { %8748 = vmatpush3.msra.mxu0 %v9011_v55  ;;  %8652 = vmatprep.mubr.msk.f32.mxu0 %vm3252_vm5, %v11680_v56  ;;  %v11695_v31 = vpop.f32.mrf.mxu1 }
 0x22f   : > { %8847 = vmatprep.subr.mxu0 %v11675_v17  ;;  %13667 = vst [vmem:[#allocation45_spill] sm:$0xff] %v11695_v31  ;;  %8705 = vmatprep.mubr.msk.f32.mxu1 %vm3252_vm5, %v11233_v36  ;;  %v4550_v31 = vrot.slane %v11188_v48, 2  ;;  %v11726_v36 = vsel %vm1119_vm4, %v4552_v9, %v4553_v16  ;;  %v4558_v48 = vrot.slane %v11268_v63, 2  ;;  %v4562_v9 = vrot.slane %v11306_v42, 2 }
 0x230   : > { %v11709_v55 = vpop.f32.mrf.mxu1 }
 0x231   : > { %8653 = vmatmul.mubr.msk.f32.gmra.mxu0 %vm3252_vm5, %v11700_v13  ;;  %13668 = vst [vmem:[#allocation50_spill] sm:$0xff] %v11709_v55  ;;  %8706 = vmatmul.mubr.msk.f32.gmra.mxu1 %vm3252_vm5, %v11235_v37  ;;  %v11721_v22 = vsel %vm1119_vm4, %v4548_v41, %v4550_v31  ;;  %v4555_v37 = vrot.slane %v11222_v57, 2  ;;  %v4563_v57 = vrot.slane %v11308_v21, 2 }
 0x232   : > { %8655 = vmatprep.mubr.msk.f32.mxu0 %vm3252_vm5, %v11705_v5  ;;  %v11716_v45 = vpop.f32.mrf.mxu1  ;;  %8708 = vmatprep.mubr.msk.f32.mxu1 %vm3252_vm5, %v11266_v25  ;;  %v11747_v25 = vsel %vm1119_vm4, %v4557_v50, %v4558_v48 }
 0x233   : > { %13669 = vst [vmem:[#allocation52_spill] sm:$0xff] %v11716_v45  ;;  %v11742_v31 = vsel %vm1119_vm4, %v4553_v16, %v4555_v37  ;;  %v4567_v37 = vrot.slane %v11333_v23, 2 }
 0x234   : > { %v11730_v55 = vpop.f32.mrf.mxu1 }
 0x235   : > { %8656 = vmatmul.mubr.msk.f32.gmra.mxu0 %vm3252_vm5, %v11721_v22  ;;  %13670 = vst [vmem:[#allocation17_spill] sm:$0xff] %v11730_v55  ;;  %8709 = vmatmul.mubr.msk.f32.gmra.mxu1 %vm3252_vm5, %v11268_v63  ;;  %v4560_v63 = vrot.slane %v11256_v46, 2  ;;  %v4568_v46 = vrot.slane %v11335_v15, 2 }
 0x236   : > { %8658 = vmatprep.mubr.msk.f32.mxu0 %vm3252_vm5, %v11726_v36  ;;  %v11737_v41 = vpop.f32.mrf.mxu1  ;;  %8711 = vmatprep.mubr.msk.f32.mxu1 %vm3252_vm5, %v11306_v42  ;;  %v11768_v42 = vsel %vm1119_vm4, %v4562_v9, %v4563_v57 }
 0x237   : > { %13671 = vst [vmem:[#allocation54_spill] sm:$0xff] %v11737_v41  ;;  %v11763_v50 = vsel %vm1119_vm4, %v4558_v48, %v4560_v63  ;;  %13674 = vst [vmem:[#allocation47_spill] sm:$0xff] %v11768_v42  ;;  %v4572_v63 = vrot.slane %v11367_v47, 2 }
 0x238   : > { %v11751_v55 = vpop.f32.mrf.mxu1 }
 0x239   : > { %8659 = vmatmul.mubr.msk.f32.gmra.mxu0 %vm3252_vm5, %v11742_v31  ;;  %13672 = vst [vmem:[#allocation36_spill] sm:$0xff] %v11751_v55  ;;  %8712 = vmatmul.mubr.msk.f32.gmra.mxu1 %vm3252_vm5, %v11308_v21  ;;  %v4565_v21 = vrot.slane %v11288_v28, 2  ;;  %v4573_v28 = vrot.slane %v11369_v58, 2 }
 0x23a   : > { %8661 = vmatprep.mubr.msk.f32.mxu0 %vm3252_vm5, %v11747_v25  ;;  %v11758_v16 = vpop.f32.mrf.mxu1  ;;  %8714 = vmatprep.mubr.msk.f32.mxu1 %vm3252_vm5, %v11333_v23  ;;  %v11789_v23 = vsel %vm1119_vm4, %v4567_v37, %v4568_v46 }
 0x23b   : > { %13673 = vst [vmem:[#allocation38_spill] sm:$0xff] %v11758_v16  ;;  %v11784_v9 = vsel %vm1119_vm4, %v4563_v57, %v4565_v21  ;;  %13678 = vst [vmem:[#allocation56_spill] sm:$0xff] %v11789_v23  ;;  %v4577_v21 = vrot.slane %v11400_v20, 2 }
 0x23c   : > { %v11772_v55 = vpop.f32.mrf.mxu1  ;;  %13677 = vst [vmem:[#allocation53_spill] sm:$0xff] %v11784_v9 }
 0x23d   : > { %8662 = vmatmul.mubr.msk.f32.gmra.mxu0 %vm3252_vm5, %v11763_v50  ;;  %13675 = vst [vmem:[#allocation49_spill] sm:$0xff] %v11772_v55  ;;  %8715 = vmatmul.mubr.msk.f32.gmra.mxu1 %vm3252_vm5, %v11335_v15  ;;  %v4570_v15 = vrot.slane %v11321_v10, 2  ;;  %v4578_v10 = vrot.slane %v11402_v43, 2 }
 0x23e   : > { %8664 = vmatprep.mubr.msk.f32.mxu0 %vm3252_vm5, %v11768_v42  ;;  %v11779_v48 = vpop.f32.mrf.mxu1  ;;  %8717 = vmatprep.mubr.msk.f32.mxu1 %vm3252_vm5, %v11367_v47  ;;  %v11810_v47 = vsel %vm1119_vm4, %v4572_v63, %v4573_v28 }
 0x23f   : > { %13676 = vst [vmem:[#allocation51_spill] sm:$0xff] %v11779_v48  ;;  %v11805_v37 = vsel %vm1119_vm4, %v4568_v46, %v4570_v15  ;;  %13682 = vst [vmem:[#allocation62_spill] sm:$0xff] %v11810_v47  ;;  %v11831_v15 = vsel %vm1119_vm4, %v4577_v21, %v4578_v10 }
 0x240   : > { %v11793_v55 = vpop.f32.mrf.mxu1  ;;  %13681 = vst [vmem:[#allocation60_spill] sm:$0xff] %v11805_v37  ;;  %13686 = vst [vmem:[#allocation58_spill] sm:$0xff] %v11831_v15 }
 0x241   : > { %8665 = vmatmul.mubr.msk.f32.gmra.mxu0 %vm3252_vm5, %v11784_v9  ;;  %13679 = vst [vmem:[#allocation20_spill] sm:$0xff] %v11793_v55  ;;  %8718 = vmatmul.mubr.msk.f32.gmra.mxu1 %vm3252_vm5, %v11369_v58  ;;  %v4575_v58 = vrot.slane %v11355_v40, 2  ;;  %v4583_v40 = vrot.slane %v11436_v53, 2 }
 0x242   : > { %8667 = vmatprep.mubr.msk.f32.mxu0 %vm3252_vm5, %v11789_v23  ;;  %v11800_v57 = vpop.f32.mrf.mxu1  ;;  %8720 = vmatprep.mubr.msk.f32.mxu1 %vm3252_vm5, %v11400_v20 }
 0x243   : > { %13680 = vst [vmem:[#allocation21_spill] sm:$0xff] %v11800_v57  ;;  %v11826_v63 = vsel %vm1119_vm4, %v4573_v28, %v4575_v58 }
 0x244   : > { %v11814_v55 = vpop.f32.mrf.mxu1  ;;  %13685 = vst [vmem:[#allocation57_spill] sm:$0xff] %v11826_v63 }
 0x245   : > { %8668 = vmatmul.mubr.msk.f32.gmra.mxu0 %vm3252_vm5, %v11805_v37  ;;  %13683 = vst [vmem:[#allocation24_spill] sm:$0xff] %v11814_v55  ;;  %8721 = vmatmul.mubr.msk.f32.gmra.mxu1 %vm3252_vm5, %v11402_v43  ;;  %v4582_v55 = vrot.slane %v11434_v62, 2 }
 0x246   : > { %8670 = vmatprep.mubr.msk.f32.mxu0 %vm3252_vm5, %v11810_v47  ;;  %v11821_v46 = vpop.f32.mrf.mxu1  ;;  %8723 = vmatprep.mubr.msk.f32.mxu1 %vm3252_vm5, %v11434_v62 }
 0x247   : > { %13684 = vst [vmem:[#allocation55_spill] sm:$0xff] %v11821_v46  ;;  %v4580_v46 = vrot.slane %v11390_v60, 2  ;;  %v11852_v58 = vsel %vm1119_vm4, %v4582_v55, %v4583_v40  ;;  %v4588_v60 = vrot.slane %v11475_v49, 2 }
 0x248   : > { %v11835_v57 = vpop.f32.mrf.mxu1  ;;  %13690 = vst [vmem:[#allocation64_spill] sm:$0xff] %v11852_v58 }
 0x249   : > { %8671 = vmatmul.mubr.msk.f32.gmra.mxu0 %vm3252_vm5, %v11826_v63  ;;  %13687 = vst [vmem:[#allocation59_spill] sm:$0xff] %v11835_v57  ;;  %8724 = vmatmul.mubr.msk.f32.gmra.mxu1 %vm3252_vm5, %v11436_v53  ;;  %v11847_v21 = vsel %vm1119_vm4, %v4578_v10, %v4580_v46  ;;  %v4587_v57 = vrot.slane %v11473_v35, 2 }
 0x24a   : > { %8673 = vmatprep.mubr.msk.f32.mxu0 %vm3252_vm5, %v11831_v15  ;;  %v11842_v28 = vpop.f32.mrf.mxu1  ;;  %8726 = vmatprep.mubr.msk.f32.mxu1 %vm3252_vm5, %v11473_v35  ;;  %13689 = vst [vmem:[#allocation63_spill] sm:$0xff] %v11847_v21 }
 0x24b   : > { %13688 = vst [vmem:[#allocation61_spill] sm:$0xff] %v11842_v28  ;;  %v4585_v28 = vrot.slane %v11423_v26, 2  ;;  %v11873_v46 = vsel %vm1119_vm4, %v4587_v57, %v4588_v60  ;;  %v4593_v26 = vrot.slane %v11501_v19, 2 }
 0x24c   : > { %v11856_v48 = vpop.f32.mrf.mxu1  ;;  %13694 = vst [vmem:[#allocation66_spill] sm:$0xff] %v11873_v46 }
 0x24d   : > { %8674 = vmatmul.mubr.msk.f32.gmra.mxu0 %vm3252_vm5, %v11847_v21  ;;  %13691 = vst [vmem:[#allocation28_spill] sm:$0xff] %v11856_v48  ;;  %8727 = vmatmul.mubr.msk.f32.gmra.mxu1 %vm3252_vm5, %v11475_v49  ;;  %v11868_v55 = vsel %vm1119_vm4, %v4583_v40, %v4585_v28  ;;  %v4592_v48 = vrot.slane %v11499_v7, 2 }
 0x24e   : > { %8676 = vmatprep.mubr.msk.f32.mxu0 %vm3252_vm5, %v11852_v58  ;;  %v11863_v10 = vpop.f32.mrf.mxu1  ;;  %8729 = vmatprep.mubr.msk.f32.mxu1 %vm3252_vm5, %v11499_v7  ;;  %13693 = vst [vmem:[#allocation65_spill] sm:$0xff] %v11868_v55 }
 0x24f   : > { %13692 = vst [vmem:[#allocation34_spill] sm:$0xff] %v11863_v10  ;;  %v4590_v10 = vrot.slane %v11456_v52, 2  ;;  %v11894_v28 = vsel %vm1119_vm4, %v4592_v48, %v4593_v26  ;;  %v4598_v52 = vrot.slane %v11531_v34, 2 }
 0x250   : > { %v11877_v16 = vpop.f32.mrf.mxu1  ;;  %13698 = vst [vmem:[#allocation70_spill] sm:$0xff] %v11894_v28 }
 0x251   : > { %8677 = vmatmul.mubr.msk.f32.gmra.mxu0 %vm3252_vm5, %v11868_v55  ;;  %13695 = vst [vmem:[#allocation67_spill] sm:$0xff] %v11877_v16  ;;  %8730 = vmatmul.mubr.msk.f32.gmra.mxu1 %vm3252_vm5, %v11501_v19  ;;  %v11889_v57 = vsel %vm1119_vm4, %v4588_v60, %v4590_v10  ;;  %v4597_v16 = vrot.slane %v11529_v4, 2  ;;  %v8551_v10 = vpop.f32.mrf.mxu0 }
 0x252   : > { %8679 = vmatprep.mubr.msk.f32.mxu0 %vm3252_vm5, %v11873_v46  ;;  %v11884_v40 = vpop.f32.mrf.mxu1  ;;  %8732 = vmatprep.mubr.msk.f32.mxu1 %vm3252_vm5, %v11529_v4  ;;  %13697 = vst [vmem:[#allocation69_spill] sm:$0xff] %v11889_v57 }
 0x253   : > { %13696 = vst [vmem:[#allocation68_spill] sm:$0xff] %v11884_v40  ;;  %v4595_v40 = vrot.slane %v11488_v14, 2  ;;  %v4602_v14 = vrot.slane %v11562_v61, 2 }
 0x254   : > { %v11898_v41 = vpop.f32.mrf.mxu1 }
 0x255   : > { %8680 = vmatmul.mubr.msk.f32.gmra.mxu0 %vm3252_vm5, %v11889_v57  ;;  %13699 = vst [vmem:[#allocation71_spill] sm:$0xff] %v11898_v41  ;;  %8733 = vmatmul.mubr.msk.f32.gmra.mxu1 %vm3252_vm5, %v11531_v34  ;;  %v11908_v48 = vsel %vm1119_vm4, %v4593_v26, %v4595_v40  ;;  %v11915_v41 = vsel %vm1119_vm4, %v4597_v16, %v4598_v52  ;;  %v4607_v40 = vrot.slane %v11594_v1, 2 }
 0x256   : > { %8682 = vmatprep.mubr.msk.f32.mxu0 %vm3252_vm5, %v11894_v28  ;;  %v8601_v60 = vpop.f32.mrf.mxu1  ;;  %8735 = vmatprep.mubr.msk.f32.mxu1 %vm3252_vm5, %v11562_v61  ;;  %13700 = vst [vmem:[#allocation72_spill] sm:$0xff] %v11908_v48  ;;  %13701 = vst [vmem:[#allocation73_spill] sm:$0xff] %v11915_v41  ;;  %v11927_v26 = vsel %vm1119_vm4, %v4598_v52, %v4600_v30  ;;  %v11932_v16 = vsel %vm1119_vm4, %v4602_v14, %v4603_v38  ;;  %v4613_v14 = vrot.slane %v11626_v24, 2 }
 0x257   : > { %v11910_v45 = vadd.f32 %v8601_v60, %v8551_v10  ;;  %13702 = vst [vmem:[#allocation74_spill] sm:$0xff] %v11927_v26  ;;  %13703 = vst [vmem:[#allocation75_spill] sm:$0xff] %v11932_v16  ;;  %v4608_v60 = vrot.slane %v11596_v32, 2  ;;  %v11944_v30 = vsel %vm1119_vm4, %v4603_v38, %v4605_v44  ;;  %v4612_v10 = vrot.slane %v11624_v6, 2  ;;  %v11958_v38 = vld [vmem:[#allocation3 + $0x180] sm:$0xff] }
 0x258   : > { %13704 = vst [vmem:[#allocation76_spill] sm:$0xff] %v11944_v30 }
 0x259   : > { %8683 = vmatmul.mubr.msk.f32.gmra.mxu0 %vm3252_vm5, %v11908_v48  ;;  %8736 = vmatmul.mubr.msk.f32.gmra.mxu1 %vm3252_vm5, %v11564_v27  ;;  %v11949_v52 = vsel %vm1119_vm4, %v4607_v40, %v4608_v60  ;;  %v11963_v40 = vsel %vm1119_vm4, %v4608_v60, %v4610_v59  ;;  %v11968_v44 = vsel %vm1119_vm4, %v4612_v10, %v4613_v14  ;;  %v13716_v10 = vld [vmem:[#allocation26_spill] sm:$0xff]  ;;  %v13718_v59 = vld [vmem:[#allocation31_spill] sm:$0xff] }
 0x25a   : > { %8685 = vmatprep.mubr.msk.f32.mxu0 %vm3252_vm5, %v11915_v41  ;;  %8738 = vmatprep.mubr.msk.f32.mxu1 %vm3252_vm5, %v11594_v1  ;;  %13705 = vst [vmem:[#allocation77_spill] sm:$0xff] %v11949_v52  ;;  %13706 = vst [vmem:[#allocation78_spill] sm:$0xff] %v11963_v40  ;;  %v11980_v60 = vsel %vm1119_vm4, %v4613_v14, %v4615_v33  ;;  %v13711_v33 = vld [vmem:[#allocation18_spill] sm:$0xff]  ;;  %v13717_v14 = vld [vmem:[#allocation4_spill] sm:$0xff] }
 0x25b   : > { %13707 = vst [vmem:[#allocation79_spill] sm:$0xff] %v11968_v44  ;;  %13708 = vst [vmem:[#allocation80_spill] sm:$0xff] %v11980_v60 }
 0x25d   : > { %8686 = vmatmul.mubr.msk.f32.gmra.mxu0 %vm3252_vm5, %v11927_v26  ;;  %8739 = vmatmul.mubr.msk.f32.gmra.mxu1 %vm3252_vm5, %v11596_v32 }
 0x25e   : > { %8688 = vmatprep.mubr.msk.f32.mxu0 %vm3252_vm5, %v11932_v16  ;;  %8741 = vmatprep.mubr.msk.f32.mxu1 %vm3252_vm5, %v11624_v6 }
 0x261   : > { %8689 = vmatmul.mubr.msk.f32.gmra.mxu0 %vm3252_vm5, %v11944_v30  ;;  %8742 = vmatmul.mubr.msk.f32.gmra.mxu1 %vm3252_vm5, %v11626_v24 }
 0x262   : > { %8691 = vmatprep.mubr.msk.f32.mxu0 %vm3252_vm5, %v11949_v52  ;;  %8744 = vmatprep.mubr.msk.f32.mxu1 %vm3252_vm5, %v11958_v38 }
 0x265   : > { %8692 = vmatmul.mubr.msk.f32.gmra.mxu0 %vm3252_vm5, %v11963_v40  ;;  %8745 = vmatmul.mubr.msk.f32.gmra.mxu1 %vm3252_vm5, %v11972_v0 }
 0x266   : > { %8694 = vmatprep.mubr.msk.f32.mxu0 %vm3252_vm5, %v11968_v44  ;;  %8799 = vmatprep.mubr.msk.f32.mxu1 %vm3252_vm5, %v11680_v56  ;;  %v13714_v56 = vld [vmem:[#allocation22_spill] sm:$0xff] }
 0x269   : > { %8695 = vmatmul.mubr.msk.f32.gmra.mxu0 %vm3252_vm5, %v11980_v60  ;;  %8800 = vmatmul.mubr.msk.f32.vlgmr.msra.gmra.mxu1 %vm3252_vm5, %v11700_v13  ;;  %v13715_v13 = vld [vmem:[#allocation40_spill] sm:$0xff] }
 0x26a   : > { %8749 = vmatprep.mubr.msk.f32.mxu0 %vm3252_vm5, %v11194_v12  ;;  %8802 = vmatprep.mubr.msk.f32.mxu1 %vm3252_vm5, %v11705_v5  ;;  %v13709_v12 = vld [vmem:[#allocation14_spill] sm:$0xff] }
 0x26b   : > { %8898 = vmatpush3.msra.mxu1 %v11661_v29  ;;  %v13712_v29 = vld [vmem:[#allocation30_spill] sm:$0xff] }
 0x26d   : > { %8750 = vmatmul.mubr.msk.f32.vlgmr.msra.gmra.mxu0 %vm3252_vm5, %v11197_v18  ;;  %8803 = vmatmul.mubr.msk.f32.gmra.mxu1 %vm3252_vm5, %v11721_v22  ;;  %v13710_v18 = vld [vmem:[#allocation39_spill] sm:$0xff] }
 0x26e   : > { %8848 = vmatpush3.msra.mxu0 %v11675_v17  ;;  %8752 = vmatprep.mubr.msk.f32.mxu0 %vm3252_vm5, %v11228_v8  ;;  %v13713_v17 = vld [vmem:[#allocation32_spill] sm:$0xff] }
 0x26f   : > { %8947 = vmatprep.subr.mxu0 %v11994_v2  ;;  %8805 = vmatprep.mubr.msk.f32.mxu1 %vm3252_vm5, %v11726_v36 }
 0x271   : > { %8753 = vmatmul.mubr.msk.f32.gmra.mxu0 %vm3252_vm5, %v11231_v54  ;;  %8806 = vmatmul.mubr.msk.f32.gmra.mxu1 %vm3252_vm5, %v11742_v31 }
 0x272   : > { %8755 = vmatprep.mubr.msk.f32.mxu0 %vm3252_vm5, %v11261_v39  ;;  %8808 = vmatprep.mubr.msk.f32.mxu1 %vm3252_vm5, %v11747_v25 }
 0x275   : > { %8756 = vmatmul.mubr.msk.f32.gmra.mxu0 %vm3252_vm5, %v13709_v12  ;;  %8809 = vmatmul.mubr.msk.f32.gmra.mxu1 %vm3252_vm5, %v11763_v50 }
 0x276   : > { %8758 = vmatprep.mubr.msk.f32.mxu0 %vm3252_vm5, %v13710_v18  ;;  %8811 = vmatprep.mubr.msk.f32.mxu1 %vm3252_vm5, %v11768_v42 }
 0x279   : > { %8759 = vmatmul.mubr.msk.f32.gmra.mxu0 %vm3252_vm5, %v13711_v33  ;;  %8812 = vmatmul.mubr.msk.f32.gmra.mxu1 %vm3252_vm5, %v11784_v9 }
 0x27a   : > { %8761 = vmatprep.mubr.msk.f32.mxu0 %vm3252_vm5, %v13712_v29  ;;  %8814 = vmatprep.mubr.msk.f32.mxu1 %vm3252_vm5, %v11789_v23  ;;  %v3824_v23 = vld [vmem:[#allocation3 + $0x190] sm:$0x3] }
 0x27d   : > { %8762 = vmatmul.mubr.msk.f32.gmra.mxu0 %vm3252_vm5, %v13713_v17  ;;  %8815 = vmatmul.mubr.msk.f32.gmra.mxu1 %vm3252_vm5, %v11805_v37  ;;  %v13731_v37 = vld [vmem:[#allocation10_spill] sm:$0xff] }
 0x27e   : > { %8764 = vmatprep.mubr.msk.f32.mxu0 %vm3252_vm5, %v13714_v56  ;;  %8817 = vmatprep.mubr.msk.f32.mxu1 %vm3252_vm5, %v11810_v47  ;;  %v13720_v47 = vld [vmem:[#allocation25_spill] sm:$0xff] }
 0x281   : > { %8765 = vmatmul.mubr.msk.f32.gmra.mxu0 %vm3252_vm5, %v13715_v13  ;;  %8818 = vmatmul.mubr.msk.f32.gmra.mxu1 %vm3252_vm5, %v11826_v63  ;;  %v13722_v63 = vld [vmem:[#allocation5_spill] sm:$0xff] }
 0x282   : > { %8767 = vmatprep.mubr.msk.f32.mxu0 %vm3252_vm5, %v13716_v10  ;;  %8820 = vmatprep.mubr.msk.f32.mxu1 %vm3252_vm5, %v11831_v15  ;;  %v13721_v15 = vld [vmem:[#allocation35_spill] sm:$0xff] }
 0x285   : > { %8768 = vmatmul.mubr.msk.f32.gmra.mxu0 %vm3252_vm5, %v13717_v14  ;;  %8821 = vmatmul.mubr.msk.f32.gmra.mxu1 %vm3252_vm5, %v11847_v21  ;;  %v13724_v21 = vld [vmem:[#allocation42_spill] sm:$0xff] }
 0x286   : > { %8770 = vmatprep.mubr.msk.f32.mxu0 %vm3252_vm5, %v13718_v59  ;;  %8823 = vmatprep.mubr.msk.f32.mxu1 %vm3252_vm5, %v11852_v58  ;;  %v13723_v58 = vld [vmem:[#allocation7_spill] sm:$0xff] }
 0x289   : > { %8771 = vmatmul.mubr.msk.f32.gmra.mxu0 %vm3252_vm5, %v13719_v3  ;;  %8824 = vmatmul.mubr.msk.f32.gmra.mxu1 %vm3252_vm5, %v11868_v55  ;;  %v13726_v55 = vld [vmem:[#allocation15_spill] sm:$0xff] }
 0x28a   : > { %8773 = vmatprep.mubr.msk.f32.mxu0 %vm3252_vm5, %v13720_v47  ;;  %8826 = vmatprep.mubr.msk.f32.mxu1 %vm3252_vm5, %v11873_v46  ;;  %v13725_v46 = vld [vmem:[#allocation27_spill] sm:$0xff] }
 0x28d   : > { %8774 = vmatmul.mubr.msk.f32.gmra.mxu0 %vm3252_vm5, %v13721_v15  ;;  %8827 = vmatmul.mubr.msk.f32.gmra.mxu1 %vm3252_vm5, %v11889_v57  ;;  %v13728_v57 = vld [vmem:[#allocation29_spill] sm:$0xff] }
 0x28e   : > { %8776 = vmatprep.mubr.msk.f32.mxu0 %vm3252_vm5, %v13722_v63  ;;  %8829 = vmatprep.mubr.msk.f32.mxu1 %vm3252_vm5, %v11894_v28  ;;  %v13727_v28 = vld [vmem:[#allocation12_spill] sm:$0xff] }
 0x291   : > { %8777 = vmatmul.mubr.msk.f32.gmra.mxu0 %vm3252_vm5, %v13723_v58  ;;  %8830 = vmatmul.mubr.msk.f32.gmra.mxu1 %vm3252_vm5, %v11908_v48  ;;  %v13730_v48 = vld [vmem:[#allocation13_spill] sm:$0xff] }
 0x292   : > { %8779 = vmatprep.mubr.msk.f32.mxu0 %vm3252_vm5, %v13724_v21  ;;  %8832 = vmatprep.mubr.msk.f32.mxu1 %vm3252_vm5, %v11915_v41  ;;  %v13729_v41 = vld [vmem:[#allocation33_spill] sm:$0xff] }
 0x295   : > { %8780 = vmatmul.mubr.msk.f32.gmra.mxu0 %vm3252_vm5, %v13725_v46  ;;  %8833 = vmatmul.mubr.msk.f32.gmra.mxu1 %vm3252_vm5, %v11927_v26  ;;  %v5475_v26 = vrot.slane %v11972_v0, 2 }
 0x296   : > { %8782 = vmatprep.mubr.msk.f32.mxu0 %vm3252_vm5, %v13726_v55  ;;  %8835 = vmatprep.mubr.msk.f32.mxu1 %vm3252_vm5, %v11932_v16  ;;  %v5474_v16 = vrot.slane %v11958_v38, 2 }
 0x299   : > { %8783 = vmatmul.mubr.msk.f32.gmra.mxu0 %vm3252_vm5, %v13727_v28  ;;  %8836 = vmatmul.mubr.msk.f32.gmra.mxu1 %vm3252_vm5, %v11944_v30  ;;  %v5206_v30 = vrot.slane %v11958_v38, 1 }
 0x29a   : > { %8785 = vmatprep.mubr.msk.f32.mxu0 %vm3252_vm5, %v13728_v57  ;;  %8838 = vmatprep.mubr.msk.f32.mxu1 %vm3252_vm5, %v11949_v52  ;;  %v5207_v52 = vrot.slane %v11972_v0, 1 }
 0x29c   : > { %v12120_v9 = vsel %vm451_vm3, %v5206_v30, %v5207_v52  ;;  %v12136_v30 = vpop.f32.mrf.mxu1 }
 0x29d   : > { %8786 = vmatmul.mubr.msk.f32.gmra.mxu0 %vm3252_vm5, %v13729_v41  ;;  %8839 = vmatmul.mubr.msk.f32.gmra.mxu1 %vm3252_vm5, %v11963_v40  ;;  %v12113_v40 = vsel %vm1119_vm4, %v5474_v16, %v5475_v26 }
 0x29e   : > { %8788 = vmatprep.mubr.msk.f32.mxu0 %vm3252_vm5, %v13730_v48  ;;  %8841 = vmatprep.mubr.msk.f32.mxu1 %vm3252_vm5, %v11968_v44  ;;  %13732 = vst [vmem:[#allocation14_spill] sm:$0xff] %v12113_v40  ;;  %v5477_v44 = vrot.slane %v3824_v23, 2 }
 0x2a0   : > { %v12125_v42 = vsel %vm1119_vm4, %v5475_v26, %v5477_v44  ;;  %v9014_v26 = vld [vmem:[#allocation3 + $0x48] sm:$0xff] }
 0x2a1   : > { %8789 = vmatmul.mubr.msk.f32.gmra.mxu0 %vm3252_vm5, %v13731_v37  ;;  %8842 = vmatmul.mubr.msk.f32.gmra.mxu1 %vm3252_vm5, %v11980_v60  ;;  %13733 = vst [vmem:[#allocation39_spill] sm:$0xff] %v12125_v42  ;;  %v5209_v60 = vrot.slane %v3824_v23, 1  ;;  %v9013_v23 = vld [vmem:[#allocation3 + $0x38] sm:$0xff] }
 0x2a2   : > { %8791 = vmatprep.mubr.msk.f32.mxu0 %vm3252_vm5, %v11642_v51  ;;  %8844 = vmatprep.mubr.msk.f32.mxu1 %vm3252_vm5, %v12113_v40  ;;  %v9012_v40 = vld [vmem:[#allocation3 + $0x30] sm:$0xff] }
 0x2a3   : > { %v12132_v16 = vsel %vm451_vm3, %v5207_v52, %v5209_v60  ;;  %v12146_v52 = vpop.f32.mrf.mxu0 }
 0x2a5   : > { %8792 = vmatmul.mubr.msk.f32.gmra.mxu0 %vm3252_vm5, %v11645_v11  ;;  %8845 = vmatmul.mubr.msk.f32.gmra.mxu1 %vm3252_vm5, %v12125_v42  ;;  %v9017_v42 = vld [vmem:[#allocation3 + $0x68] sm:$0xff] }
 0x2a6   : > { %8794 = vmatprep.mubr.msk.f32.mxu0 %vm3252_vm5, %v12120_v9  ;;  %8899 = vmatprep.mubr.msk.f32.mxu1 %vm3252_vm5, %v11228_v8 }
 0x2a9   : > { %8795 = vmatmul.mubr.msk.f32.gmra.mxu0 %vm3252_vm5, %v12132_v16  ;;  %8900 = vmatmul.mubr.msk.f32.vlgmr.msra.gmra.mxu1 %vm3252_vm5, %v11231_v54 }
 0x2aa   : > { %8849 = vmatprep.mubr.msk.f32.mxu0 %vm3252_vm5, %v9012_v40  ;;  %8902 = vmatprep.mubr.msk.f32.mxu1 %vm3252_vm5, %v11261_v39  ;;  %v9015_v39 = vld [vmem:[#allocation3 + $0x50] sm:$0xff] }
 0x2ab   : > { %v8604_v8 = vpop.f32.mrf.mxu1 }
 0x2ad   : > { %8850 = vmatmul.mubr.msk.f32.vlgmr.msra.gmra.mxu0 %vm3252_vm5, %v9013_v23  ;;  %8903 = vmatmul.mubr.msk.f32.gmra.mxu1 %vm3252_vm5, %v13709_v12  ;;  %v4388_v40 = vpop.f32.mrf.mxu1 }
 0x2ae   : > { %8948 = vmatpush3.msra.mxu0 %v11994_v2  ;;  %8852 = vmatprep.mubr.msk.f32.mxu0 %vm3252_vm5, %v9014_v26  ;;  %v9016_v2 = vld [vmem:[#allocation3 + $0x60] sm:$0xff] }
 0x2af   : > { %8905 = vmatprep.mubr.msk.f32.mxu1 %vm3252_vm5, %v13710_v18  ;;  %v8554_v54 = vpop.f32.mrf.mxu0 }
 0x2b0   : > { %v8607_v44 = vpop.f32.mrf.mxu1  ;;  %v12153_v60 = vadd.f32 %v8604_v8, %v8554_v54  ;;  %v9018_v54 = vld [vmem:[#allocation3 + $0x78] sm:$0xff] }
 0x2b1   : > { %8853 = vmatmul.mubr.msk.f32.gmra.mxu0 %vm3252_vm5, %v9015_v39  ;;  %8906 = vmatmul.mubr.msk.f32.gmra.mxu1 %vm3252_vm5, %v13711_v33  ;;  %v4099_v23 = vpop.f32.mrf.mxu0 }
 0x2b2   : > { %8855 = vmatprep.mubr.msk.f32.mxu0 %vm3252_vm5, %v9016_v2  ;;  %v4398_v26 = vpop.f32.mrf.mxu1  ;;  %v12158_v12 = vadd.f32 %v4388_v40, %v4099_v23  ;;  %8908 = vmatprep.mubr.msk.f32.mxu1 %vm3252_vm5, %v13712_v29  ;;  %v9019_v23 = vld [vmem:[#allocation3 + $0x80] sm:$0xff] }
 0x2b3   : > { %v8557_v18 = vpop.f32.mrf.mxu0 }
 0x2b4   : > { %v8610_v39 = vpop.f32.mrf.mxu1  ;;  %v12163_v8 = vadd.f32 %v8607_v44, %v8557_v18  ;;  %v9020_v18 = vld [vmem:[#allocation3 + $0x90] sm:$0xff] }
 0x2b5   : > { %8856 = vmatmul.mubr.msk.f32.gmra.mxu0 %vm3252_vm5, %v9017_v42  ;;  %8909 = vmatmul.mubr.msk.f32.gmra.mxu1 %vm3252_vm5, %v13713_v17  ;;  %v4109_v33 = vpop.f32.mrf.mxu0 }
 0x2b6   : > { %8858 = vmatprep.mubr.msk.f32.mxu0 %vm3252_vm5, %v9018_v54  ;;  %v4408_v2 = vpop.f32.mrf.mxu1  ;;  %v12168_v40 = vadd.f32 %v4398_v26, %v4109_v33  ;;  %8911 = vmatprep.mubr.msk.f32.mxu1 %vm3252_vm5, %v13714_v56  ;;  %v9021_v33 = vld [vmem:[#allocation3 + $0x98] sm:$0xff] }
 0x2b7   : > { %v8560_v29 = vpop.f32.mrf.mxu0 }
 0x2b8   : > { %v8613_v42 = vpop.f32.mrf.mxu1  ;;  %v12173_v44 = vadd.f32 %v8610_v39, %v8560_v29  ;;  %v9022_v29 = vld [vmem:[#allocation3 + $0xa8] sm:$0xff] }
 0x2b9   : > { %8859 = vmatmul.mubr.msk.f32.gmra.mxu0 %vm3252_vm5, %v9019_v23  ;;  %8912 = vmatmul.mubr.msk.f32.gmra.mxu1 %vm3252_vm5, %v13715_v13  ;;  %v4119_v17 = vpop.f32.mrf.mxu0 }
 0x2ba   : > { %8861 = vmatprep.mubr.msk.f32.mxu0 %vm3252_vm5, %v9020_v18  ;;  %v4418_v54 = vpop.f32.mrf.mxu1  ;;  %v12178_v26 = vadd.f32 %v4408_v2, %v4119_v17  ;;  %8914 = vmatprep.mubr.msk.f32.mxu1 %vm3252_vm5, %v13716_v10  ;;  %v9023_v17 = vld [vmem:[#allocation3 + $0xb0] sm:$0xff] }
 0x2bc   : > { %v8563_v56 = vpop.f32.mrf.mxu0  ;;  %v8616_v39 = vpop.f32.mrf.mxu1 }
 0x2bd   : > { %8862 = vmatmul.mubr.msk.f32.gmra.mxu0 %vm3252_vm5, %v9021_v33  ;;  %v12183_v23 = vadd.f32 %v8613_v42, %v8563_v56  ;;  %8915 = vmatmul.mubr.msk.f32.gmra.mxu1 %vm3252_vm5, %v13717_v14 }
 0x2be   : > { %8864 = vmatprep.mubr.msk.f32.mxu0 %vm3252_vm5, %v9022_v29  ;;  %v4129_v13 = vpop.f32.mrf.mxu0  ;;  %8917 = vmatprep.mubr.msk.f32.mxu1 %vm3252_vm5, %v13718_v59  ;;  %v4428_v10 = vpop.f32.mrf.mxu1 }
 0x2bf   : > { %v12188_v18 = vadd.f32 %v4418_v54, %v4129_v13 }
 0x2c0   : > { %v8566_v2 = vpop.f32.mrf.mxu0  ;;  %v8619_v56 = vpop.f32.mrf.mxu1 }
 0x2c1   : > { %8865 = vmatmul.mubr.msk.f32.gmra.mxu0 %vm3252_vm5, %v9023_v17  ;;  %v12193_v42 = vadd.f32 %v8616_v39, %v8566_v2  ;;  %8918 = vmatmul.mubr.msk.f32.gmra.mxu1 %vm3252_vm5, %v13719_v3 }
 0x2c2   : > { %8867 = vmatprep.mubr.msk.f32.mxu0 %vm3252_vm5, %v11400_v20  ;;  %v4139_v14 = vpop.f32.mrf.mxu0  ;;  %8920 = vmatprep.mubr.msk.f32.mxu1 %vm3252_vm5, %v13720_v47  ;;  %v4438_v59 = vpop.f32.mrf.mxu1 }
 0x2c3   : > { %v12199_v54 = vadd.f32 %v4428_v10, %v4139_v14 }
 0x2c4   : > { %v8569_v33 = vpop.f32.mrf.mxu0  ;;  %v8622_v29 = vpop.f32.mrf.mxu1 }
 0x2c5   : > { %8868 = vmatmul.mubr.msk.f32.gmra.mxu0 %vm3252_vm5, %v11402_v43  ;;  %v12205_v39 = vadd.f32 %v8619_v56, %v8569_v33  ;;  %8921 = vmatmul.mubr.msk.f32.gmra.mxu1 %vm3252_vm5, %v13721_v15 }
 0x2c6   : > { %8870 = vmatprep.mubr.msk.f32.mxu0 %vm3252_vm5, %v11434_v62  ;;  %v4149_v3 = vpop.f32.mrf.mxu0  ;;  %8923 = vmatprep.mubr.msk.f32.mxu1 %vm3252_vm5, %v13722_v63  ;;  %v4448_v47 = vpop.f32.mrf.mxu1 }
 0x2c7   : > { %v12211_v20 = vadd.f32 %v4438_v59, %v4149_v3 }
 0x2c8   : > { %v8572_v13 = vpop.f32.mrf.mxu0  ;;  %v8625_v10 = vpop.f32.mrf.mxu1 }
 0x2c9   : > { %8871 = vmatmul.mubr.msk.f32.gmra.mxu0 %vm3252_vm5, %v11436_v53  ;;  %v12217_v43 = vadd.f32 %v8622_v29, %v8572_v13  ;;  %8924 = vmatmul.mubr.msk.f32.gmra.mxu1 %vm3252_vm5, %v13723_v58 }
 0x2ca   : > { %8873 = vmatprep.mubr.msk.f32.mxu0 %vm3252_vm5, %v11473_v35  ;;  %v4159_v62 = vpop.f32.mrf.mxu0  ;;  %8926 = vmatprep.mubr.msk.f32.mxu1 %vm3252_vm5, %v13724_v21  ;;  %v4458_v63 = vpop.f32.mrf.mxu1 }
 0x2cb   : > { %v12223_v15 = vadd.f32 %v4448_v47, %v4159_v62  ;;  %v12283_v62 = vld [vmem:[#allocation3 + $0x1a8] sm:$0x3] }
 0x2cc   : > { %v8575_v2 = vpop.f32.mrf.mxu0  ;;  %v8628_v17 = vpop.f32.mrf.mxu1 }
 0x2cd   : > { %8874 = vmatmul.mubr.msk.f32.gmra.mxu0 %vm3252_vm5, %v11475_v49  ;;  %v12229_v53 = vadd.f32 %v8625_v10, %v8575_v2  ;;  %8927 = vmatmul.mubr.msk.f32.gmra.mxu1 %vm3252_vm5, %v13725_v46 }
 0x2ce   : > { %8876 = vmatprep.mubr.msk.f32.mxu0 %vm3252_vm5, %v11499_v7  ;;  %v4169_v35 = vpop.f32.mrf.mxu0  ;;  %8929 = vmatprep.mubr.msk.f32.mxu1 %vm3252_vm5, %v13726_v55  ;;  %v4468_v21 = vpop.f32.mrf.mxu1 }
 0x2cf   : > { %v12235_v58 = vadd.f32 %v4458_v63, %v4169_v35 }
 0x2d0   : > { %v8578_v56 = vpop.f32.mrf.mxu0 }
 0x2d1   : > { %8877 = vmatmul.mubr.msk.f32.gmra.mxu0 %vm3252_vm5, %v11501_v19  ;;  %v12241_v49 = vadd.f32 %v8628_v17, %v8578_v56  ;;  %v8631_v14 = vpop.f32.mrf.mxu1  ;;  %8930 = vmatmul.mubr.msk.f32.gmra.mxu1 %vm3252_vm5, %v13727_v28  ;;  %v6011_v17 = vrot.slane %v12283_v62, 1 }
 0x2d2   : > { %8879 = vmatprep.mubr.msk.f32.mxu0 %vm3252_vm5, %v11529_v4  ;;  %v4179_v7 = vpop.f32.mrf.mxu0  ;;  %8932 = vmatprep.mubr.msk.f32.mxu1 %vm3252_vm5, %v13728_v57 }
 0x2d3   : > { %v12247_v46 = vadd.f32 %v4468_v21, %v4179_v7  ;;  %v4478_v55 = vpop.f32.mrf.mxu1 }
 0x2d5   : > { %v8581_v59 = vpop.f32.mrf.mxu0  ;;  %8880 = vmatmul.mubr.msk.f32.gmra.mxu0 %vm3252_vm5, %v11531_v34  ;;  %v8634_v33 = vpop.f32.mrf.mxu1  ;;  %8933 = vmatmul.mubr.msk.f32.gmra.mxu1 %vm3252_vm5, %v13729_v41  ;;  %v12271_v41 = vld [vmem:[#allocation3 + $0x1a0] sm:$0xff] }
 0x2d6   : > { %v12253_v19 = vadd.f32 %v8631_v14, %v8581_v59  ;;  %8882 = vmatprep.mubr.msk.f32.mxu0 %vm3252_vm5, %v11562_v61  ;;  %8935 = vmatprep.mubr.msk.f32.mxu1 %vm3252_vm5, %v13730_v48  ;;  %v12269_v61 = vld [vmem:[#allocation3 + $0x198] sm:$0xff]  ;;  %v6009_v10 = vrot.slane %v12271_v41, 1 }
 0x2d7   : > { %v4189_v4 = vpop.f32.mrf.mxu0  ;;  %v4488_v57 = vpop.f32.mrf.mxu1 }
 0x2d8   : > { %v12259_v28 = vadd.f32 %v4478_v55, %v4189_v4  ;;  %v6012_v7 = vsel %vm451_vm3, %v6009_v10, %v6011_v17 }
 0x2d9   : > { %v8584_v29 = vpop.f32.mrf.mxu0  ;;  %8883 = vmatmul.mubr.msk.f32.gmra.mxu0 %vm3252_vm5, %v11564_v27  ;;  %v8637_v3 = vpop.f32.mrf.mxu1  ;;  %8936 = vmatmul.mubr.msk.f32.gmra.mxu1 %vm3252_vm5, %v13731_v37 }
 0x2da   : > { %v12265_v34 = vadd.f32 %v8634_v33, %v8584_v29  ;;  %8885 = vmatprep.mubr.msk.f32.mxu0 %vm3252_vm5, %v11594_v1  ;;  %8938 = vmatprep.mubr.msk.f32.mxu1 %vm3252_vm5, %v11642_v51  ;;  %v6008_v1 = vrot.slane %v12269_v61, 1 }
 0x2db   : > { %v4199_v47 = vpop.f32.mrf.mxu0  ;;  %v4498_v27 = vpop.f32.mrf.mxu1 }
 0x2dc   : > { %v12275_v48 = vadd.f32 %v4488_v57, %v4199_v47  ;;  %v6010_v21 = vsel %vm451_vm3, %v6008_v1, %v6009_v10 }
 0x2dd   : > { %v8587_v13 = vpop.f32.mrf.mxu0  ;;  %8886 = vmatmul.mubr.msk.f32.gmra.mxu0 %vm3252_vm5, %v11596_v32  ;;  %v8640_v37 = vpop.f32.mrf.mxu1  ;;  %8939 = vmatmul.mubr.msk.f32.gmra.mxu1 %vm3252_vm5, %v11645_v11 }
 0x2de   : > { %v12285_v63 = vadd.f32 %v8637_v3, %v8587_v13  ;;  %8888 = vmatprep.mubr.msk.f32.mxu0 %vm3252_vm5, %v11624_v6  ;;  %8941 = vmatprep.mubr.msk.f32.mxu1 %vm3252_vm5, %v12120_v9  ;;  %v4379_v13 = vadd.f32 %v12136_v30, %v12146_v52 }
 0x2df   : > { %v4209_v51 = vpop.f32.mrf.mxu0  ;;  %v4508_v32 = vpop.f32.mrf.mxu1 }
 0x2e0   : > { %v12291_v2 = vadd.f32 %v4498_v27, %v4209_v51 }
 0x2e1   : > { %v8590_v35 = vpop.f32.mrf.mxu0  ;;  %8889 = vmatmul.mubr.msk.f32.gmra.mxu0 %vm3252_vm5, %v11626_v24  ;;  %v8643_v6 = vpop.f32.mrf.mxu1  ;;  %8942 = vmatmul.mubr.msk.f32.gmra.mxu1 %vm3252_vm5, %v12132_v16 }
 0x2e2   : > { %v12299_v56 = vadd.f32 %v8640_v37, %v8590_v35  ;;  %8891 = vmatprep.mubr.msk.f32.mxu0 %vm3252_vm5, %v11958_v38  ;;  %8944 = vmatprep.mubr.msk.f32.mxu1 %vm3252_vm5, %v6010_v21 }
 0x2e3   : > { %v4219_v11 = vpop.f32.mrf.mxu0  ;;  %v4518_v14 = vpop.f32.mrf.mxu1 }
 0x2e4   : > { %v12305_v9 = vadd.f32 %v4508_v32, %v4219_v11  ;;  %v13734_v11 = vld [vmem:[#allocation47_spill] sm:$0xff] }
 0x2e5   : > { %v8593_v24 = vpop.f32.mrf.mxu0  ;;  %8892 = vmatmul.mubr.msk.f32.gmra.mxu0 %vm3252_vm5, %v11972_v0  ;;  %v8646_v59 = vpop.f32.mrf.mxu1  ;;  %8945 = vmatmul.mubr.msk.f32.gmra.mxu1 %vm3252_vm5, %v6012_v7 }
 0x2e6   : > { %v12311_v55 = vadd.f32 %v8643_v6, %v8593_v24  ;;  %8894 = vmatprep.mubr.msk.f32.mxu0 %vm3252_vm5, %v12269_v61 }
 0x2e7   : > { %v4229_v38 = vpop.f32.mrf.mxu0  ;;  %v4528_v33 = vpop.f32.mrf.mxu1 }
 0x2e8   : > { %v12316_v16 = vadd.f32 %v4518_v14, %v4229_v38  ;;  %v13735_v38 = vld [vmem:[#allocation53_spill] sm:$0xff] }
 0x2e9   : > { %v8596_v4 = vpop.f32.mrf.mxu0  ;;  %8895 = vmatmul.mubr.msk.f32.gmra.mxu0 %vm3252_vm5, %v12271_v41  ;;  %v8701_v29 = vpop.f32.mrf.mxu1 }
 0x2ea   : > { %v12320_v57 = vadd.f32 %v8646_v59, %v8596_v4  ;;  %8949 = vmatprep.mubr.msk.f32.mxu0 %vm3252_vm5, %v11705_v5 }
 0x2eb   : > { %v4239_v0 = vpop.f32.mrf.mxu0  ;;  %v5014_v47 = vpop.f32.mrf.mxu1 }
 0x2ec   : > { %v12324_v3 = vadd.f32 %v4528_v33, %v4239_v0  ;;  %v13736_v33 = vld [vmem:[#allocation56_spill] sm:$0xff] }
 0x2ed   : > { %v8651_v27 = vpop.f32.mrf.mxu0  ;;  %8950 = vmatmul.mubr.msk.f32.vlgmr.msra.gmra.mxu0 %vm3252_vm5, %v11721_v22  ;;  %v8704_v10 = vpop.f32.mrf.mxu1 }
 0x2ee   : > { %v4909_v1 = vadd.f32 %v8651_v27, %v11910_v45  ;;  %8952 = vmatprep.mubr.msk.f32.mxu0 %vm3252_vm5, %v11726_v36 }
 0x2ef   : > { %v4749_v37 = vpop.f32.mrf.mxu0  ;;  %v5024_v32 = vpop.f32.mrf.mxu1 }
 0x2f0   : > { %v4908_v51 = vadd.f32 %v4749_v37, %v4379_v13  ;;  %v12333_v5 = vadd.f32 %v8701_v29, %v4909_v1  ;;  %v13737_v13 = vld [vmem:[#allocation60_spill] sm:$0xff] }
 0x2f1   : > { %v8654_v17 = vpop.f32.mrf.mxu0  ;;  %8953 = vmatmul.mubr.msk.f32.gmra.mxu0 %vm3252_vm5, %v11742_v31  ;;  %v8707_v45 = vpop.f32.mrf.mxu1 }
 0x2f2   : > { %v4911_v22 = vadd.f32 %v8654_v17, %v12153_v60  ;;  %8955 = vmatprep.mubr.msk.f32.mxu0 %vm3252_vm5, %v11747_v25  ;;  %v12340_v30 = vadd.f32 %v5014_v47, %v4908_v51 }
 0x2f3   : > { %v4759_v52 = vpop.f32.mrf.mxu0  ;;  %v5034_v21 = vpop.f32.mrf.mxu1 }
 0x2f4   : > { %v4910_v36 = vadd.f32 %v4759_v52, %v12158_v12  ;;  %v12343_v35 = vadd.f32 %v8704_v10, %v4911_v22  ;;  %v13738_v10 = vld [vmem:[#allocation62_spill] sm:$0xff] }
 0x2f5   : > { %v8657_v6 = vpop.f32.mrf.mxu0  ;;  %8956 = vmatmul.mubr.msk.f32.gmra.mxu0 %vm3252_vm5, %v11763_v50  ;;  %v8710_v25 = vpop.f32.mrf.mxu1 }
 0x2f6   : > { %v4913_v31 = vadd.f32 %v8657_v6, %v12163_v8  ;;  %8958 = vmatprep.mubr.msk.f32.mxu0 %vm3252_vm5, %v13734_v11  ;;  %v12350_v60 = vadd.f32 %v5024_v32, %v4910_v36  ;;  %v13740_v36 = vld [vmem:[#allocation58_spill] sm:$0xff] }
 0x2f7   : > { %v4769_v14 = vpop.f32.mrf.mxu0  ;;  %v5044_v12 = vpop.f32.mrf.mxu1 }
 0x2f8   : > { %v4912_v7 = vadd.f32 %v4769_v14, %v12168_v40  ;;  %v12353_v24 = vadd.f32 %v8707_v45, %v4913_v31  ;;  %v13739_v45 = vld [vmem:[#allocation57_spill] sm:$0xff]  ;;  %v13741_v14 = vld [vmem:[#allocation63_spill] sm:$0xff] }
 0x2f9   : > { %v8660_v59 = vpop.f32.mrf.mxu0  ;;  %8959 = vmatmul.mubr.msk.f32.gmra.mxu0 %vm3252_vm5, %v13735_v38  ;;  %v8713_v4 = vpop.f32.mrf.mxu1 }
 0x2fa   : > { %v4915_v50 = vadd.f32 %v8660_v59, %v12173_v44  ;;  %8961 = vmatprep.mubr.msk.f32.mxu0 %vm3252_vm5, %v13736_v33  ;;  %v12360_v8 = vadd.f32 %v5034_v21, %v4912_v7 }
 0x2fb   : > { %v4779_v29 = vpop.f32.mrf.mxu0  ;;  %v5054_v40 = vpop.f32.mrf.mxu1 }
 0x2fc   : > { %v4914_v0 = vadd.f32 %v4779_v29, %v12178_v26  ;;  %v12363_v47 = vadd.f32 %v8710_v25, %v4915_v50  ;;  %v13743_v29 = vld [vmem:[#allocation65_spill] sm:$0xff] }
 0x2fd   : > { %v8663_v27 = vpop.f32.mrf.mxu0  ;;  %8962 = vmatmul.mubr.msk.f32.gmra.mxu0 %vm3252_vm5, %v13737_v13  ;;  %v8716_v37 = vpop.f32.mrf.mxu1 }
 0x2fe   : > { %v4917_v1 = vadd.f32 %v8663_v27, %v12183_v23  ;;  %8964 = vmatprep.mubr.msk.f32.mxu0 %vm3252_vm5, %v13738_v10  ;;  %v12370_v44 = vadd.f32 %v5044_v12, %v4914_v0  ;;  %v13742_v12 = vld [vmem:[#allocation64_spill] sm:$0xff] }
 0x2ff   : > { %v4789_v51 = vpop.f32.mrf.mxu0  ;;  %v5064_v26 = vpop.f32.mrf.mxu1 }
 0x300   : > { %v4916_v32 = vadd.f32 %v4789_v51, %v12188_v18  ;;  %v12373_v17 = vadd.f32 %v8713_v4, %v4917_v1  ;;  %v13745_v51 = vld [vmem:[#allocation69_spill] sm:$0xff] }
 0x301   : > { %v8666_v22 = vpop.f32.mrf.mxu0  ;;  %8965 = vmatmul.mubr.msk.f32.gmra.mxu0 %vm3252_vm5, %v13739_v45  ;;  %v8719_v21 = vpop.f32.mrf.mxu1 }
 0x302   : > { %v4919_v52 = vadd.f32 %v8666_v22, %v12193_v42  ;;  %8967 = vmatprep.mubr.msk.f32.mxu0 %vm3252_vm5, %v13740_v36  ;;  %v12380_v23 = vadd.f32 %v5054_v40, %v4916_v32  ;;  %v13744_v40 = vld [vmem:[#allocation66_spill] sm:$0xff] }
 0x303   : > { %v4799_v6 = vpop.f32.mrf.mxu0  ;;  %v5074_v18 = vpop.f32.mrf.mxu1 }
 0x304   : > { %v4918_v31 = vadd.f32 %v4799_v6, %v12199_v54  ;;  %v12383_v11 = vadd.f32 %v8716_v37, %v4919_v52  ;;  %v13747_v6 = vld [vmem:[#allocation72_spill] sm:$0xff] }
 0x305   : > { %v8669_v25 = vpop.f32.mrf.mxu0  ;;  %8968 = vmatmul.mubr.msk.f32.gmra.mxu0 %vm3252_vm5, %v13741_v14  ;;  %v8722_v59 = vpop.f32.mrf.mxu1 }
 0x306   : > { %v4921_v7 = vadd.f32 %v8669_v25, %v12205_v39  ;;  %8970 = vmatprep.mubr.msk.f32.mxu0 %vm3252_vm5, %v13742_v12  ;;  %v12390_v42 = vadd.f32 %v5064_v26, %v4918_v31  ;;  %v13746_v26 = vld [vmem:[#allocation70_spill] sm:$0xff] }
 0x307   : > { %v4809_v38 = vpop.f32.mrf.mxu0  ;;  %v5084_v54 = vpop.f32.mrf.mxu1 }
 0x308   : > { %v4920_v50 = vadd.f32 %v4809_v38, %v12211_v20  ;;  %v12393_v33 = vadd.f32 %v8719_v21, %v4921_v7  ;;  %v13749_v38 = vld [vmem:[#allocation74_spill] sm:$0xff] }
 0x309   : > { %v8672_v4 = vpop.f32.mrf.mxu0  ;;  %8971 = vmatmul.mubr.msk.f32.gmra.mxu0 %vm3252_vm5, %v13743_v29  ;;  %v8725_v27 = vpop.f32.mrf.mxu1 }
 0x30a   : > { %v4923_v0 = vadd.f32 %v8672_v4, %v12217_v43  ;;  %8973 = vmatprep.mubr.msk.f32.mxu0 %vm3252_vm5, %v13744_v40  ;;  %v12400_v39 = vadd.f32 %v5074_v18, %v4920_v50  ;;  %v13748_v18 = vld [vmem:[#allocation73_spill] sm:$0xff] }
 0x30b   : > { %v4819_v13 = vpop.f32.mrf.mxu0  ;;  %v5094_v20 = vpop.f32.mrf.mxu1 }
 0x30c   : > { %v4922_v1 = vadd.f32 %v4819_v13, %v12223_v15  ;;  %v12403_v10 = vadd.f32 %v8722_v59, %v4923_v0  ;;  %v13751_v13 = vld [vmem:[#allocation76_spill] sm:$0xff] }
 0x30d   : > { %v8675_v37 = vpop.f32.mrf.mxu0  ;;  %8974 = vmatmul.mubr.msk.f32.gmra.mxu0 %vm3252_vm5, %v13745_v51  ;;  %v8728_v22 = vpop.f32.mrf.mxu1 }
 0x30e   : > { %v4925_v32 = vadd.f32 %v8675_v37, %v12229_v53  ;;  %8976 = vmatprep.mubr.msk.f32.mxu0 %vm3252_vm5, %v13746_v26  ;;  %v12410_v43 = vadd.f32 %v5084_v54, %v4922_v1  ;;  %v13750_v54 = vld [vmem:[#allocation75_spill] sm:$0xff] }
 0x30f   : > { %v4829_v45 = vpop.f32.mrf.mxu0  ;;  %v5104_v15 = vpop.f32.mrf.mxu1 }
 0x310   : > { %v4924_v52 = vadd.f32 %v4829_v45, %v12235_v58  ;;  %v12413_v36 = vadd.f32 %v8725_v27, %v4925_v32  ;;  %v13753_v45 = vld [vmem:[#allocation78_spill] sm:$0xff] }
 0x311   : > { %v8678_v21 = vpop.f32.mrf.mxu0  ;;  %8977 = vmatmul.mubr.msk.f32.gmra.mxu0 %vm3252_vm5, %v13747_v6  ;;  %v8731_v25 = vpop.f32.mrf.mxu1 }
 0x312   : > { %v4927_v31 = vadd.f32 %v8678_v21, %v12241_v49  ;;  %8979 = vmatprep.mubr.msk.f32.mxu0 %vm3252_vm5, %v13748_v18  ;;  %v12420_v53 = vadd.f32 %v5094_v20, %v4924_v52  ;;  %v13752_v20 = vld [vmem:[#allocation77_spill] sm:$0xff]  ;;  %v6276_v21 = vrot.slane %v12269_v61, 2  ;;  %v6279_v61 = vrot.slane %v12283_v62, 2 }
 0x313   : > { %v4839_v14 = vpop.f32.mrf.mxu0  ;;  %v5114_v58 = vpop.f32.mrf.mxu1 }
 0x314   : > { %v4926_v7 = vadd.f32 %v4839_v14, %v12247_v46  ;;  %v12423_v12 = vadd.f32 %v8728_v22, %v4927_v31 }
 0x315   : > { %v8681_v59 = vpop.f32.mrf.mxu0  ;;  %8980 = vmatmul.mubr.msk.f32.gmra.mxu0 %vm3252_vm5, %v13749_v38  ;;  %v8734_v4 = vpop.f32.mrf.mxu1 }
 0x316   : > { %v4929_v50 = vadd.f32 %v8681_v59, %v12253_v19  ;;  %8982 = vmatprep.mubr.msk.f32.mxu0 %vm3252_vm5, %v13750_v54  ;;  %v12430_v49 = vadd.f32 %v5104_v15, %v4926_v7  ;;  %v13754_v15 = vld [vmem:[#allocation79_spill] sm:$0xff]  ;;  %v13756_v59 = vld [vmem:[#allocation14_spill] sm:$0xff] }
 0x317   : > { %v4849_v29 = vpop.f32.mrf.mxu0  ;;  %v5124_v46 = vpop.f32.mrf.mxu1 }
 0x318   : > { %v4928_v0 = vadd.f32 %v4849_v29, %v12259_v28  ;;  %v12433_v40 = vadd.f32 %v8731_v25, %v4929_v50 }
 0x319   : > { %v8684_v27 = vpop.f32.mrf.mxu0  ;;  %8983 = vmatmul.mubr.msk.f32.gmra.mxu0 %vm3252_vm5, %v13751_v13  ;;  %v8737_v37 = vpop.f32.mrf.mxu1 }
 0x31a   : > { %v4931_v1 = vadd.f32 %v8684_v27, %v12265_v34  ;;  %8985 = vmatprep.mubr.msk.f32.mxu0 %vm3252_vm5, %v13752_v20  ;;  %v12440_v19 = vadd.f32 %v5114_v58, %v4928_v0  ;;  %v13755_v58 = vld [vmem:[#allocation80_spill] sm:$0xff] }
 0x31b   : > { %v4859_v51 = vpop.f32.mrf.mxu0  ;;  %v5134_v28 = vpop.f32.mrf.mxu1 }
 0x31c   : > { %v4930_v32 = vadd.f32 %v4859_v51, %v12275_v48  ;;  %v12443_v26 = vadd.f32 %v8734_v4, %v4931_v1  ;;  %v6277_v48 = vrot.slane %v12271_v41, 2 }
 0x31d   : > { %v8687_v22 = vpop.f32.mrf.mxu0  ;;  %8986 = vmatmul.mubr.msk.f32.gmra.mxu0 %vm3252_vm5, %v13753_v45  ;;  %v8740_v6 = vpop.f32.mrf.mxu1 }
 0x31e   : > { %v4933_v52 = vadd.f32 %v8687_v22, %v12285_v63  ;;  %8988 = vmatprep.mubr.msk.f32.mxu0 %vm3252_vm5, %v13754_v15  ;;  %v12450_v34 = vadd.f32 %v5124_v46, %v4930_v32  ;;  %v13757_v46 = vld [vmem:[#allocation39_spill] sm:$0xff]  ;;  %v6280_v62 = vsel %vm1119_vm4, %v6277_v48, %v6279_v61 }
 0x31f   : > { %v4869_v31 = vpop.f32.mrf.mxu0  ;;  %v5144_v14 = vpop.f32.mrf.mxu1 }
 0x320   : > { %v4932_v18 = vadd.f32 %v4869_v31, %v12291_v2  ;;  %v12455_v25 = vadd.f32 %v8737_v37, %v4933_v52  ;;  %v6278_v2 = vsel %vm1119_vm4, %v6276_v21, %v6277_v48 }
 0x321   : > { %v8690_v7 = vpop.f32.mrf.mxu0  ;;  %8989 = vmatmul.mubr.msk.f32.gmra.mxu0 %vm3252_vm5, %v13755_v58  ;;  %v8743_v50 = vpop.f32.mrf.mxu1 }
 0x322   : > { %v4935_v63 = vadd.f32 %v8690_v7, %v12299_v56  ;;  %8991 = vmatprep.mubr.msk.f32.mxu0 %vm3252_vm5, %v13756_v59  ;;  %v12463_v38 = vadd.f32 %v5134_v28, %v4932_v18 }
 0x323   : > { %v4879_v41 = vpop.f32.mrf.mxu0  ;;  %v5154_v29 = vpop.f32.mrf.mxu1 }
 0x324   : > { %v4934_v54 = vadd.f32 %v4879_v41, %v12305_v9  ;;  %v12467_v4 = vadd.f32 %v8740_v6, %v4935_v63 }
 0x325   : > { %v8693_v0 = vpop.f32.mrf.mxu0  ;;  %8992 = vmatmul.mubr.msk.f32.gmra.mxu0 %vm3252_vm5, %v13757_v46  ;;  %v8746_v13 = vpop.f32.mrf.mxu1 }
 0x326   : > { %v4937_v56 = vadd.f32 %v8693_v0, %v12311_v55  ;;  %8994 = vmatprep.mubr.msk.f32.mxu0 %vm3252_vm5, %v6278_v2  ;;  %v12474_v27 = vadd.f32 %v5144_v14, %v4934_v54 }
 0x327   : > { %v4889_v1 = vpop.f32.mrf.mxu0  ;;  %v5164_v37 = vpop.f32.mrf.mxu1 }
 0x328   : > { %v4936_v20 = vadd.f32 %v4889_v1, %v12316_v16  ;;  %v12477_v9 = vadd.f32 %v8743_v50, %v4937_v56 }
 0x329   : > { %v8696_v51 = vpop.f32.mrf.mxu0  ;;  %8995 = vmatmul.mubr.msk.f32.gmra.mxu0 %vm3252_vm5, %v6280_v62  ;;  %v12483_v55 = vpop.f32.mrf.mxu1 }
 0x32a   : > { %v4939_v32 = vadd.f32 %v8696_v51, %v12320_v57  ;;  %v12481_v28 = vadd.f32 %v5154_v29, %v4936_v20 }
 0x32b   : > { %v4899_v22 = vpop.f32.mrf.mxu0  ;;  %v12488_v15 = vpop.f32.mrf.mxu1 }
 0x32c   : > { %v4938_v45 = vadd.f32 %v4899_v22, %v12324_v3  ;;  %v12486_v52 = vadd.f32 %v8746_v13, %v4939_v32 }
 0x32d   : > { %v8751_v16 = vpop.f32.mrf.mxu0  ;;  %v12495_v31 = vpop.f32.mrf.mxu1 }
 0x32e   : > { %v12491_v21 = vadd.f32 %v8751_v16, %v12333_v5  ;;  %v12493_v6 = vadd.f32 %v5164_v37, %v4938_v45 }
 0x32f   : > { %v5283_v57 = vpop.f32.mrf.mxu0  ;;  %v12500_v18 = vpop.f32.mrf.mxu1 }
 0x330   : > { %v12498_v48 = vadd.f32 %v5283_v57, %v12340_v30 }
 0x331   : > { %v8754_v14 = vpop.f32.mrf.mxu0  ;;  %v12505_v7 = vpop.f32.mrf.mxu1 }
 0x332   : > { %v12503_v3 = vadd.f32 %v8754_v14, %v12343_v35 }
 0x333   : > { %v5293_v58 = vpop.f32.mrf.mxu0  ;;  %v12510_v63 = vpop.f32.mrf.mxu1 }
 0x334   : > { %v12508_v5 = vadd.f32 %v5293_v58, %v12350_v60 }
 0x335   : > { %v8757_v59 = vpop.f32.mrf.mxu0  ;;  %v12515_v30 = vpop.f32.mrf.mxu1 }
 0x336   : > { %v12513_v61 = vadd.f32 %v8757_v59, %v12353_v24 }
 0x337   : > { %v5303_v50 = vpop.f32.mrf.mxu0  ;;  %v12520_v35 = vpop.f32.mrf.mxu1 }
 0x338   : > { %v12518_v41 = vadd.f32 %v5303_v50, %v12360_v8 }
 0x339   : > { %v8760_v2 = vpop.f32.mrf.mxu0  ;;  %v12525_v60 = vpop.f32.mrf.mxu1 }
 0x33a   : > { %v12523_v54 = vadd.f32 %v8760_v2, %v12363_v47 }
 0x33b   : > { %v5313_v29 = vpop.f32.mrf.mxu0  ;;  %v12530_v24 = vpop.f32.mrf.mxu1 }
 0x33c   : > { %v12528_v0 = vadd.f32 %v5313_v29, %v12370_v44 }
 0x33d   : > { %v8763_v46 = vpop.f32.mrf.mxu0  ;;  %v12535_v8 = vpop.f32.mrf.mxu1 }
 0x33e   : > { %v12533_v56 = vadd.f32 %v8763_v46, %v12373_v17 }
 0x33f   : > { %v5323_v62 = vpop.f32.mrf.mxu0  ;;  %v12540_v47 = vpop.f32.mrf.mxu1 }
 0x340   : > { %v12538_v13 = vadd.f32 %v5323_v62, %v12380_v23  ;;  %13758 = vst [vmem:[#allocation18_spill] sm:$0xff] %v12540_v47 }
 0x341   : > { %v8766_v1 = vpop.f32.mrf.mxu0  ;;  %v12545_v44 = vpop.f32.mrf.mxu1 }
 0x342   : > { %v12543_v20 = vadd.f32 %v8766_v1, %v12383_v11  ;;  %13759 = vst [vmem:[#allocation30_spill] sm:$0xff] %v12545_v44 }
 0x343   : > { %v5333_v37 = vpop.f32.mrf.mxu0  ;;  %v12550_v17 = vpop.f32.mrf.mxu1 }
 0x344   : > { %v12548_v51 = vadd.f32 %v5333_v37, %v12390_v42  ;;  %13760 = vst [vmem:[#allocation32_spill] sm:$0xff] %v12550_v17  ;;  %v13829_v17 = vld [vmem:[#allocation16_spill] sm:$0xff] }
 0x345   : > { %v8769_v32 = vpop.f32.mrf.mxu0  ;;  %v12555_v23 = vpop.f32.mrf.mxu1 }
 0x346   : > { %v12553_v22 = vadd.f32 %v8769_v32, %v12393_v33  ;;  %13762 = vst [vmem:[#allocation40_spill] sm:$0xff] %v12555_v23  ;;  %v13823_v23 = vld [vmem:[#allocation19_spill] sm:$0xff] }
 0x347   : > { %v5343_v45 = vpop.f32.mrf.mxu0  ;;  %v12560_v11 = vpop.f32.mrf.mxu1 }
 0x348   : > { %13761 = vst [vmem:[#allocation22_spill] sm:$0xff] %v12553_v22  ;;  %v12558_v16 = vadd.f32 %v5343_v45, %v12400_v39  ;;  %13764 = vst [vmem:[#allocation4_spill] sm:$0xff] %v12560_v11 }
 0x349   : > { %v8772_v57 = vpop.f32.mrf.mxu0  ;;  %v12565_v42 = vpop.f32.mrf.mxu1 }
 0x34a   : > { %13763 = vst [vmem:[#allocation26_spill] sm:$0xff] %v12558_v16  ;;  %v12563_v14 = vadd.f32 %v8772_v57, %v12403_v10  ;;  %13766 = vst [vmem:[#allocation41_spill] sm:$0xff] %v12565_v42 }
 0x34b   : > { %v5353_v58 = vpop.f32.mrf.mxu0  ;;  %v12570_v33 = vpop.f32.mrf.mxu1 }
 0x34c   : > { %13765 = vst [vmem:[#allocation31_spill] sm:$0xff] %v12563_v14  ;;  %v12568_v59 = vadd.f32 %v5353_v58, %v12410_v43  ;;  %13768 = vst [vmem:[#allocation35_spill] sm:$0xff] %v12570_v33 }
 0x34d   : > { %v8775_v50 = vpop.f32.mrf.mxu0  ;;  %v12575_v39 = vpop.f32.mrf.mxu1 }
 0x34e   : > { %13767 = vst [vmem:[#allocation25_spill] sm:$0xff] %v12568_v59  ;;  %v12573_v2 = vadd.f32 %v8775_v50, %v12413_v36  ;;  %13770 = vst [vmem:[#allocation7_spill] sm:$0xff] %v12575_v39  ;;  %v13821_v59 = vld [vmem:[#allocation9_spill] sm:$0xff] }
 0x34f   : > { %v5363_v29 = vpop.f32.mrf.mxu0  ;;  %v12580_v10 = vpop.f32.mrf.mxu1 }
 0x350   : > { %13769 = vst [vmem:[#allocation5_spill] sm:$0xff] %v12573_v2  ;;  %v12578_v46 = vadd.f32 %v5363_v29, %v12420_v53  ;;  %13772 = vst [vmem:[#allocation27_spill] sm:$0xff] %v12580_v10 }
 0x351   : > { %v8778_v62 = vpop.f32.mrf.mxu0  ;;  %v12585_v43 = vpop.f32.mrf.mxu1 }
 0x352   : > { %13771 = vst [vmem:[#allocation42_spill] sm:$0xff] %v12578_v46  ;;  %v12583_v1 = vadd.f32 %v8778_v62, %v12423_v12  ;;  %13774 = vst [vmem:[#allocation12_spill] sm:$0xff] %v12585_v43 }
 0x353   : > { %v5373_v37 = vpop.f32.mrf.mxu0  ;;  %v12590_v36 = vpop.f32.mrf.mxu1 }
 0x354   : > { %13773 = vst [vmem:[#allocation15_spill] sm:$0xff] %v12583_v1  ;;  %v12588_v32 = vadd.f32 %v5373_v37, %v12430_v49  ;;  %13776 = vst [vmem:[#allocation33_spill] sm:$0xff] %v12590_v36 }
 0x355   : > { %v8781_v45 = vpop.f32.mrf.mxu0  ;;  %v12595_v53 = vpop.f32.mrf.mxu1 }
 0x356   : > { %13775 = vst [vmem:[#allocation29_spill] sm:$0xff] %v12588_v32  ;;  %v12593_v57 = vadd.f32 %v8781_v45, %v12433_v40  ;;  %13778 = vst [vmem:[#allocation10_spill] sm:$0xff] %v12595_v53 }
 0x357   : > { %v5383_v58 = vpop.f32.mrf.mxu0  ;;  %v12600_v12 = vpop.f32.mrf.mxu1 }
 0x358   : > { %13777 = vst [vmem:[#allocation13_spill] sm:$0xff] %v12593_v57  ;;  %v12598_v50 = vadd.f32 %v5383_v58, %v12440_v19  ;;  %13780 = vst [vmem:[#allocation53_spill] sm:$0xff] %v12600_v12 }
 0x359   : > { %v8784_v29 = vpop.f32.mrf.mxu0  ;;  %v12605_v49 = vpop.f32.mrf.mxu1 }
 0x35a   : > { %13779 = vst [vmem:[#allocation47_spill] sm:$0xff] %v12598_v50  ;;  %v12603_v62 = vadd.f32 %v8784_v29, %v12443_v26  ;;  %13782 = vst [vmem:[#allocation60_spill] sm:$0xff] %v12605_v49 }
 0x35b   : > { %v5393_v37 = vpop.f32.mrf.mxu0  ;;  %v12610_v40 = vpop.f32.mrf.mxu1 }
 0x35c   : > { %13781 = vst [vmem:[#allocation56_spill] sm:$0xff] %v12603_v62  ;;  %v12608_v36 = vadd.f32 %v5393_v37, %v12450_v34  ;;  %13784 = vst [vmem:[#allocation57_spill] sm:$0xff] %v12610_v40 }
 0x35d   : > { %v8787_v45 = vpop.f32.mrf.mxu0  ;;  %v12615_v19 = vpop.f32.mrf.mxu1 }
 0x35e   : > { %13783 = vst [vmem:[#allocation62_spill] sm:$0xff] %v12608_v36  ;;  %v12613_v53 = vadd.f32 %v8787_v45, %v12455_v25  ;;  %13786 = vst [vmem:[#allocation63_spill] sm:$0xff] %v12615_v19 }
 0x35f   : > { %v5403_v58 = vpop.f32.mrf.mxu0  ;;  %v12620_v26 = vpop.f32.mrf.mxu1 }
 0x360   : > { %13785 = vst [vmem:[#allocation58_spill] sm:$0xff] %v12613_v53  ;;  %v12618_v12 = vadd.f32 %v5403_v58, %v12463_v38  ;;  %13788 = vst [vmem:[#allocation65_spill] sm:$0xff] %v12620_v26 }
 0x361   : > { %v8790_v29 = vpop.f32.mrf.mxu0  ;;  %v12625_v34 = vpop.f32.mrf.mxu1 }
 0x362   : > { %13787 = vst [vmem:[#allocation64_spill] sm:$0xff] %v12618_v12  ;;  %v12623_v49 = vadd.f32 %v8790_v29, %v12467_v4  ;;  %13790 = vst [vmem:[#allocation69_spill] sm:$0xff] %v12625_v34 }
 0x363   : > { %v5413_v37 = vpop.f32.mrf.mxu0  ;;  %v12630_v25 = vpop.f32.mrf.mxu1 }
 0x364   : > { %13789 = vst [vmem:[#allocation66_spill] sm:$0xff] %v12623_v49  ;;  %v12628_v40 = vadd.f32 %v5413_v37, %v12474_v27  ;;  %13792 = vst [vmem:[#allocation72_spill] sm:$0xff] %v12630_v25 }
 0x365   : > { %v8793_v45 = vpop.f32.mrf.mxu0  ;;  %v12635_v38 = vpop.f32.mrf.mxu1 }
 0x366   : > { %13791 = vst [vmem:[#allocation70_spill] sm:$0xff] %v12628_v40  ;;  %v12633_v19 = vadd.f32 %v8793_v45, %v12477_v9  ;;  %13794 = vst [vmem:[#allocation74_spill] sm:$0xff] %v12635_v38 }
 0x367   : > { %v5423_v58 = vpop.f32.mrf.mxu0  ;;  %v12640_v4 = vpop.f32.mrf.mxu1 }
 0x368   : > { %13793 = vst [vmem:[#allocation73_spill] sm:$0xff] %v12633_v19  ;;  %v12638_v26 = vadd.f32 %v5423_v58, %v12481_v28  ;;  %13796 = vst [vmem:[#allocation76_spill] sm:$0xff] %v12640_v4 }
 0x369   : > { %v8796_v29 = vpop.f32.mrf.mxu0  ;;  %v12645_v37 = vpop.f32.mrf.mxu1 }
 0x36a   : > { %13795 = vst [vmem:[#allocation75_spill] sm:$0xff] %v12638_v26  ;;  %v12643_v34 = vadd.f32 %v8796_v29, %v12486_v52 }
 0x36b   : > { %v5433_v27 = vpop.f32.mrf.mxu0  ;;  %v12654_v38 = vpop.f32.mrf.mxu1 }
 0x36c   : > { %13797 = vst [vmem:[#allocation77_spill] sm:$0xff] %v12643_v34  ;;  %v12648_v25 = vadd.f32 %v5433_v27, %v12493_v6 }
 0x36d   : > { %v12650_v9 = vpop.f32.mrf.mxu0  ;;  %v12660_v4 = vpop.f32.mrf.mxu1 }
 0x36e   : > { %13798 = vst [vmem:[#allocation78_spill] sm:$0xff] %v12648_v25 }
 0x36f   : > { %v12652_v45 = vpop.f32.mrf.mxu0  ;;  %v12666_v34 = vpop.f32.mrf.mxu1 }
 0x371   : > { %v12656_v28 = vpop.f32.mrf.mxu0  ;;  %v12672_v25 = vpop.f32.mrf.mxu1 }
 0x373   : > { %v12658_v58 = vpop.f32.mrf.mxu0  ;;  %v12678_v40 = vpop.f32.mrf.mxu1 }
 0x375   : > { %v12662_v52 = vpop.f32.mrf.mxu0  ;;  %v12684_v53 = vpop.f32.mrf.mxu1 }
 0x377   : > { %v12664_v29 = vpop.f32.mrf.mxu0  ;;  %v12690_v50 = vpop.f32.mrf.mxu1 }
 0x378   : > { %13804 = vst [vmem:[#allocation82_spill] sm:$0xff] %v12690_v50 }
 0x379   : > { %v12668_v6 = vpop.f32.mrf.mxu0  ;;  %v12696_v10 = vpop.f32.mrf.mxu1 }
 0x37a   : > { %13807 = vst [vmem:[#allocation85_spill] sm:$0xff] %v12696_v10 }
 0x37b   : > { %v12670_v27 = vpop.f32.mrf.mxu0  ;;  %v12702_v1 = vpop.f32.mrf.mxu1 }
 0x37c   : > { %13810 = vst [vmem:[#allocation88_spill] sm:$0xff] %v12702_v1  ;;  %v13828_v1 = vld [vmem:[#allocation43_spill] sm:$0xff] }
 0x37d   : > { %v12674_v26 = vpop.f32.mrf.mxu0  ;;  %v12708_v42 = vpop.f32.mrf.mxu1 }
 0x37e   : > { %13813 = vst [vmem:[#allocation91_spill] sm:$0xff] %v12708_v42 }
 0x37f   : > { %v12676_v19 = vpop.f32.mrf.mxu0 }
 0x380   : > { %13799 = vst [vmem:[#allocation79_spill] sm:$0xff] %v12676_v19 }
 0x381   : > { %v12680_v49 = vpop.f32.mrf.mxu0 }
 0x382   : > { %13800 = vst [vmem:[#allocation80_spill] sm:$0xff] %v12680_v49 }
 0x383   : > { %v12682_v12 = vpop.f32.mrf.mxu0 }
 0x384   : > { %13801 = vst [vmem:[#allocation14_spill] sm:$0xff] %v12682_v12  ;;  %v13834_v12 = vld [vmem:[#allocation48_spill] sm:$0xff] }
 0x385   : > { %v12686_v36 = vpop.f32.mrf.mxu0 }
 0x386   : > { %13802 = vst [vmem:[#allocation39_spill] sm:$0xff] %v12686_v36 }
 0x387   : > { %v12688_v62 = vpop.f32.mrf.mxu0 }
 0x388   : > { %13803 = vst [vmem:[#allocation81_spill] sm:$0xff] %v12688_v62 }
 0x389   : > { %v12692_v43 = vpop.f32.mrf.mxu0 }
 0x38a   : > { %13805 = vst [vmem:[#allocation83_spill] sm:$0xff] %v12692_v43  ;;  %v12714_v43 = vpop.f32.mrf.mxu1 }
 0x38b   : > { %v12694_v57 = vpop.f32.mrf.mxu0  ;;  %13816 = vst [vmem:[#allocation94_spill] sm:$0xff] %v12714_v43 }
 0x38c   : > { %13806 = vst [vmem:[#allocation84_spill] sm:$0xff] %v12694_v57 }
 0x38d   : > { %v12698_v32 = vpop.f32.mrf.mxu0 }
 0x38e   : > { %13808 = vst [vmem:[#allocation86_spill] sm:$0xff] %v12698_v32 }
 0x38f   : > { %v12700_v39 = vpop.f32.mrf.mxu0 }
 0x390   : > { %13809 = vst [vmem:[#allocation87_spill] sm:$0xff] %v12700_v39  ;;  %v12721_v39 = vld [vmem:[%s13231_s4 + $0x4] ss:$0 sm:$0xff] }
 0x391   : > { %v12704_v33 = vpop.f32.mrf.mxu0  ;;  %v3707_v14 = vmul.f32 %v13823_v23, %v12721_v39  ;;  %v3708_v36 = vmul.f32 %v12721_v39, %v13828_v1  ;;  %v3711_v16 = vmul.f32 %v13829_v17, %v12721_v39  ;;  %v13831_v23 = vld [vmem:[#allocation44_spill] sm:$0xff]  ;;  %v3715_v1 = vmul.f32 %v13834_v12, %v12721_v39  ;;  %v13838_v12 = vld [vmem:[#allocation50_spill] sm:$0xff] }
 0x392   : > { %13811 = vst [vmem:[#allocation89_spill] sm:$0xff] %v12704_v33  ;;  %v12725_v33 = vpop.f32.mrf.mxu1 }
 0x393   : > { %v12706_v46 = vpop.f32.mrf.mxu0  ;;  %13819 = vst [vmem:[#allocation97_spill] sm:$0xff] %v12725_v33 }
 0x394   : > { %13812 = vst [vmem:[#allocation90_spill] sm:$0xff] %v12706_v46 }
 0x395   : > { %v12710_v2 = vpop.f32.mrf.mxu0 }
 0x396   : > { %13814 = vst [vmem:[#allocation92_spill] sm:$0xff] %v12710_v2  ;;  %v3705_v2 = vmul.f32 %v13821_v59, %v12721_v39  ;;  %v12746_v59 = vpop.f32.mrf.mxu1 }
 0x397   : > { %v12712_v11 = vpop.f32.mrf.mxu0 }
 0x398   : > { %13815 = vst [vmem:[#allocation93_spill] sm:$0xff] %v12712_v11  ;;  %v12734_v11 = vld [vmem:[%s13231_s4 + $0x5] ss:$0 sm:$0xff]  ;;  %v12787_v47 = vpop.f32.mrf.mxu1 }
 0x399   : > { %v12716_v57 = vpop.f32.mrf.mxu0  ;;  %v12769_v17 = vadd.f32 %v12734_v11, %v3707_v14  ;;  %v13839_v14 = vld [vmem:[#allocation52_spill] sm:$0xff] }
 0x39a   : > { %13817 = vst [vmem:[#allocation95_spill] sm:$0xff] %v12716_v57  ;;  %v13822_v57 = vld [vmem:[#allocation11_spill] sm:$0xff]  ;;  %v3719_v50 = vmul.f32 %v13839_v14, %v12721_v39  ;;  %v12807_v14 = vadd.f32 %v12734_v11, %v3715_v1 }
 0x39b   : > { %v12723_v32 = vpop.f32.mrf.mxu0  ;;  %v3704_v43 = vmul.f32 %v12721_v39, %v13822_v57  ;;  %13827 = vst [vmem:[#allocation11_spill] sm:$0xff] %v12746_v59  ;;  %v13830_v57 = vld [vmem:[#allocation37_spill] sm:$0xff] }
 0x39c   : > { %13818 = vst [vmem:[#allocation96_spill] sm:$0xff] %v12723_v32  ;;  %v13825_v32 = vld [vmem:[#allocation23_spill] sm:$0xff]  ;;  %v3710_v44 = vmul.f32 %v12721_v39, %v13830_v57  ;;  %v13835_v57 = vld [vmem:[#allocation6_spill] sm:$0xff]  ;;  %13844 = vst [vmem:[#allocation44_spill] sm:$0xff] %v12807_v14 }
 0x39d   : > { %v12727_v46 = vpop.f32.mrf.mxu0  ;;  %v3706_v33 = vmul.f32 %v12721_v39, %v13825_v32  ;;  %v12759_v32 = vadd.f32 %v12734_v11, %v3705_v2  ;;  %v12766_v10 = vadd.f32 %v12734_v11, %v3704_v43  ;;  %v3716_v43 = vmul.f32 %v12721_v39, %v13838_v12 }
 0x39e   : > { %13820 = vst [vmem:[#allocation98_spill] sm:$0xff] %v12727_v46  ;;  %v13826_v46 = vld [vmem:[#allocation8_spill] sm:$0xff] }
 0x39f   : > { %v12740_v62 = vpop.f32.mrf.mxu0  ;;  %v3709_v42 = vmul.f32 %v13826_v46, %v12721_v39  ;;  %v13833_v46 = vld [vmem:[#allocation46_spill] sm:$0xff]  ;;  %v12778_v19 = vadd.f32 %v12734_v11, %v3706_v33  ;;  %13840 = vst [vmem:[#allocation8_spill] sm:$0xff] %v12787_v47  ;;  %v12796_v33 = vadd.f32 %v12734_v11, %v3710_v44  ;;  %v13845_v47 = vld [vmem:[#allocation17_spill] sm:$0xff]  ;;  %v12826_v14 = vadd.f32 %v12734_v11, %v3716_v43 }
 0x3a0   : > { %13824 = vst [vmem:[#allocation9_spill] sm:$0xff] %v12740_v62  ;;  %v3713_v62 = vmul.f32 %v13831_v23, %v12721_v39  ;;  %v3712_v59 = vmul.f32 %v12721_v39, %v13833_v46  ;;  %v3714_v23 = vmul.f32 %v12721_v39, %v13835_v57  ;;  %v12790_v57 = vadd.f32 %v12734_v11, %v3708_v36 }
 0x3a1   : > { %v12756_v22 = vpop.f32.mrf.mxu0  ;;  %v12781_v46 = vadd.f32 %v12734_v11, %v3709_v42  ;;  %v3718_v36 = vmul.f32 %v12721_v39, %v13845_v47  ;;  %v12829_v47 = vadd.f32 %v12734_v11, %v3719_v50 }
 0x3a2   : > { %13832 = vst [vmem:[#allocation19_spill] sm:$0xff] %v12756_v22  ;;  %v13836_v22 = vld [vmem:[#allocation45_spill] sm:$0xff]  ;;  %v12799_v42 = vadd.f32 %v12734_v11, %v3713_v62  ;;  %v12804_v12 = vadd.f32 %v12734_v11, %v3712_v59  ;;  %v12814_v44 = vadd.f32 %v12734_v11, %v3714_v23  ;;  %v13849_v59 = vld [vmem:[#allocation36_spill] sm:$0xff]  ;;  %v13853_v23 = vld [vmem:[#allocation38_spill] sm:$0xff] }
 0x3a3   : > { %v3717_v49 = vmul.f32 %v13836_v22, %v12721_v39  ;;  %v12775_v2 = vpop.f32.mrf.mxu0  ;;  %v12793_v22 = vadd.f32 %v12734_v11, %v3711_v16  ;;  %v5711_v16 = vadd.f32 %v12483_v55, %v12491_v21  ;;  %13851 = vst [vmem:[#allocation45_spill] sm:$0xff] %v12826_v14  ;;  %13852 = vst [vmem:[#allocation50_spill] sm:$0xff] %v12829_v47  ;;  %v13856_v14 = vld [vmem:[#allocation20_spill] sm:$0xff] }
 0x3a4   : > { %13837 = vst [vmem:[#allocation23_spill] sm:$0xff] %v12775_v2  ;;  %13841 = vst [vmem:[#allocation43_spill] sm:$0xff] %v12799_v42  ;;  %v5710_v21 = vadd.f32 %v12488_v15, %v12498_v48  ;;  %v3724_v50 = vmul.f32 %v12721_v39, %v13856_v14  ;;  %v13859_v15 = vld [vmem:[#allocation21_spill] sm:$0xff]  ;;  %v13860_v14 = vld [vmem:[#allocation24_spill] sm:$0xff] }
 0x3a5   : > { %v12801_v2 = vpop.f32.mrf.mxu0  ;;  %13843 = vst [vmem:[#allocation37_spill] sm:$0xff] %v12804_v12  ;;  %13846 = vst [vmem:[#allocation46_spill] sm:$0xff] %v12814_v44  ;;  %v12817_v62 = vadd.f32 %v12734_v11, %v3717_v49  ;;  %v3720_v12 = vmul.f32 %v12721_v39, %v13849_v59  ;;  %v5976_v55 = vadd.f32 %v12650_v9, %v5711_v16  ;;  %v12834_v49 = vpop.f32.mrf.mxu1 }
 0x3a6   : > { %13842 = vst [vmem:[#allocation16_spill] sm:$0xff] %v12801_v2  ;;  %v13848_v2 = vld [vmem:[#allocation54_spill] sm:$0xff]  ;;  %v12847_v9 = vadd.f32 %v12734_v11, %v3718_v36  ;;  %v3727_v48 = vmul.f32 %v13859_v15, %v12721_v39  ;;  %v5975_v16 = vadd.f32 %v12652_v45, %v5710_v21  ;;  %v13861_v36 = vld [vmem:[#allocation55_spill] sm:$0xff] }
 0x3a7   : > { %13847 = vst [vmem:[#allocation48_spill] sm:$0xff] %v12817_v62  ;;  %v3721_v42 = vmul.f32 %v13848_v2, %v12721_v39  ;;  %v12823_v1 = vpop.f32.mrf.mxu0  ;;  %v3723_v2 = vmul.f32 %v13853_v23, %v12721_v39  ;;  %v13854_v62 = vld [vmem:[#allocation49_spill] sm:$0xff]  ;;  %v5713_v23 = vadd.f32 %v12495_v31, %v12503_v3  ;;  %v13862_v15 = vld [vmem:[#allocation59_spill] sm:$0xff]  ;;  %v5712_v31 = vadd.f32 %v12500_v18, %v12508_v5  ;;  %v12871_v3 = vpop.f32.mrf.mxu1  ;;  %v12889_v18 = vld [vmem:[%s13231_s4 + $0x2] ss:$0 sm:$0xff] }
 0x3a8   : > { %13850 = vst [vmem:[#allocation6_spill] sm:$0xff] %v12823_v1  ;;  %v3722_v59 = vmul.f32 %v12721_v39, %v13854_v62  ;;  %v13855_v1 = vld [vmem:[#allocation51_spill] sm:$0xff]  ;;  %13858 = vst [vmem:[#allocation17_spill] sm:$0xff] %v12847_v9  ;;  %v3729_v9 = vmul.f32 %v13861_v36, %v12721_v39  ;;  %v3728_v45 = vmul.f32 %v12721_v39, %v13862_v15 }
 0x3a9   : > { %v3725_v43 = vmul.f32 %v13855_v1, %v12721_v39  ;;  %v12844_v47 = vpop.f32.mrf.mxu0  ;;  %v12855_v62 = vadd.f32 %v12734_v11, %v3721_v42  ;;  %v12858_v1 = vadd.f32 %v12734_v11, %v3720_v12  ;;  %v5978_v21 = vadd.f32 %v12656_v28, %v5713_v23 }
 0x3aa   : > { %13857 = vst [vmem:[#allocation52_spill] sm:$0xff] %v12844_v47  ;;  %v3726_v47 = vmul.f32 %v12721_v39, %v13860_v14  ;;  %v6245_v42 = vadd.f32 %v12645_v37, %v5976_v55  ;;  %v12875_v12 = vadd.f32 %v12734_v11, %v3723_v2  ;;  %v12878_v14 = vadd.f32 %v12734_v11, %v3722_v59 }
 0x3ab   : > { %v12864_v44 = vpop.f32.mrf.mxu0  ;;  %v12881_v36 = vadd.f32 %v12734_v11, %v3725_v43  ;;  %v12884_v15 = vadd.f32 %v12734_v11, %v3724_v50  ;;  %v12892_v37 = vadd.f32 %v12734_v11, %v3727_v48  ;;  %v5977_v28 = vadd.f32 %v12658_v58, %v5712_v31  ;;  %v12909_v48 = vld [vmem:[%s13231_s4 + $0x3] ss:$0 sm:$0xff] }
 0x3ac   : > { %v6244_v2 = vadd.f32 %v12654_v38, %v5975_v16  ;;  %v12897_v59 = vadd.f32 %v12734_v11, %v3726_v47  ;;  %v12900_v43 = vadd.f32 %v12734_v11, %v3729_v9  ;;  %v5715_v50 = vadd.f32 %v12505_v7, %v12513_v61  ;;  %v12914_v47 = vpop.f32.mrf.mxu1  ;;  %v13863_v7 = vld [vmem:[#allocation61_spill] sm:$0xff] }
 0x3ad   : > { %v8951_v5 = vpop.f32.mrf.mxu0  ;;  %v5714_v23 = vadd.f32 %v12510_v63, %v12518_v41  ;;  %v12912_v38 = vadd.f32 %v12734_v11, %v3728_v45  ;;  %v6247_v31 = vadd.f32 %v12660_v4, %v5978_v21  ;;  %v12920_v61 = vmul.f32 %v13863_v7, %v12721_v39  ;;  %v13864_v21 = vld [vmem:[#allocation28_spill] sm:$0xff] }
 0x3ae   : > { %v6513_v55 = vadd.f32 %v8951_v5, %v6245_v42  ;;  %v5980_v63 = vadd.f32 %v12662_v52, %v5715_v50  ;;  %v5717_v42 = vadd.f32 %v12515_v30, %v12523_v54  ;;  %v6246_v4 = vadd.f32 %v12666_v34, %v5977_v28  ;;  %v13865_v52 = vld [vmem:[#allocation34_spill] sm:$0xff] }
 0x3af   : > { %v6353_v58 = vpop.f32.mrf.mxu0  ;;  %v5979_v41 = vadd.f32 %v12664_v29, %v5714_v23  ;;  %v12935_v50 = vmul.f32 %v13865_v52, %v12721_v39  ;;  %v5716_v30 = vadd.f32 %v12520_v35, %v12528_v0  ;;  %v12940_v23 = vpop.f32.mrf.mxu1  ;;  %v5719_v7 = vadd.f32 %v12525_v60, %v12533_v56 }
 0x3b0   : > { %v6549_v9 = vmul.f32 %v12889_v18, %v6513_v55  ;;  %v6512_v16 = vadd.f32 %v6353_v58, %v6244_v2  ;;  %v12931_v58 = vmul.f32 %v12721_v39, %v13864_v21  ;;  %v5982_v29 = vadd.f32 %v12668_v6, %v5717_v42  ;;  %v13867_v21 = vld [vmem:[#allocation82_spill] sm:$0xff] }
 0x3b1   : > { %v8954_v45 = vpop.f32.mrf.mxu0  ;;  %v6249_v35 = vadd.f32 %v12672_v25, %v5980_v63  ;;  %v6248_v6 = vadd.f32 %v12678_v40, %v5979_v41  ;;  %v5984_v60 = vadd.f32 %v12674_v26, %v5719_v7  ;;  %v5718_v56 = vadd.f32 %v12530_v24, %v12538_v13  ;;  %v12964_v63 = vpop.f32.mrf.mxu1 }
 0x3b2   : > { %v6585_v5 = vadd.f32 %v12909_v48, %v6549_v9  ;;  %v6548_v55 = vmul.f32 %v12889_v18, %v6512_v16  ;;  %v6515_v2 = vadd.f32 %v8954_v45, %v6247_v31  ;;  %v5981_v31 = vadd.f32 %v12670_v27, %v5716_v30 }
 0x3b3   : > { %v6363_v54 = vpop.f32.mrf.mxu0  ;;  %v6251_v25 = vadd.f32 %v12684_v53, %v5982_v29  ;;  %v5721_v26 = vadd.f32 %v12535_v8, %v12543_v20  ;;  %v13869_v8 = vld [vmem:[#allocation80_spill] sm:$0xff] }
 0x3b4   : > { %v6617_v9 = vadd.f32 %v6585_v5, %v12759_v32  ;;  %v6584_v34 = vadd.f32 %v12909_v48, %v6548_v55  ;;  %v6551_v28 = vmul.f32 %v12889_v18, %v6515_v2  ;;  %v6514_v16 = vadd.f32 %v6363_v54, %v6246_v4  ;;  %v13866_v4 = vld [vmem:[#allocation18_spill] sm:$0xff] }
 0x3b5   : > { %v8957_v0 = vpop.f32.mrf.mxu0  ;;  %v5720_v24 = vadd.f32 %v13866_v4, %v12548_v51  ;;  %v6250_v52 = vadd.f32 %v13867_v21, %v5981_v31  ;;  %v5986_v20 = vadd.f32 %v13869_v8, %v5721_v26  ;;  %v13876_v4 = vld [vmem:[#allocation39_spill] sm:$0xff]  ;;  %v13879_v8 = vld [vmem:[#allocation81_spill] sm:$0xff] }
 0x3b6   : > { %v6649_v32 = vmax.f32 %v6617_v9, 0.0  ;;  %v6616_v42 = vadd.f32 %v6584_v34, %v12766_v10  ;;  %v6587_v27 = vadd.f32 %v12909_v48, %v6551_v28  ;;  %v6550_v45 = vmul.f32 %v12889_v18, %v6514_v16  ;;  %v13868_v9 = vld [vmem:[#allocation79_spill] sm:$0xff]  ;;  %v13870_v16 = vld [vmem:[#allocation85_spill] sm:$0xff] }
 0x3b7   : > { %v6517_v5 = vadd.f32 %v8957_v0, %v6249_v35  ;;  %v6373_v55 = vpop.f32.mrf.mxu0  ;;  %v5983_v34 = vadd.f32 %v13868_v9, %v5718_v56  ;;  %v6253_v7 = vadd.f32 %v13870_v16, %v5984_v60  ;;  %v12984_v35 = vpop.f32.mrf.mxu1  ;;  %v13881_v16 = vld [vmem:[#allocation40_spill] sm:$0xff] }
 0x3b8   : > { %6681 = vst.msk [vmem:[%s12953_s10 + $0x8] sm:$0xff] %vm3252_vm5, %v6649_v32  ;;  %v6648_v40 = vmax.f32 %v6616_v42, 0.0  ;;  %v6619_v10 = vadd.f32 %v6587_v27, %v12769_v17  ;;  %v6586_v41 = vadd.f32 %v12909_v48, %v6550_v45  ;;  %v6516_v2 = vadd.f32 %v6373_v55, %v6248_v6  ;;  %v13871_v32 = vld [vmem:[#allocation14_spill] sm:$0xff]  ;;  %v13875_v55 = vld [vmem:[#allocation32_spill] sm:$0xff] }
 0x3b9   : > { %v6553_v13 = vmul.f32 %v12889_v18, %v6517_v5  ;;  %v8960_v53 = vpop.f32.mrf.mxu0  ;;  %v5985_v42 = vadd.f32 %v13871_v32, %v5720_v24  ;;  %v13872_v27 = vld [vmem:[#allocation22_spill] sm:$0xff] }
 0x3ba   : > { %6680 = vst.msk [vmem:[%s12953_s10] sm:$0xff] %vm3252_vm5, %v6648_v40  ;;  %v6651_v29 = vmax.f32 %v6619_v10, 0.0  ;;  %v6618_v17 = vadd.f32 %v6586_v41, %v12778_v19  ;;  %v6552_v30 = vmul.f32 %v12889_v18, %v6516_v2  ;;  %v6519_v54 = vadd.f32 %v8960_v53, %v6251_v25  ;;  %v13873_v45 = vld [vmem:[#allocation30_spill] sm:$0xff]  ;;  %v13877_v53 = vld [vmem:[#allocation88_spill] sm:$0xff] }
 0x3bb   : > { %v6589_v51 = vadd.f32 %v12909_v48, %v6553_v13  ;;  %v6383_v28 = vpop.f32.mrf.mxu0  ;;  %v5723_v56 = vadd.f32 %v13873_v45, %v13872_v27  ;;  %v13874_v5 = vld [vmem:[#allocation26_spill] sm:$0xff]  ;;  %v6252_v21 = vadd.f32 %v13877_v53, %v5983_v34  ;;  %v13883_v27 = vld [vmem:[#allocation25_spill] sm:$0xff]  ;;  %v13884_v45 = vld [vmem:[#allocation4_spill] sm:$0xff] }
 0x3bc   : > { %6683 = vst.msk [vmem:[%s12953_s10 + $0x18] sm:$0xff] %vm3252_vm5, %v6651_v29  ;;  %v6650_v31 = vmax.f32 %v6618_v17, 0.0  ;;  %v6588_v19 = vadd.f32 %v12909_v48, %v6552_v30  ;;  %v6555_v0 = vmul.f32 %v12889_v18, %v6519_v54  ;;  %v6518_v6 = vadd.f32 %v6383_v28, %v6250_v52  ;;  %v13878_v29 = vld [vmem:[#allocation91_spill] sm:$0xff]  ;;  %v13004_v17 = vpop.f32.mrf.mxu1 }
 0x3bd   : > { %v5722_v25 = vadd.f32 %v13875_v55, %v13874_v5  ;;  %v6621_v60 = vadd.f32 %v6589_v51, %v12781_v46  ;;  %v8963_v40 = vpop.f32.mrf.mxu0  ;;  %v5988_v24 = vadd.f32 %v13876_v4, %v5723_v56  ;;  %v6255_v46 = vadd.f32 %v13878_v29, %v5986_v20  ;;  %v13880_v28 = vld [vmem:[#allocation31_spill] sm:$0xff]  ;;  %v13882_v20 = vld [vmem:[#allocation94_spill] sm:$0xff]  ;;  %v13885_v5 = vld [vmem:[#allocation5_spill] sm:$0xff] }
 0x3be   : > { %6682 = vst.msk [vmem:[%s12953_s10 + $0x10] sm:$0xff] %vm3252_vm5, %v6650_v31  ;;  %v6620_v10 = vadd.f32 %v6588_v19, %v12790_v57  ;;  %v6591_v41 = vadd.f32 %v12909_v48, %v6555_v0  ;;  %v6554_v2 = vmul.f32 %v12889_v18, %v6518_v6  ;;  %v6521_v26 = vadd.f32 %v8963_v40, %v6253_v7  ;;  %v13886_v55 = vld [vmem:[#allocation41_spill] sm:$0xff]  ;;  %v13889_v53 = vld [vmem:[#allocation83_spill] sm:$0xff] }
 0x3bf   : > { %v6653_v13 = vmax.f32 %v6621_v60, 0.0  ;;  %v6393_v52 = vpop.f32.mrf.mxu0  ;;  %v5987_v51 = vadd.f32 %v13879_v8, %v5722_v25  ;;  %v5725_v7 = vadd.f32 %v13881_v16, %v13880_v28  ;;  %v6254_v19 = vadd.f32 %v13882_v20, %v5985_v42  ;;  %v13892_v16 = vld [vmem:[#allocation86_spill] sm:$0xff] }
 0x3c0   : > { %v6652_v30 = vmax.f32 %v6620_v10, 0.0  ;;  %v6623_v57 = vadd.f32 %v6591_v41, %v12793_v22  ;;  %v6590_v54 = vadd.f32 %v12909_v48, %v6554_v2  ;;  %v6557_v9 = vmul.f32 %v12889_v18, %v6521_v26  ;;  %v13887_v10 = vld [vmem:[#allocation97_spill] sm:$0xff]  ;;  %v13025_v41 = vpop.f32.mrf.mxu1  ;;  %v13888_v2 = vld [vmem:[#allocation43_spill] sm:$0xff] }
 0x3c1   : > { %6685 = vst.msk [vmem:[%s12953_s10 + $0x28] sm:$0xff] %vm3252_vm5, %v6653_v13  ;;  %v6520_v34 = vadd.f32 %v6393_v52, %v6252_v21  ;;  %v8966_v31 = vpop.f32.mrf.mxu0  ;;  %v5724_v56 = vadd.f32 %v13884_v45, %v13883_v27  ;;  %v5727_v25 = vadd.f32 %v13886_v55, %v13885_v5  ;;  %v6257_v42 = vadd.f32 %v13887_v10, %v5988_v24  ;;  %v13890_v52 = vld [vmem:[#allocation84_spill] sm:$0xff] }
 0x3c2   : > { %6684 = vst.msk [vmem:[%s12953_s10 + $0x20] sm:$0xff] %vm3252_vm5, %v6652_v30  ;;  %v6655_v0 = vmax.f32 %v6623_v57, 0.0  ;;  %v6622_v22 = vadd.f32 %v6590_v54, %v12796_v33  ;;  %v6593_v6 = vadd.f32 %v12909_v48, %v6557_v9  ;;  %v6523_v32 = vadd.f32 %v8966_v31, %v6255_v46  ;;  %v13891_v57 = vld [vmem:[#allocation11_spill] sm:$0xff]  ;;  %v13893_v31 = vld [vmem:[#allocation42_spill] sm:$0xff]  ;;  %v13898_v45 = vld [vmem:[#allocation44_spill] sm:$0xff] }
 0x3c3   : > { %v6556_v60 = vmul.f32 %v12889_v18, %v6520_v34  ;;  %v6403_v40 = vpop.f32.mrf.mxu0  ;;  %v5990_v21 = vadd.f32 %v13889_v53, %v5725_v7  ;;  %v5989_v29 = vadd.f32 %v13890_v52, %v5724_v56  ;;  %v6256_v24 = vadd.f32 %v13891_v57, %v5987_v51  ;;  %v13894_v7 = vld [vmem:[#allocation35_spill] sm:$0xff]  ;;  %v13045_v51 = vpop.f32.mrf.mxu1 }
 0x3c4   : > { %6687 = vst.msk [vmem:[%s12953_s10 + $0x38] sm:$0xff] %vm3252_vm5, %v6655_v0  ;;  %v6654_v33 = vmax.f32 %v6622_v22, 0.0  ;;  %v6625_v26 = vadd.f32 %v6593_v6, %v13888_v2  ;;  %v6559_v4 = vmul.f32 %v12889_v18, %v6523_v32  ;;  %v6522_v13 = vadd.f32 %v6403_v40, %v6254_v19  ;;  %v13895_v19 = vld [vmem:[#allocation15_spill] sm:$0xff]  ;;  %v13897_v6 = vld [vmem:[#allocation37_spill] sm:$0xff] }
 0x3c5   : > { %v6592_v46 = vadd.f32 %v12909_v48, %v6556_v60  ;;  %v8969_v30 = vpop.f32.mrf.mxu0  ;;  %v5992_v34 = vadd.f32 %v13892_v16, %v5727_v25  ;;  %v5726_v20 = vadd.f32 %v13894_v7, %v13893_v31  ;;  %v13896_v0 = vld [vmem:[#allocation7_spill] sm:$0xff]  ;;  %v13905_v16 = vld [vmem:[#allocation48_spill] sm:$0xff] }
 0x3c6   : > { %6686 = vst.msk [vmem:[%s12953_s10 + $0x30] sm:$0xff] %vm3252_vm5, %v6654_v33  ;;  %v6657_v54 = vmax.f32 %v6625_v26, 0.0  ;;  %v6595_v9 = vadd.f32 %v12909_v48, %v6559_v4  ;;  %v6558_v8 = vmul.f32 %v12889_v18, %v6522_v13  ;;  %v6525_v28 = vadd.f32 %v8969_v30, %v6257_v42  ;;  %v13899_v60 = vld [vmem:[#allocation87_spill] sm:$0xff]  ;;  %v13900_v42 = vld [vmem:[#allocation8_spill] sm:$0xff]  ;;  %v13901_v13 = vld [vmem:[#allocation46_spill] sm:$0xff] }
 0x3c7   : > { %v5729_v22 = vadd.f32 %v13896_v0, %v13895_v19  ;;  %v6624_v32 = vadd.f32 %v6592_v46, %v13897_v6  ;;  %v6413_v27 = vpop.f32.mrf.mxu0  ;;  %v5991_v40 = vadd.f32 %v13899_v60, %v5726_v20  ;;  %v6259_v33 = vadd.f32 %v13900_v42, %v5990_v21  ;;  %v13902_v30 = vld [vmem:[#allocation89_spill] sm:$0xff]  ;;  %v13907_v0 = vld [vmem:[#allocation12_spill] sm:$0xff]  ;;  %v13908_v6 = vld [vmem:[#allocation47_spill] sm:$0xff] }
 0x3c8   : > { %6689 = vst.msk [vmem:[%s12953_s10 + $0x48] sm:$0xff] %vm3252_vm5, %v6657_v54  ;;  %v6627_v56 = vadd.f32 %v6595_v9, %v13898_v45  ;;  %v6594_v5 = vadd.f32 %v12909_v48, %v6558_v8  ;;  %v6561_v55 = vmul.f32 %v12889_v18, %v6525_v28  ;;  %v6524_v25 = vadd.f32 %v6413_v27, %v6256_v24  ;;  %v13903_v54 = vld [vmem:[#allocation29_spill] sm:$0xff]  ;;  %v13904_v24 = vld [vmem:[#allocation27_spill] sm:$0xff] }
 0x3c9   : > { %v6656_v10 = vmax.f32 %v6624_v32, 0.0  ;;  %v8972_v2 = vpop.f32.mrf.mxu0  ;;  %v6258_v26 = vadd.f32 %v12834_v49, %v5989_v29  ;;  %v5994_v57 = vadd.f32 %v13902_v30, %v5729_v22  ;;  %v5728_v9 = vadd.f32 %v13904_v24, %v13903_v54  ;;  %v13064_v49 = vpop.f32.mrf.mxu1  ;;  %v13906_v19 = vld [vmem:[#allocation13_spill] sm:$0xff]  ;;  %v13914_v24 = vld [vmem:[#allocation56_spill] sm:$0xff] }
 0x3ca   : > { %v6659_v4 = vmax.f32 %v6627_v56, 0.0  ;;  %v6626_v53 = vadd.f32 %v6594_v5, %v13901_v13  ;;  %v6597_v52 = vadd.f32 %v12909_v48, %v6561_v55  ;;  %v6560_v46 = vmul.f32 %v12889_v18, %v6524_v25  ;;  %v13909_v32 = vld [vmem:[#allocation33_spill] sm:$0xff] }
 0x3cb   : > { %6688 = vst.msk [vmem:[%s12953_s10 + $0x40] sm:$0xff] %vm3252_vm5, %v6656_v10  ;;  %v6527_v8 = vadd.f32 %v8972_v2, %v6259_v33  ;;  %v6423_v21 = vpop.f32.mrf.mxu0  ;;  %v6261_v28 = vadd.f32 %v12871_v3, %v5992_v34  ;;  %v5731_v22 = vadd.f32 %v13907_v0, %v13906_v19  ;;  %v5730_v27 = vadd.f32 %v13909_v32, %v13908_v6  ;;  %v13910_v5 = vld [vmem:[#allocation45_spill] sm:$0xff]  ;;  %v13911_v10 = vld [vmem:[#allocation90_spill] sm:$0xff]  ;;  %v13912_v33 = vld [vmem:[#allocation92_spill] sm:$0xff] }
 0x3cc   : > { %6691 = vst.msk [vmem:[%s12953_s10 + $0x58] sm:$0xff] %vm3252_vm5, %v6659_v4  ;;  %v6658_v29 = vmax.f32 %v6626_v53, 0.0  ;;  %v6629_v31 = vadd.f32 %v6597_v52, %v13905_v16  ;;  %v6596_v7 = vadd.f32 %v12909_v48, %v6560_v46  ;;  %v6526_v20 = vadd.f32 %v6423_v21, %v6258_v26  ;;  %v13084_v53 = vpop.f32.mrf.mxu1  ;;  %v13913_v30 = vld [vmem:[#allocation93_spill] sm:$0xff]  ;;  %v13916_v21 = vld [vmem:[#allocation62_spill] sm:$0xff] }
 0x3cd   : > { %v6563_v45 = vmul.f32 %v12889_v18, %v6527_v8  ;;  %v8975_v3 = vpop.f32.mrf.mxu0  ;;  %v6260_v34 = vadd.f32 %v12914_v47, %v5991_v40  ;;  %v5993_v42 = vadd.f32 %v13911_v10, %v5728_v9  ;;  %v5996_v2 = vadd.f32 %v13912_v33, %v5731_v22  ;;  %v13915_v9 = vld [vmem:[#allocation10_spill] sm:$0xff]  ;;  %v13920_v22 = vld [vmem:[#allocation95_spill] sm:$0xff] }
 0x3ce   : > { %6690 = vst.msk [vmem:[%s12953_s10 + $0x50] sm:$0xff] %vm3252_vm5, %v6658_v29  ;;  %v6661_v56 = vmax.f32 %v6629_v31, 0.0  ;;  %v6628_v55 = vadd.f32 %v6596_v7, %v13910_v5  ;;  %v6562_v25 = vmul.f32 %v12889_v18, %v6526_v20  ;;  %v6529_v60 = vadd.f32 %v8975_v3, %v6261_v28  ;;  %v13917_v28 = vld [vmem:[#allocation53_spill] sm:$0xff]  ;;  %v13918_v16 = vld [vmem:[#allocation50_spill] sm:$0xff] }
 0x3cf   : > { %v6599_v26 = vadd.f32 %v12909_v48, %v6563_v45  ;;  %v6433_v4 = vpop.f32.mrf.mxu0  ;;  %v6263_v13 = vadd.f32 %v12940_v23, %v5994_v57  ;;  %v5995_v54 = vadd.f32 %v13913_v30, %v5730_v27  ;;  %v5733_v8 = vadd.f32 %v13915_v9, %v13914_v24  ;;  %v13919_v31 = vld [vmem:[#allocation17_spill] sm:$0xff]  ;;  %v13922_v33 = vld [vmem:[#allocation58_spill] sm:$0xff]  ;;  %v13927_v24 = vld [vmem:[#allocation63_spill] sm:$0xff] }
 0x3d0   : > { %6693 = vst.msk [vmem:[%s12953_s10 + $0x68] sm:$0xff] %vm3252_vm5, %v6661_v56  ;;  %v6660_v47 = vmax.f32 %v6628_v55, 0.0  ;;  %v6598_v40 = vadd.f32 %v12909_v48, %v6562_v25  ;;  %v6565_v52 = vmul.f32 %v12889_v18, %v6529_v60  ;;  %v6528_v46 = vadd.f32 %v6433_v4, %v6260_v34  ;;  %v8940_v34 = vpop.f32.mrf.mxu1  ;;  %v13921_v60 = vld [vmem:[#allocation96_spill] sm:$0xff]  ;;  %v13926_v30 = vld [vmem:[#allocation66_spill] sm:$0xff] }
 0x3d1   : > { %v5732_v29 = vadd.f32 %v13917_v28, %v13916_v21  ;;  %v6631_v23 = vadd.f32 %v6599_v26, %v13918_v16  ;;  %v8978_v57 = vpop.f32.mrf.mxu0  ;;  %v5998_v6 = vadd.f32 %v13920_v22, %v5733_v8  ;;  %v6262_v27 = vadd.f32 %v12964_v63, %v5993_v42  ;;  %v13923_v26 = vld [vmem:[#allocation60_spill] sm:$0xff] }
 0x3d2   : > { %6692 = vst.msk [vmem:[%s12953_s10 + $0x60] sm:$0xff] %vm3252_vm5, %v6660_v47  ;;  %v6630_v7 = vadd.f32 %v6598_v40, %v13919_v31  ;;  %v6601_v20 = vadd.f32 %v12909_v48, %v6565_v52  ;;  %v6564_v19 = vmul.f32 %v12889_v18, %v6528_v46  ;;  %v6531_v0 = vadd.f32 %v8978_v57, %v6263_v13  ;;  %v13924_v40 = vld [vmem:[#allocation64_spill] sm:$0xff]  ;;  %v13925_v52 = vld [vmem:[#allocation57_spill] sm:$0xff] }
 0x3d3   : > { %v6663_v32 = vmax.f32 %v6631_v23, 0.0  ;;  %v6443_v45 = vpop.f32.mrf.mxu0  ;;  %v6265_v3 = vadd.f32 %v12984_v35, %v5996_v2  ;;  %v5997_v10 = vadd.f32 %v13921_v60, %v5732_v29  ;;  %v5735_v4 = vadd.f32 %v13923_v26, %v13922_v33  ;;  %v13928_v23 = vld [vmem:[#allocation98_spill] sm:$0xff]  ;;  %v13929_v31 = vld [vmem:[#allocation9_spill] sm:$0xff] }
 0x3d4   : > { %v6662_v56 = vmax.f32 %v6630_v7, 0.0  ;;  %v6633_v5 = vadd.f32 %v6601_v20, %v12855_v62  ;;  %v6600_v55 = vadd.f32 %v12909_v48, %v6564_v19  ;;  %v6567_v25 = vmul.f32 %v12889_v18, %v6531_v0 }
 0x3d5   : > { %6695 = vst.msk [vmem:[%s12953_s10 + $0x78] sm:$0xff] %vm3252_vm5, %v6663_v32  ;;  %v6530_v63 = vadd.f32 %v6443_v45, %v6262_v27  ;;  %v8981_v42 = vpop.f32.mrf.mxu0  ;;  %v6264_v35 = vadd.f32 %v13004_v17, %v5995_v54  ;;  %v5734_v46 = vadd.f32 %v13925_v52, %v13924_v40  ;;  %v5737_v9 = vadd.f32 %v13927_v24, %v13926_v30  ;;  %v6215_v54 = vpop.f32.mrf.mxu1  ;;  %v13930_v32 = vld [vmem:[#allocation19_spill] sm:$0xff]  ;;  %v13931_v45 = vld [vmem:[#allocation70_spill] sm:$0xff] }
 0x3d6   : > { %6694 = vst.msk [vmem:[%s12953_s10 + $0x70] sm:$0xff] %vm3252_vm5, %v6662_v56  ;;  %v6665_v2 = vmax.f32 %v6633_v5, 0.0  ;;  %v6632_v62 = vadd.f32 %v6600_v55, %v12858_v1  ;;  %v6603_v13 = vadd.f32 %v12909_v48, %v6567_v25  ;;  %v6533_v47 = vadd.f32 %v8981_v42, %v6265_v3  ;;  %v13932_v3 = vld [vmem:[#allocation65_spill] sm:$0xff]  ;;  %v13935_v42 = vld [vmem:[#allocation23_spill] sm:$0xff] }
 0x3d7   : > { %v6566_v8 = vmul.f32 %v12889_v18, %v6530_v63  ;;  %v6453_v21 = vpop.f32.mrf.mxu0  ;;  %v6267_v17 = vadd.f32 %v13025_v41, %v5998_v6  ;;  %v6000_v57 = vadd.f32 %v13928_v23, %v5735_v4  ;;  %v5999_v7 = vadd.f32 %v13929_v31, %v5734_v46  ;;  %v13933_v5 = vld [vmem:[#allocation73_spill] sm:$0xff]  ;;  %v13936_v46 = vld [vmem:[#allocation16_spill] sm:$0xff]  ;;  %v13937_v24 = vld [vmem:[#allocation75_spill] sm:$0xff] }
 0x3d8   : > { %6697 = vst.msk [vmem:[%s12953_s10 + $0x88] sm:$0xff] %vm3252_vm5, %v6665_v2  ;;  %v6664_v28 = vmax.f32 %v6632_v62, 0.0  ;;  %v6635_v1 = vadd.f32 %v6603_v13, %v12875_v12  ;;  %v6569_v29 = vmul.f32 %v12889_v18, %v6533_v47  ;;  %v6532_v16 = vadd.f32 %v6453_v21, %v6264_v35  ;;  %v13934_v55 = vld [vmem:[#allocation69_spill] sm:$0xff]  ;;  %v13940_v23 = vld [vmem:[#allocation74_spill] sm:$0xff] }
 0x3d9   : > { %v6602_v20 = vadd.f32 %v12909_v48, %v6566_v8  ;;  %v8984_v19 = vpop.f32.mrf.mxu0  ;;  %v6266_v0 = vadd.f32 %v13045_v51, %v5997_v10  ;;  %v6002_v27 = vadd.f32 %v13930_v32, %v5737_v9  ;;  %v5736_v56 = vadd.f32 %v13932_v3, %v13931_v45  ;;  %v8943_v51 = vpop.f32.mrf.mxu1  ;;  %v13938_v9 = vld [vmem:[#allocation72_spill] sm:$0xff]  ;;  %v13941_v31 = vld [vmem:[#allocation78_spill] sm:$0xff] }
 0x3da   : > { %6696 = vst.msk [vmem:[%s12953_s10 + $0x80] sm:$0xff] %vm3252_vm5, %v6664_v28  ;;  %v6667_v41 = vmax.f32 %v6635_v1, 0.0  ;;  %v6605_v22 = vadd.f32 %v12909_v48, %v6569_v29  ;;  %v6568_v12 = vmul.f32 %v12889_v18, %v6532_v16  ;;  %v6535_v6 = vadd.f32 %v8984_v19, %v6267_v17  ;;  %v13939_v16 = vld [vmem:[#allocation77_spill] sm:$0xff]  ;;  %v13943_v32 = vld [vmem:[#allocation6_spill] sm:$0xff]  ;;  %v13944_v45 = vld [vmem:[#allocation52_spill] sm:$0xff] }
 0x3db   : > { %v5739_v25 = vadd.f32 %v13934_v55, %v13933_v5  ;;  %v6634_v60 = vadd.f32 %v6602_v20, %v12878_v14  ;;  %v6463_v33 = vpop.f32.mrf.mxu0  ;;  %v6001_v35 = vadd.f32 %v13935_v42, %v5736_v56  ;;  %v6269_v62 = vadd.f32 %v13064_v49, %v6000_v57  ;;  %v6225_v28 = vpop.f32.mrf.mxu1 }
 0x3dc   : > { %6699 = vst.msk [vmem:[%s12953_s10 + $0x98] sm:$0xff] %vm3252_vm5, %v6667_v41  ;;  %v6637_v10 = vadd.f32 %v6605_v22, %v12881_v36  ;;  %v6604_v26 = vadd.f32 %v12909_v48, %v6568_v12  ;;  %v6571_v4 = vmul.f32 %v12889_v18, %v6535_v6  ;;  %v6534_v63 = vadd.f32 %v6463_v33, %v6266_v0 }
 0x3dd   : > { %v6666_v2 = vmax.f32 %v6634_v60, 0.0  ;;  %v8987_v13 = vpop.f32.mrf.mxu0  ;;  %v6268_v14 = vadd.f32 %v13084_v53, %v5999_v7  ;;  %v6004_v30 = vadd.f32 %v13936_v46, %v5739_v25  ;;  %v5738_v8 = vadd.f32 %v13938_v9, %v13937_v24  ;;  %v13942_v7 = vld [vmem:[#allocation76_spill] sm:$0xff]  ;;  %v8946_v41 = vpop.f32.mrf.mxu1 }
 0x3de   : > { %v6669_v47 = vmax.f32 %v6637_v10, 0.0  ;;  %v6636_v40 = vadd.f32 %v6604_v26, %v12884_v15  ;;  %v6607_v52 = vadd.f32 %v12909_v48, %v6571_v4  ;;  %v6570_v36 = vmul.f32 %v12889_v18, %v6534_v63  ;;  %v13946_v46 = vld [vmem:[#allocation68_spill] sm:$0xff] }
 0x3df   : > { %6698 = vst.msk [vmem:[%s12953_s10 + $0x90] sm:$0xff] %vm3252_vm5, %v6666_v2  ;;  %v6537_v21 = vadd.f32 %v8987_v13, %v6269_v62  ;;  %v6473_v49 = vpop.f32.mrf.mxu0  ;;  %v6271_v17 = vadd.f32 %v8940_v34, %v6002_v27  ;;  %v5741_v57 = vadd.f32 %v13940_v23, %v13939_v16  ;;  %v5740_v20 = vadd.f32 %v13942_v7, %v13941_v31 }
 0x3e0   : > { %6701 = vst.msk [vmem:[%s12953_s10 + $0xa8] sm:$0xff] %vm3252_vm5, %v6669_v47  ;;  %v6668_v53 = vmax.f32 %v6636_v40, 0.0  ;;  %v6639_v15 = vadd.f32 %v6607_v52, %v12892_v37  ;;  %v6606_v1 = vadd.f32 %v12909_v48, %v6570_v36  ;;  %v6536_v29 = vadd.f32 %v6473_v49, %v6268_v14  ;;  %v13945_v52 = vld [vmem:[#allocation67_spill] sm:$0xff] }
 0x3e1   : > { %v6573_v19 = vmul.f32 %v12889_v18, %v6537_v21  ;;  %v8990_v0 = vpop.f32.mrf.mxu0  ;;  %v6270_v34 = vadd.f32 %v6215_v54, %v6001_v35  ;;  %v6003_v27 = vadd.f32 %v13943_v32, %v5738_v8  ;;  %v6006_v3 = vadd.f32 %v13944_v45, %v5741_v57 }
 0x3e2   : > { %6700 = vst.msk [vmem:[%s12953_s10 + $0xa0] sm:$0xff] %vm3252_vm5, %v6668_v53  ;;  %v6671_v22 = vmax.f32 %v6639_v15, 0.0  ;;  %v6638_v37 = vadd.f32 %v6606_v1, %v12897_v59  ;;  %v6572_v12 = vmul.f32 %v12889_v18, %v6536_v29  ;;  %v6539_v6 = vadd.f32 %v8990_v0, %v6271_v17 }
 0x3e3   : > { %v6609_v56 = vadd.f32 %v12909_v48, %v6573_v19  ;;  %v6483_v5 = vpop.f32.mrf.mxu0  ;;  %v6273_v55 = vadd.f32 %v8943_v51, %v6004_v30  ;;  %v3767_v33 = vadd.f32 %v12734_v11, %v12920_v61  ;;  %v3766_v10 = vadd.f32 %v12734_v11, %v12931_v58  ;;  %v6235_v51 = vpop.f32.mrf.mxu1 }
 0x3e4   : > { %6703 = vst.msk [vmem:[%s12953_s10 + $0xb8] sm:$0xff] %vm3252_vm5, %v6671_v22  ;;  %v6670_v54 = vmax.f32 %v6638_v37, 0.0  ;;  %v6608_v25 = vadd.f32 %v12909_v48, %v6572_v12  ;;  %v6575_v60 = vmul.f32 %v12889_v18, %v6539_v6  ;;  %v6538_v59 = vadd.f32 %v6483_v5, %v6270_v34 }
 0x3e5   : > { %v6005_v26 = vadd.f32 %v12864_v44, %v5740_v20  ;;  %v6641_v4 = vadd.f32 %v6609_v56, %v12900_v43  ;;  %v8993_v63 = vpop.f32.mrf.mxu0  ;;  %v3769_v61 = vadd.f32 %v12734_v11, %v12935_v50  ;;  %v6275_v58 = vadd.f32 %v8946_v41, %v6006_v3 }
 0x3e6   : > { %6702 = vst.msk [vmem:[%s12953_s10 + $0xb0] sm:$0xff] %vm3252_vm5, %v6670_v54  ;;  %v6640_v42 = vadd.f32 %v6608_v25, %v12912_v38  ;;  %v6611_v35 = vadd.f32 %v12909_v48, %v6575_v60  ;;  %v6574_v2 = vmul.f32 %v12889_v18, %v6538_v59  ;;  %v6541_v62 = vadd.f32 %v8993_v63, %v6273_v55 }
 0x3e7   : > { %v6673_v44 = vmax.f32 %v6641_v4, 0.0  ;;  %v6272_v13 = vadd.f32 %v6225_v28, %v6003_v27  ;;  %v6493_v43 = vpop.f32.mrf.mxu0  ;;  %v3732_v36 = vmul.f32 %v12721_v39, %v13945_v52  ;;  %v3735_v30 = vmul.f32 %v13946_v46, %v12721_v39  ;;  %v13947_v28 = vld [vmem:[#allocation71_spill] sm:$0xff] }
 0x3e8   : > { %v6672_v14 = vmax.f32 %v6640_v42, 0.0  ;;  %v6643_v47 = vadd.f32 %v6611_v35, %v3767_v33  ;;  %v6610_v40 = vadd.f32 %v12909_v48, %v6574_v2  ;;  %v6577_v38 = vmul.f32 %v12889_v18, %v6541_v62 }
 0x3e9   : > { %v6274_v24 = vadd.f32 %v6235_v51, %v6005_v26  ;;  %6705 = vst.msk [vmem:[%s12953_s10 + $0xc8] sm:$0xff] %vm3252_vm5, %v6673_v44  ;;  %v6540_v50 = vadd.f32 %v6493_v43, %v6272_v13  ;;  %v8996_v9 = vpop.f32.mrf.mxu0  ;;  %v3734_v53 = vmul.f32 %v12721_v39, %v13947_v28  ;;  %v3768_v31 = vadd.f32 %v12734_v11, %v3732_v36 }
 0x3ea   : > { %6704 = vst.msk [vmem:[%s12953_s10 + $0xc0] sm:$0xff] %vm3252_vm5, %v6672_v14  ;;  %v6675_v8 = vmax.f32 %v6643_v47, 0.0  ;;  %v6642_v21 = vadd.f32 %v6610_v40, %v3766_v10  ;;  %v6613_v49 = vadd.f32 %v12909_v48, %v6577_v38  ;;  %v6543_v17 = vadd.f32 %v8996_v9, %v6275_v58 }
 0x3eb   : > { %v6576_v15 = vmul.f32 %v12889_v18, %v6540_v50  ;;  %v6503_v1 = vpop.f32.mrf.mxu0  ;;  %v3771_v20 = vadd.f32 %v12734_v11, %v3735_v30  ;;  %v3770_v41 = vadd.f32 %v12734_v11, %v3734_v53 }
 0x3ec   : > { %6707 = vst.msk [vmem:[%s12953_s10 + $0xd8] sm:$0xff] %vm3252_vm5, %v6675_v8  ;;  %v6674_v29 = vmax.f32 %v6642_v21, 0.0  ;;  %v6645_v16 = vadd.f32 %v6613_v49, %v3769_v61  ;;  %v6579_v23 = vmul.f32 %v12889_v18, %v6543_v17  ;;  %v6542_v57 = vadd.f32 %v6503_v1, %v6274_v24 }
 0x3ed   : > { %v6612_v7 = vadd.f32 %v12909_v48, %v6576_v15 }
 0x3ee   : > { %6706 = vst.msk [vmem:[%s12953_s10 + $0xd0] sm:$0xff] %vm3252_vm5, %v6674_v29  ;;  %v6677_v39 = vmax.f32 %v6645_v16, 0.0  ;;  %v6615_v19 = vadd.f32 %v12909_v48, %v6579_v23  ;;  %v6578_v0 = vmul.f32 %v12889_v18, %v6542_v57 }
 0x3ef   : > { %v6644_v34 = vadd.f32 %v6612_v7, %v3768_v31 }
 0x3f0   : > { %6709 = vst.msk [vmem:[%s12953_s10 + $0xe8] sm:$0xff] %vm3252_vm5, %v6677_v39  ;;  %v6647_v22 = vadd.f32 %v6615_v19, %v3771_v20  ;;  %v6614_v37 = vadd.f32 %v12909_v48, %v6578_v0 }
 0x3f1   : > { %v6676_v12 = vmax.f32 %v6644_v34, 0.0 }
 0x3f2   : > { %v6679_v6 = vmax.f32 %v6647_v22, 0.0  ;;  %v6646_v32 = vadd.f32 %v6614_v37, %v3770_v41 }
 0x3f3   : > { %6708 = vst.msk [vmem:[%s12953_s10 + $0xe0] sm:$0xff] %vm3252_vm5, %v6676_v12 }
 0x3f4   : > { %6711 = vst.msk [vmem:[%s12953_s10 + $0xf8] sm:$0xff] %vm3252_vm5, %v6679_v6  ;;  %v6678_v27 = vmax.f32 %v6646_v32, 0.0 }
 0x3f6   : > { %6710 = vst.msk [vmem:[%s12953_s10 + $0xf0] sm:$0xff] %vm3252_vm5, %v6678_v27 }
 0x3f7 PF: > { %s15_s18 = sadd.s32 1, %s9030_s18  }
 0x3f8   : > { %p12_p4 = scmp.ge.s32.totalorder %s15_s18, 4  }
 0x3fa   :  { %14 = sbr.rel (!%p12_p4) target bundleno = 1 (0x1), region = 88 }

</bundles_post_ra>
